<compile_context>
chip_gen: v7x
topology: tpu7x:2x2x1
jax: 0.10.0
libtpu: 0.0.40
codegen_flags: <defaults>
</compile_context>

<pallas_src>
import math

import numpy as np
import jax
import jax.numpy as jnp
from jax import lax
from jax.experimental import pallas as pl
from jax.experimental.pallas import tpu as pltpu

IN_DIM = 16        # concatenated feature dim (seq 8 + stat 4 + bse 4)
HID = 8            # LSTM hidden per direction
HID2 = 2 * HID     # bidirectional hidden = 16
GATES = 4 * HID    # 32 gate rows per direction (i, f, g, o)

C1_OUT, C1_K = 3, 2
C2_OUT, C2_IN, C2_K = 2, 3, 2
POOL = 2


# ----------------------------------------------------------------------------
# Fused kernel: BiLSTM (merged fwd/bwd, batch-in-lanes) + CNN head.
# ----------------------------------------------------------------------------
def _fe2_kernel(x_ref,                      # (T, B*16)  x.reshape(T, -1)
                wih_ref,                    # (B*16, 4*L) block-diag input proj
                whh_ref,                    # (L,    4*L) block-diag recurrent
                b_ref,                      # (1,    4*L) combined biases
                c1w_ref, c1b_ref,           # SMEM (3,2), (3,)
                c2w_ref, c2b_ref,           # SMEM (2,6), (2,)
                out_ref):                   # (T, 2*P2) = (T, 70)
    T = x_ref.shape[0]
    L = whh_ref.shape[0]                    # 16 * B  (interleaved hidden lanes)
    G4 = whh_ref.shape[1]                   # 4 * L   (gate-major columns)

    # ---- hoisted input projection: both directions, all gates, all t ----
    gx = jnp.dot(x_ref[...], wih_ref[...],
                 preferred_element_type=jnp.float32) + b_ref[...]      # (T, 4L)
    whh = whh_ref[...]                                                  # load once

    # Interleaved lane layout: lane = 16*b + 8*d + j  (d=0 fwd, d=1 bwd).
    lane4 = lax.broadcasted_iota(jnp.int32, (1, G4), 1)
    fwd4 = jnp.bitwise_and(lane4, 15) < 8           # fwd lanes in every gate block
    laneL = lax.broadcasted_iota(jnp.int32, (1, L), 1)
    fwdL = jnp.bitwise_and(laneL, 15) < 8

    # Per-step gate inputs: fwd lanes read gx[t], bwd lanes read gx[T-1-t].
    # (off the recurrence dependence chain -> built before the loop)
    gx_steps = [jnp.where(fwd4, gx[t:t + 1, :], gx[T - 1 - t:T - t, :])
                for t in range(T)]

    h = jnp.zeros((1, L), jnp.float32)
    c = jnp.zeros((1, L), jnp.float32)
    step_h = []
    for t in range(T):                                   # fused fwd/bwd recurrence
        g = gx_steps[t] + jnp.dot(h, whh, preferred_element_type=jnp.float32)
        i = jax.nn.sigmoid(g[:, 0 * L:1 * L])
        f = jax.nn.sigmoid(g[:, 1 * L:2 * L])
        gg = jnp.tanh(g[:, 2 * L:3 * L])
        o = jax.nn.sigmoid(g[:, 3 * L:4 * L])
        c = f * c + i * gg
        h = o * jnp.tanh(c)
        step_h.append(h)

    # H.reshape(T, 1, -1): output row t takes fwd lanes from step t and bwd lanes
    # from step T-1-t; the lane order already matches the PyTorch flatten.
    row_ids = lax.broadcasted_iota(jnp.int32, (T, 1), 0)
    hflat = jnp.zeros((T, L), jnp.float32)
    for t in range(T):
        row = jnp.where(fwdL, step_h[t], step_h[T - 1 - t])       # (1, L)
        hflat = hflat + jnp.where(row_ids == t, row, 0.0)         # place at row t

    # ---- conv1 (k=2) + ReLU, 3 channels, lane-stacked ----
    L1 = L - 1
    left = hflat[:, 0:L1]
    right = hflat[:, 1:L]
    y1 = [jnp.maximum(c1w_ref[cc, 0] * left + c1w_ref[cc, 1] * right
                      + c1b_ref[cc], 0.0) for cc in range(C1_OUT)]
    Y1 = jnp.concatenate(y1, axis=1)                              # (T, 3*L1)

    # ---- maxpool(2): pairwise-neighbour max, then one 0/1 selector matmul
    #      (selector generated in-kernel, block-diagonal over channels). ----
    P1 = (L1 - POOL) // POOL + 1                                  # 71
    M1 = jnp.maximum(Y1[:, :C1_OUT * L1 - 1], Y1[:, 1:])          # (T, 3*L1-1)
    r1 = lax.broadcasted_iota(jnp.int32, (C1_OUT * L1 - 1, P1), 0)
    q1 = lax.broadcasted_iota(jnp.int32, (C1_OUT * L1 - 1, P1), 1)
    S1 = jnp.concatenate(
        [(r1 == (cc * L1 + 2 * q1)).astype(jnp.float32) for cc in range(C1_OUT)],
        axis=1)                                                   # (3*L1-1, 3*P1)
    pool1 = jnp.dot(M1, S1, preferred_element_type=jnp.float32)   # (T, 3*P1)
    p1 = [pool1[:, cc * P1:(cc + 1) * P1] for cc in range(C1_OUT)]

    # ---- conv2 (k=2, 3 -> 2 channels) + ReLU ----
    L2 = P1 - 1                                                   # 70
    y2 = []
    for c2 in range(C2_OUT):
        acc = (c2w_ref[c2, 0] * p1[0][:, 0:L2] + c2w_ref[c2, 1] * p1[0][:, 1:P1]
               + c2w_ref[c2, 2] * p1[1][:, 0:L2] + c2w_ref[c2, 3] * p1[1][:, 1:P1]
               + c2w_ref[c2, 4] * p1[2][:, 0:L2] + c2w_ref[c2, 5] * p1[2][:, 1:P1]
               + c2b_ref[c2])
        y2.append(jnp.maximum(acc, 0.0))
    Y2 = jnp.concatenate(y2, axis=1)                              # (T, 2*L2)

    # ---- maxpool(2) + channel-major flatten: the selector matmul emits the
    #      final (T, 2*P2) layout directly -> one lane-dense bulk store. ----
    P2 = (L2 - POOL) // POOL + 1                                  # 35
    M2 = jnp.maximum(Y2[:, :C2_OUT * L2 - 1], Y2[:, 1:])          # (T, 2*L2-1)
    r2 = lax.broadcasted_iota(jnp.int32, (C2_OUT * L2 - 1, P2), 0)
    q2 = lax.broadcasted_iota(jnp.int32, (C2_OUT * L2 - 1, P2), 1)
    S2 = jnp.concatenate(
        [(r2 == (cc * L2 + 2 * q2)).astype(jnp.float32) for cc in range(C2_OUT)],
        axis=1)                                                   # (2*L2-1, 2*P2)
    out_ref[...] = jnp.dot(M2, S2, preferred_element_type=jnp.float32)


# ----------------------------------------------------------------------------
# Wrapper
# ----------------------------------------------------------------------------
def feature_extractor2_forward(seq, stat, bse, kp):
    x = jnp.concatenate(
        [seq.astype(jnp.float32), stat.astype(jnp.float32), bse.astype(jnp.float32)],
        axis=2)                                      # (T, B, 16)
    T, B, F = x.shape
    assert F == IN_DIM
    xflat = x.reshape(T, B * IN_DIM)                 # free XLA reshape

    L = B * HID2
    L1 = L - C1_K + 1
    P1 = (L1 - POOL) // POOL + 1
    L2 = P1 - C2_K + 1
    P2 = (L2 - POOL) // POOL + 1

    vmem = lambda: pl.BlockSpec(memory_space=pltpu.MemorySpace.VMEM)
    smem = lambda: pl.BlockSpec(memory_space=pltpu.MemorySpace.SMEM)

    out = pl.pallas_call(
        _fe2_kernel,
        out_shape=jax.ShapeDtypeStruct((T, C2_OUT * P2), jnp.float32),
        in_specs=[vmem()] * 4 + [smem()] * 4,
        out_specs=vmem(),
    )(xflat, kp["w_ih_big"], kp["w_hh_big"], kp["bias_big"],
      kp["c1w"], kp["c1b"], kp["c2w"], kp["c2b"])
    return out


# ----------------------------------------------------------------------------
# Deterministic parameter init (PyTorch-like uniform bounds) + kernel packing.
# ----------------------------------------------------------------------------
def init_params(key):
    ks = jax.random.split(key, 12)

    def unif(k, shape, bound):
        return jax.random.uniform(k, shape, jnp.float32, -bound, bound)

    kl = 1.0 / math.sqrt(HID)
    kc1 = 1.0 / math.sqrt(1 * C1_K)
    kc2 = 1.0 / math.sqrt(C2_IN * C2_K)
    return {
        "w_ih_f": unif(ks[0], (GATES, IN_DIM), kl),
        "w_hh_f": unif(ks[1], (GATES, HID), kl),
        "b_ih_f": unif(ks[2], (GATES,), kl),
        "b_hh_f": unif(ks[3], (GATES,), kl),
        "w_ih_b": unif(ks[4], (GATES, IN_DIM), kl),
        "w_hh_b": unif(ks[5], (GATES, HID), kl),
        "b_ih_b": unif(ks[6], (GATES,), kl),
        "b_hh_b": unif(ks[7], (GATES,), kl),
        "conv1_w": unif(ks[8], (C1_OUT, 1, C1_K), kc1),
        "conv1_b": unif(ks[9], (C1_OUT,), kc1),
        "conv2_w": unif(ks[10], (C2_OUT, C2_IN, C2_K), kc2),
        "conv2_b": unif(ks[11], (C2_OUT,), kc2),
    }


def to_kernel_params(p, batch):
    """Pack fwd/bwd LSTM weights into merged block-diagonal operands.

    Lane layout of the hidden state: lane(b, d, j) = 16*b + 8*d + j  (d=0 fwd,
    d=1 bwd).  Gate columns are gate-major: col(G, b, d, j) = G*L + lane(b,d,j).
    """
    L = HID2 * batch
    G4 = 4 * L
    w_ih = {0: np.asarray(p["w_ih_f"]), 1: np.asarray(p["w_ih_b"])}      # (32,16)
    w_hh = {0: np.asarray(p["w_hh_f"]), 1: np.asarray(p["w_hh_b"])}      # (32,8)
    bias = {0: np.asarray(p["b_ih_f"]) + np.asarray(p["b_hh_f"]),
            1: np.asarray(p["b_ih_b"]) + np.asarray(p["b_hh_b"])}        # (32,)

    w_ih_big = np.zeros((IN_DIM * batch, G4), np.float32)
    w_hh_big = np.zeros((L, G4), np.float32)
    bias_big = np.zeros((1, G4), np.float32)
    for b in range(batch):
        for d in (0, 1):
            for G in range(4):
                for j in range(HID):
                    col = G * L + HID2 * b + HID * d + j
                    w_ih_big[IN_DIM * b:IN_DIM * (b + 1), col] = w_ih[d][G * HID + j, :]
                    rs = HID2 * b + HID * d
                    w_hh_big[rs:rs + HID, col] = w_hh[d][G * HID + j, :]
                    bias_big[0, col] = bias[d][G * HID + j]

    return {
        "w_ih_big": jnp.asarray(w_ih_big),
        "w_hh_big": jnp.asarray(w_hh_big),
        "bias_big": jnp.asarray(bias_big),
        "c1w": jnp.asarray(np.asarray(p["conv1_w"]).reshape(C1_OUT, C1_K)),
        "c1b": p["conv1_b"],
        "c2w": jnp.asarray(np.asarray(p["conv2_w"]).reshape(C2_OUT, C2_IN * C2_K)),
        "c2b": p["conv2_b"],
    }


# ----------------------------------------------------------------------------
# Pure-JAX reference (mirrors the PyTorch forward exactly).
# ----------------------------------------------------------------------------
def _lstm_dir_ref(x, w_ih, w_hh, b_ih, b_hh):
    B = x.shape[1]

    def step(carry, xt):
        h, c = carry
        g = xt @ w_ih.T + h @ w_hh.T + b_ih + b_hh
        i = jax.nn.sigmoid(g[:, 0:HID])
        f = jax.nn.sigmoid(g[:, HID:2 * HID])
        gg = jnp.tanh(g[:, 2 * HID:3 * HID])
        o = jax.nn.sigmoid(g[:, 3 * HID:])
        c = f * c + i * gg
        h = o * jnp.tanh(c)
        return (h, c), h

    init = (jnp.zeros((B, HID), jnp.float32), jnp.zeros((B, HID), jnp.float32))
    _, hs = lax.scan(step, init, x)
    return hs


def _conv1d_ref(x, w, b):
    K = w.shape[-1]
    Lo = x.shape[-1] - K + 1
    cols = jnp.stack([x[:, :, k:k + Lo] for k in range(K)], axis=-1)  # (N,Cin,Lo,K)
    return jnp.einsum("nilk,oik->nol", cols, w) + b[None, :, None]


def _maxpool1d_ref(x, k=2):
    Lo = (x.shape[-1] - k) // k + 1
    return x[:, :, :Lo * k].reshape(x.shape[0], x.shape[1], Lo, k).max(axis=-1)


def feature_extractor2_ref(seq, stat, bse, p):
    x = jnp.concatenate([seq, stat, bse], axis=2).astype(jnp.float32)
    T = x.shape[0]
    hf = _lstm_dir_ref(x, p["w_ih_f"], p["w_hh_f"], p["b_ih_f"], p["b_hh_f"])
    hb = _lstm_dir_ref(x[::-1], p["w_ih_b"], p["w_hh_b"], p["b_ih_b"], p["b_hh_b"])[::-1]
    H = jnp.concatenate([hf, hb], axis=-1)            # (T, B, 16)
    Hr = H.reshape(T, 1, -1)
    y = jnp.maximum(_conv1d_ref(Hr, p["conv1_w"], p["conv1_b"]), 0.0)
    y = _maxpool1d_ref(y, POOL)
    y = jnp.maximum(_conv1d_ref(y, p["conv2_w"], p["conv2_b"]), 0.0)
    y = _maxpool1d_ref(y, POOL)
    return y.reshape(T, -1)


# ----------------------------------------------------------------------------
if __name__ == "__main__":
    key = jax.random.PRNGKey(0)
    k_seq, k_stat, k_bse, k_par = jax.random.split(key, 4)

    T, B = 8, 9
    seq = jax.random.normal(k_seq, (T, B, 8), jnp.float32)
    stat = jax.random.normal(k_stat, (T, B, 4), jnp.float32)
    bse = jax.random.normal(k_bse, (T, B, 4), jnp.float32)

    raw = init_params(k_par)
    kp = to_kernel_params(raw, B)

    out = jax.jit(feature_extractor2_forward)(seq, stat, bse, kp)
    out = jax.block_until_ready(out)

    L = B * HID2
    L1 = L - C1_K + 1
    P1 = (L1 - POOL) // POOL + 1
    L2 = P1 - C2_K + 1
    P2 = (L2 - POOL) // POOL + 1
    assert out.shape == (T, C2_OUT * P2), out.shape
    assert bool(jnp.all(jnp.isfinite(out)))

    ref = feature_extractor2_ref(seq, stat, bse, raw)
    assert out.shape == ref.shape
    assert jnp.allclose(out, ref, atol=2e-2, rtol=2e-2), (out, ref)

    print("KERNEL_OK")
</pallas_src>

<mosaic_0001>
module attributes {stable_mosaic.version = 11 : i64} {
  func.func @_fe2_kernel(%arg0: memref<8x144xf32, #tpu.memory_space<vmem>>, %arg1: memref<144x576xf32, #tpu.memory_space<vmem>>, %arg2: memref<144x576xf32, #tpu.memory_space<vmem>>, %arg3: memref<1x576xf32, #tpu.memory_space<vmem>>, %arg4: memref<3x2xf32, #tpu.memory_space<smem>>, %arg5: memref<3xf32, #tpu.memory_space<smem>>, %arg6: memref<2x6xf32, #tpu.memory_space<smem>>, %arg7: memref<2xf32, #tpu.memory_space<smem>>, %arg8: memref<8x70xf32, #tpu.memory_space<vmem>>) attributes {dimension_semantics = [], scalar_prefetch = 0 : i64, scratch_operands = 0 : i64, tpu.core_type = #tpu.core_type<tc>} {
    %c0 = arith.constant 0 : index
    %c0_0 = arith.constant 0 : index
    %0 = vector.load %arg0[%c0, %c0_0] : memref<8x144xf32, #tpu.memory_space<vmem>>, vector<8x144xf32>
    %c0_1 = arith.constant 0 : index
    %c0_2 = arith.constant 0 : index
    %1 = vector.load %arg1[%c0_1, %c0_2] : memref<144x576xf32, #tpu.memory_space<vmem>>, vector<144x576xf32>
    %cst = arith.constant dense<0.000000e+00> : vector<8x576xf32>
    %2 = tpu.matmul %0, %1, %cst {dimension_numbers = #tpu.dot_dimension_numbers<[1], [0], [0], [1], [0, 0, 1, 1], [], []>} : vector<8x144xf32>, vector<144x576xf32>, vector<8x576xf32> -> vector<8x576xf32>
    %c0_3 = arith.constant 0 : index
    %c0_4 = arith.constant 0 : index
    %3 = vector.load %arg3[%c0_3, %c0_4] : memref<1x576xf32, #tpu.memory_space<vmem>>, vector<1x576xf32>
    %4 = vector.broadcast %3 : vector<1x576xf32> to vector<8x576xf32>
    %5 = arith.addf %2, %4 : vector<8x576xf32>
    %c0_5 = arith.constant 0 : index
    %c0_6 = arith.constant 0 : index
    %6 = vector.load %arg2[%c0_5, %c0_6] : memref<144x576xf32, #tpu.memory_space<vmem>>, vector<144x576xf32>
    %7 = tpu.iota {dimensions = array<i32: 1>} : vector<1x576xi32>
    %c15_i32 = arith.constant 15 : i32
    %8 = vector.broadcast %c15_i32 : i32 to vector<1x576xi32>
    %9 = arith.andi %7, %8 : vector<1x576xi32>
    %c8_i32 = arith.constant 8 : i32
    %10 = vector.broadcast %c8_i32 : i32 to vector<1x576xi32>
    %11 = arith.cmpi slt, %9, %10 : vector<1x576xi32>
    %12 = tpu.iota {dimensions = array<i32: 1>} : vector<1x144xi32>
    %c15_i32_7 = arith.constant 15 : i32
    %13 = vector.broadcast %c15_i32_7 : i32 to vector<1x144xi32>
    %14 = arith.andi %12, %13 : vector<1x144xi32>
    %c8_i32_8 = arith.constant 8 : i32
    %15 = vector.broadcast %c8_i32_8 : i32 to vector<1x144xi32>
    %16 = arith.cmpi slt, %14, %15 : vector<1x144xi32>
    %17 = vector.extract_strided_slice %5 {offsets = [0, 0], sizes = [1, 576], strides = [1, 1]} : vector<8x576xf32> to vector<1x576xf32>
    %18 = vector.extract_strided_slice %5 {offsets = [7, 0], sizes = [1, 576], strides = [1, 1]} : vector<8x576xf32> to vector<1x576xf32>
    %19 = arith.select %11, %17, %18 : vector<1x576xi1>, vector<1x576xf32>
    %20 = vector.extract_strided_slice %5 {offsets = [1, 0], sizes = [1, 576], strides = [1, 1]} : vector<8x576xf32> to vector<1x576xf32>
    %21 = vector.extract_strided_slice %5 {offsets = [6, 0], sizes = [1, 576], strides = [1, 1]} : vector<8x576xf32> to vector<1x576xf32>
    %22 = arith.select %11, %20, %21 : vector<1x576xi1>, vector<1x576xf32>
    %23 = vector.extract_strided_slice %5 {offsets = [2, 0], sizes = [1, 576], strides = [1, 1]} : vector<8x576xf32> to vector<1x576xf32>
    %24 = vector.extract_strided_slice %5 {offsets = [5, 0], sizes = [1, 576], strides = [1, 1]} : vector<8x576xf32> to vector<1x576xf32>
    %25 = arith.select %11, %23, %24 : vector<1x576xi1>, vector<1x576xf32>
    %26 = vector.extract_strided_slice %5 {offsets = [3, 0], sizes = [1, 576], strides = [1, 1]} : vector<8x576xf32> to vector<1x576xf32>
    %27 = vector.extract_strided_slice %5 {offsets = [4, 0], sizes = [1, 576], strides = [1, 1]} : vector<8x576xf32> to vector<1x576xf32>
    %28 = arith.select %11, %26, %27 : vector<1x576xi1>, vector<1x576xf32>
    %29 = vector.extract_strided_slice %5 {offsets = [4, 0], sizes = [1, 576], strides = [1, 1]} : vector<8x576xf32> to vector<1x576xf32>
    %30 = vector.extract_strided_slice %5 {offsets = [3, 0], sizes = [1, 576], strides = [1, 1]} : vector<8x576xf32> to vector<1x576xf32>
    %31 = arith.select %11, %29, %30 : vector<1x576xi1>, vector<1x576xf32>
    %32 = vector.extract_strided_slice %5 {offsets = [5, 0], sizes = [1, 576], strides = [1, 1]} : vector<8x576xf32> to vector<1x576xf32>
    %33 = vector.extract_strided_slice %5 {offsets = [2, 0], sizes = [1, 576], strides = [1, 1]} : vector<8x576xf32> to vector<1x576xf32>
    %34 = arith.select %11, %32, %33 : vector<1x576xi1>, vector<1x576xf32>
    %35 = vector.extract_strided_slice %5 {offsets = [6, 0], sizes = [1, 576], strides = [1, 1]} : vector<8x576xf32> to vector<1x576xf32>
    %36 = vector.extract_strided_slice %5 {offsets = [1, 0], sizes = [1, 576], strides = [1, 1]} : vector<8x576xf32> to vector<1x576xf32>
    %37 = arith.select %11, %35, %36 : vector<1x576xi1>, vector<1x576xf32>
    %38 = vector.extract_strided_slice %5 {offsets = [7, 0], sizes = [1, 576], strides = [1, 1]} : vector<8x576xf32> to vector<1x576xf32>
    %39 = vector.extract_strided_slice %5 {offsets = [0, 0], sizes = [1, 576], strides = [1, 1]} : vector<8x576xf32> to vector<1x576xf32>
    %40 = arith.select %11, %38, %39 : vector<1x576xi1>, vector<1x576xf32>
    %cst_9 = arith.constant 0.000000e+00 : f32
    %41 = vector.broadcast %cst_9 : f32 to vector<1x144xf32>
    %cst_10 = arith.constant 0.000000e+00 : f32
    %42 = vector.broadcast %cst_10 : f32 to vector<1x144xf32>
    %cst_11 = arith.constant dense<0.000000e+00> : vector<1x576xf32>
    %43 = tpu.matmul %41, %6, %cst_11 {dimension_numbers = #tpu.dot_dimension_numbers<[1], [0], [0], [1], [0, 0, 1, 1], [], []>} : vector<1x144xf32>, vector<144x576xf32>, vector<1x576xf32> -> vector<1x576xf32>
    %44 = arith.addf %19, %43 : vector<1x576xf32>
    %45 = vector.extract_strided_slice %44 {offsets = [0, 0], sizes = [1, 144], strides = [1, 1]} : vector<1x576xf32> to vector<1x144xf32>
    %46 = arith.negf %45 : vector<1x144xf32>
    %47 = math.exp %46 : vector<1x144xf32>
    %cst_12 = arith.constant 1.000000e+00 : f32
    %48 = vector.broadcast %cst_12 : f32 to vector<1x144xf32>
    %49 = arith.addf %48, %47 : vector<1x144xf32>
    %50 = arith.divf %48, %49 : vector<1x144xf32>
    %51 = vector.extract_strided_slice %44 {offsets = [0, 144], sizes = [1, 144], strides = [1, 1]} : vector<1x576xf32> to vector<1x144xf32>
    %52 = arith.negf %51 : vector<1x144xf32>
    %53 = math.exp %52 : vector<1x144xf32>
    %cst_13 = arith.constant 1.000000e+00 : f32
    %54 = vector.broadcast %cst_13 : f32 to vector<1x144xf32>
    %55 = arith.addf %54, %53 : vector<1x144xf32>
    %56 = arith.divf %54, %55 : vector<1x144xf32>
    %57 = vector.extract_strided_slice %44 {offsets = [0, 288], sizes = [1, 144], strides = [1, 1]} : vector<1x576xf32> to vector<1x144xf32>
    %58 = math.tanh %57 : vector<1x144xf32>
    %59 = vector.extract_strided_slice %44 {offsets = [0, 432], sizes = [1, 144], strides = [1, 1]} : vector<1x576xf32> to vector<1x144xf32>
    %60 = arith.negf %59 : vector<1x144xf32>
    %61 = math.exp %60 : vector<1x144xf32>
    %cst_14 = arith.constant 1.000000e+00 : f32
    %62 = vector.broadcast %cst_14 : f32 to vector<1x144xf32>
    %63 = arith.addf %62, %61 : vector<1x144xf32>
    %64 = arith.divf %62, %63 : vector<1x144xf32>
    %65 = arith.mulf %56, %42 : vector<1x144xf32>
    %66 = arith.mulf %50, %58 : vector<1x144xf32>
    %67 = arith.addf %65, %66 : vector<1x144xf32>
    %68 = math.tanh %67 : vector<1x144xf32>
    %69 = arith.mulf %64, %68 : vector<1x144xf32>
    %cst_15 = arith.constant dense<0.000000e+00> : vector<1x576xf32>
    %70 = tpu.matmul %69, %6, %cst_15 {dimension_numbers = #tpu.dot_dimension_numbers<[1], [0], [0], [1], [0, 0, 1, 1], [], []>} : vector<1x144xf32>, vector<144x576xf32>, vector<1x576xf32> -> vector<1x576xf32>
    %71 = arith.addf %22, %70 : vector<1x576xf32>
    %72 = vector.extract_strided_slice %71 {offsets = [0, 0], sizes = [1, 144], strides = [1, 1]} : vector<1x576xf32> to vector<1x144xf32>
    %73 = arith.negf %72 : vector<1x144xf32>
    %74 = math.exp %73 : vector<1x144xf32>
    %cst_16 = arith.constant 1.000000e+00 : f32
    %75 = vector.broadcast %cst_16 : f32 to vector<1x144xf32>
    %76 = arith.addf %75, %74 : vector<1x144xf32>
    %77 = arith.divf %75, %76 : vector<1x144xf32>
    %78 = vector.extract_strided_slice %71 {offsets = [0, 144], sizes = [1, 144], strides = [1, 1]} : vector<1x576xf32> to vector<1x144xf32>
    %79 = arith.negf %78 : vector<1x144xf32>
    %80 = math.exp %79 : vector<1x144xf32>
    %cst_17 = arith.constant 1.000000e+00 : f32
    %81 = vector.broadcast %cst_17 : f32 to vector<1x144xf32>
    %82 = arith.addf %81, %80 : vector<1x144xf32>
    %83 = arith.divf %81, %82 : vector<1x144xf32>
    %84 = vector.extract_strided_slice %71 {offsets = [0, 288], sizes = [1, 144], strides = [1, 1]} : vector<1x576xf32> to vector<1x144xf32>
    %85 = math.tanh %84 : vector<1x144xf32>
    %86 = vector.extract_strided_slice %71 {offsets = [0, 432], sizes = [1, 144], strides = [1, 1]} : vector<1x576xf32> to vector<1x144xf32>
    %87 = arith.negf %86 : vector<1x144xf32>
    %88 = math.exp %87 : vector<1x144xf32>
    %cst_18 = arith.constant 1.000000e+00 : f32
    %89 = vector.broadcast %cst_18 : f32 to vector<1x144xf32>
    %90 = arith.addf %89, %88 : vector<1x144xf32>
    %91 = arith.divf %89, %90 : vector<1x144xf32>
    %92 = arith.mulf %83, %67 : vector<1x144xf32>
    %93 = arith.mulf %77, %85 : vector<1x144xf32>
    %94 = arith.addf %92, %93 : vector<1x144xf32>
    %95 = math.tanh %94 : vector<1x144xf32>
    %96 = arith.mulf %91, %95 : vector<1x144xf32>
    %cst_19 = arith.constant dense<0.000000e+00> : vector<1x576xf32>
    %97 = tpu.matmul %96, %6, %cst_19 {dimension_numbers = #tpu.dot_dimension_numbers<[1], [0], [0], [1], [0, 0, 1, 1], [], []>} : vector<1x144xf32>, vector<144x576xf32>, vector<1x576xf32> -> vector<1x576xf32>
    %98 = arith.addf %25, %97 : vector<1x576xf32>
    %99 = vector.extract_strided_slice %98 {offsets = [0, 0], sizes = [1, 144], strides = [1, 1]} : vector<1x576xf32> to vector<1x144xf32>
    %100 = arith.negf %99 : vector<1x144xf32>
    %101 = math.exp %100 : vector<1x144xf32>
    %cst_20 = arith.constant 1.000000e+00 : f32
    %102 = vector.broadcast %cst_20 : f32 to vector<1x144xf32>
    %103 = arith.addf %102, %101 : vector<1x144xf32>
    %104 = arith.divf %102, %103 : vector<1x144xf32>
    %105 = vector.extract_strided_slice %98 {offsets = [0, 144], sizes = [1, 144], strides = [1, 1]} : vector<1x576xf32> to vector<1x144xf32>
    %106 = arith.negf %105 : vector<1x144xf32>
    %107 = math.exp %106 : vector<1x144xf32>
    %cst_21 = arith.constant 1.000000e+00 : f32
    %108 = vector.broadcast %cst_21 : f32 to vector<1x144xf32>
    %109 = arith.addf %108, %107 : vector<1x144xf32>
    %110 = arith.divf %108, %109 : vector<1x144xf32>
    %111 = vector.extract_strided_slice %98 {offsets = [0, 288], sizes = [1, 144], strides = [1, 1]} : vector<1x576xf32> to vector<1x144xf32>
    %112 = math.tanh %111 : vector<1x144xf32>
    %113 = vector.extract_strided_slice %98 {offsets = [0, 432], sizes = [1, 144], strides = [1, 1]} : vector<1x576xf32> to vector<1x144xf32>
    %114 = arith.negf %113 : vector<1x144xf32>
    %115 = math.exp %114 : vector<1x144xf32>
    %cst_22 = arith.constant 1.000000e+00 : f32
    %116 = vector.broadcast %cst_22 : f32 to vector<1x144xf32>
    %117 = arith.addf %116, %115 : vector<1x144xf32>
    %118 = arith.divf %116, %117 : vector<1x144xf32>
    %119 = arith.mulf %110, %94 : vector<1x144xf32>
    %120 = arith.mulf %104, %112 : vector<1x144xf32>
    %121 = arith.addf %119, %120 : vector<1x144xf32>
    %122 = math.tanh %121 : vector<1x144xf32>
    %123 = arith.mulf %118, %122 : vector<1x144xf32>
    %cst_23 = arith.constant dense<0.000000e+00> : vector<1x576xf32>
    %124 = tpu.matmul %123, %6, %cst_23 {dimension_numbers = #tpu.dot_dimension_numbers<[1], [0], [0], [1], [0, 0, 1, 1], [], []>} : vector<1x144xf32>, vector<144x576xf32>, vector<1x576xf32> -> vector<1x576xf32>
    %125 = arith.addf %28, %124 : vector<1x576xf32>
    %126 = vector.extract_strided_slice %125 {offsets = [0, 0], sizes = [1, 144], strides = [1, 1]} : vector<1x576xf32> to vector<1x144xf32>
    %127 = arith.negf %126 : vector<1x144xf32>
    %128 = math.exp %127 : vector<1x144xf32>
    %cst_24 = arith.constant 1.000000e+00 : f32
    %129 = vector.broadcast %cst_24 : f32 to vector<1x144xf32>
    %130 = arith.addf %129, %128 : vector<1x144xf32>
    %131 = arith.divf %129, %130 : vector<1x144xf32>
    %132 = vector.extract_strided_slice %125 {offsets = [0, 144], sizes = [1, 144], strides = [1, 1]} : vector<1x576xf32> to vector<1x144xf32>
    %133 = arith.negf %132 : vector<1x144xf32>
    %134 = math.exp %133 : vector<1x144xf32>
    %cst_25 = arith.constant 1.000000e+00 : f32
    %135 = vector.broadcast %cst_25 : f32 to vector<1x144xf32>
    %136 = arith.addf %135, %134 : vector<1x144xf32>
    %137 = arith.divf %135, %136 : vector<1x144xf32>
    %138 = vector.extract_strided_slice %125 {offsets = [0, 288], sizes = [1, 144], strides = [1, 1]} : vector<1x576xf32> to vector<1x144xf32>
    %139 = math.tanh %138 : vector<1x144xf32>
    %140 = vector.extract_strided_slice %125 {offsets = [0, 432], sizes = [1, 144], strides = [1, 1]} : vector<1x576xf32> to vector<1x144xf32>
    %141 = arith.negf %140 : vector<1x144xf32>
    %142 = math.exp %141 : vector<1x144xf32>
    %cst_26 = arith.constant 1.000000e+00 : f32
    %143 = vector.broadcast %cst_26 : f32 to vector<1x144xf32>
    %144 = arith.addf %143, %142 : vector<1x144xf32>
    %145 = arith.divf %143, %144 : vector<1x144xf32>
    %146 = arith.mulf %137, %121 : vector<1x144xf32>
    %147 = arith.mulf %131, %139 : vector<1x144xf32>
    %148 = arith.addf %146, %147 : vector<1x144xf32>
    %149 = math.tanh %148 : vector<1x144xf32>
    %150 = arith.mulf %145, %149 : vector<1x144xf32>
    %cst_27 = arith.constant dense<0.000000e+00> : vector<1x576xf32>
    %151 = tpu.matmul %150, %6, %cst_27 {dimension_numbers = #tpu.dot_dimension_numbers<[1], [0], [0], [1], [0, 0, 1, 1], [], []>} : vector<1x144xf32>, vector<144x576xf32>, vector<1x576xf32> -> vector<1x576xf32>
    %152 = arith.addf %31, %151 : vector<1x576xf32>
    %153 = vector.extract_strided_slice %152 {offsets = [0, 0], sizes = [1, 144], strides = [1, 1]} : vector<1x576xf32> to vector<1x144xf32>
    %154 = arith.negf %153 : vector<1x144xf32>
    %155 = math.exp %154 : vector<1x144xf32>
    %cst_28 = arith.constant 1.000000e+00 : f32
    %156 = vector.broadcast %cst_28 : f32 to vector<1x144xf32>
    %157 = arith.addf %156, %155 : vector<1x144xf32>
    %158 = arith.divf %156, %157 : vector<1x144xf32>
    %159 = vector.extract_strided_slice %152 {offsets = [0, 144], sizes = [1, 144], strides = [1, 1]} : vector<1x576xf32> to vector<1x144xf32>
    %160 = arith.negf %159 : vector<1x144xf32>
    %161 = math.exp %160 : vector<1x144xf32>
    %cst_29 = arith.constant 1.000000e+00 : f32
    %162 = vector.broadcast %cst_29 : f32 to vector<1x144xf32>
    %163 = arith.addf %162, %161 : vector<1x144xf32>
    %164 = arith.divf %162, %163 : vector<1x144xf32>
    %165 = vector.extract_strided_slice %152 {offsets = [0, 288], sizes = [1, 144], strides = [1, 1]} : vector<1x576xf32> to vector<1x144xf32>
    %166 = math.tanh %165 : vector<1x144xf32>
    %167 = vector.extract_strided_slice %152 {offsets = [0, 432], sizes = [1, 144], strides = [1, 1]} : vector<1x576xf32> to vector<1x144xf32>
    %168 = arith.negf %167 : vector<1x144xf32>
    %169 = math.exp %168 : vector<1x144xf32>
    %cst_30 = arith.constant 1.000000e+00 : f32
    %170 = vector.broadcast %cst_30 : f32 to vector<1x144xf32>
    %171 = arith.addf %170, %169 : vector<1x144xf32>
    %172 = arith.divf %170, %171 : vector<1x144xf32>
    %173 = arith.mulf %164, %148 : vector<1x144xf32>
    %174 = arith.mulf %158, %166 : vector<1x144xf32>
    %175 = arith.addf %173, %174 : vector<1x144xf32>
    %176 = math.tanh %175 : vector<1x144xf32>
    %177 = arith.mulf %172, %176 : vector<1x144xf32>
    %cst_31 = arith.constant dense<0.000000e+00> : vector<1x576xf32>
    %178 = tpu.matmul %177, %6, %cst_31 {dimension_numbers = #tpu.dot_dimension_numbers<[1], [0], [0], [1], [0, 0, 1, 1], [], []>} : vector<1x144xf32>, vector<144x576xf32>, vector<1x576xf32> -> vector<1x576xf32>
    %179 = arith.addf %34, %178 : vector<1x576xf32>
    %180 = vector.extract_strided_slice %179 {offsets = [0, 0], sizes = [1, 144], strides = [1, 1]} : vector<1x576xf32> to vector<1x144xf32>
    %181 = arith.negf %180 : vector<1x144xf32>
    %182 = math.exp %181 : vector<1x144xf32>
    %cst_32 = arith.constant 1.000000e+00 : f32
    %183 = vector.broadcast %cst_32 : f32 to vector<1x144xf32>
    %184 = arith.addf %183, %182 : vector<1x144xf32>
    %185 = arith.divf %183, %184 : vector<1x144xf32>
    %186 = vector.extract_strided_slice %179 {offsets = [0, 144], sizes = [1, 144], strides = [1, 1]} : vector<1x576xf32> to vector<1x144xf32>
    %187 = arith.negf %186 : vector<1x144xf32>
    %188 = math.exp %187 : vector<1x144xf32>
    %cst_33 = arith.constant 1.000000e+00 : f32
    %189 = vector.broadcast %cst_33 : f32 to vector<1x144xf32>
    %190 = arith.addf %189, %188 : vector<1x144xf32>
    %191 = arith.divf %189, %190 : vector<1x144xf32>
    %192 = vector.extract_strided_slice %179 {offsets = [0, 288], sizes = [1, 144], strides = [1, 1]} : vector<1x576xf32> to vector<1x144xf32>
    %193 = math.tanh %192 : vector<1x144xf32>
    %194 = vector.extract_strided_slice %179 {offsets = [0, 432], sizes = [1, 144], strides = [1, 1]} : vector<1x576xf32> to vector<1x144xf32>
    %195 = arith.negf %194 : vector<1x144xf32>
    %196 = math.exp %195 : vector<1x144xf32>
    %cst_34 = arith.constant 1.000000e+00 : f32
    %197 = vector.broadcast %cst_34 : f32 to vector<1x144xf32>
    %198 = arith.addf %197, %196 : vector<1x144xf32>
    %199 = arith.divf %197, %198 : vector<1x144xf32>
    %200 = arith.mulf %191, %175 : vector<1x144xf32>
    %201 = arith.mulf %185, %193 : vector<1x144xf32>
    %202 = arith.addf %200, %201 : vector<1x144xf32>
    %203 = math.tanh %202 : vector<1x144xf32>
    %204 = arith.mulf %199, %203 : vector<1x144xf32>
    %cst_35 = arith.constant dense<0.000000e+00> : vector<1x576xf32>
    %205 = tpu.matmul %204, %6, %cst_35 {dimension_numbers = #tpu.dot_dimension_numbers<[1], [0], [0], [1], [0, 0, 1, 1], [], []>} : vector<1x144xf32>, vector<144x576xf32>, vector<1x576xf32> -> vector<1x576xf32>
    %206 = arith.addf %37, %205 : vector<1x576xf32>
    %207 = vector.extract_strided_slice %206 {offsets = [0, 0], sizes = [1, 144], strides = [1, 1]} : vector<1x576xf32> to vector<1x144xf32>
    %208 = arith.negf %207 : vector<1x144xf32>
    %209 = math.exp %208 : vector<1x144xf32>
    %cst_36 = arith.constant 1.000000e+00 : f32
    %210 = vector.broadcast %cst_36 : f32 to vector<1x144xf32>
    %211 = arith.addf %210, %209 : vector<1x144xf32>
    %212 = arith.divf %210, %211 : vector<1x144xf32>
    %213 = vector.extract_strided_slice %206 {offsets = [0, 144], sizes = [1, 144], strides = [1, 1]} : vector<1x576xf32> to vector<1x144xf32>
    %214 = arith.negf %213 : vector<1x144xf32>
    %215 = math.exp %214 : vector<1x144xf32>
    %cst_37 = arith.constant 1.000000e+00 : f32
    %216 = vector.broadcast %cst_37 : f32 to vector<1x144xf32>
    %217 = arith.addf %216, %215 : vector<1x144xf32>
    %218 = arith.divf %216, %217 : vector<1x144xf32>
    %219 = vector.extract_strided_slice %206 {offsets = [0, 288], sizes = [1, 144], strides = [1, 1]} : vector<1x576xf32> to vector<1x144xf32>
    %220 = math.tanh %219 : vector<1x144xf32>
    %221 = vector.extract_strided_slice %206 {offsets = [0, 432], sizes = [1, 144], strides = [1, 1]} : vector<1x576xf32> to vector<1x144xf32>
    %222 = arith.negf %221 : vector<1x144xf32>
    %223 = math.exp %222 : vector<1x144xf32>
    %cst_38 = arith.constant 1.000000e+00 : f32
    %224 = vector.broadcast %cst_38 : f32 to vector<1x144xf32>
    %225 = arith.addf %224, %223 : vector<1x144xf32>
    %226 = arith.divf %224, %225 : vector<1x144xf32>
    %227 = arith.mulf %218, %202 : vector<1x144xf32>
    %228 = arith.mulf %212, %220 : vector<1x144xf32>
    %229 = arith.addf %227, %228 : vector<1x144xf32>
    %230 = math.tanh %229 : vector<1x144xf32>
    %231 = arith.mulf %226, %230 : vector<1x144xf32>
    %cst_39 = arith.constant dense<0.000000e+00> : vector<1x576xf32>
    %232 = tpu.matmul %231, %6, %cst_39 {dimension_numbers = #tpu.dot_dimension_numbers<[1], [0], [0], [1], [0, 0, 1, 1], [], []>} : vector<1x144xf32>, vector<144x576xf32>, vector<1x576xf32> -> vector<1x576xf32>
    %233 = arith.addf %40, %232 : vector<1x576xf32>
    %234 = vector.extract_strided_slice %233 {offsets = [0, 0], sizes = [1, 144], strides = [1, 1]} : vector<1x576xf32> to vector<1x144xf32>
    %235 = arith.negf %234 : vector<1x144xf32>
    %236 = math.exp %235 : vector<1x144xf32>
    %cst_40 = arith.constant 1.000000e+00 : f32
    %237 = vector.broadcast %cst_40 : f32 to vector<1x144xf32>
    %238 = arith.addf %237, %236 : vector<1x144xf32>
    %239 = arith.divf %237, %238 : vector<1x144xf32>
    %240 = vector.extract_strided_slice %233 {offsets = [0, 144], sizes = [1, 144], strides = [1, 1]} : vector<1x576xf32> to vector<1x144xf32>
    %241 = arith.negf %240 : vector<1x144xf32>
    %242 = math.exp %241 : vector<1x144xf32>
    %cst_41 = arith.constant 1.000000e+00 : f32
    %243 = vector.broadcast %cst_41 : f32 to vector<1x144xf32>
    %244 = arith.addf %243, %242 : vector<1x144xf32>
    %245 = arith.divf %243, %244 : vector<1x144xf32>
    %246 = vector.extract_strided_slice %233 {offsets = [0, 288], sizes = [1, 144], strides = [1, 1]} : vector<1x576xf32> to vector<1x144xf32>
    %247 = math.tanh %246 : vector<1x144xf32>
    %248 = vector.extract_strided_slice %233 {offsets = [0, 432], sizes = [1, 144], strides = [1, 1]} : vector<1x576xf32> to vector<1x144xf32>
    %249 = arith.negf %248 : vector<1x144xf32>
    %250 = math.exp %249 : vector<1x144xf32>
    %cst_42 = arith.constant 1.000000e+00 : f32
    %251 = vector.broadcast %cst_42 : f32 to vector<1x144xf32>
    %252 = arith.addf %251, %250 : vector<1x144xf32>
    %253 = arith.divf %251, %252 : vector<1x144xf32>
    %254 = arith.mulf %245, %229 : vector<1x144xf32>
    %255 = arith.mulf %239, %247 : vector<1x144xf32>
    %256 = arith.addf %254, %255 : vector<1x144xf32>
    %257 = math.tanh %256 : vector<1x144xf32>
    %258 = arith.mulf %253, %257 : vector<1x144xf32>
    %259 = tpu.iota {dimensions = array<i32: 0>} : vector<8x1xi32>
    %cst_43 = arith.constant 0.000000e+00 : f32
    %260 = vector.broadcast %cst_43 : f32 to vector<8x144xf32>
    %261 = arith.select %16, %69, %258 : vector<1x144xi1>, vector<1x144xf32>
    %c0_i32 = arith.constant 0 : i32
    %262 = vector.broadcast %c0_i32 : i32 to vector<8x1xi32>
    %263 = arith.cmpi eq, %259, %262 : vector<8x1xi32>
    %cst_44 = arith.constant 0.000000e+00 : f32
    %264 = vector.shape_cast %263 : vector<8x1xi1> to vector<8x1xi1>
    %265 = vector.broadcast %264 : vector<8x1xi1> to vector<8x144xi1>
    %266 = vector.shape_cast %261 : vector<1x144xf32> to vector<1x144xf32>
    %267 = vector.broadcast %266 : vector<1x144xf32> to vector<8x144xf32>
    %268 = vector.broadcast %cst_44 : f32 to vector<8x144xf32>
    %269 = arith.select %265, %267, %268 : vector<8x144xi1>, vector<8x144xf32>
    %270 = arith.addf %260, %269 : vector<8x144xf32>
    %271 = arith.select %16, %96, %231 : vector<1x144xi1>, vector<1x144xf32>
    %c1_i32 = arith.constant 1 : i32
    %272 = vector.broadcast %c1_i32 : i32 to vector<8x1xi32>
    %273 = arith.cmpi eq, %259, %272 : vector<8x1xi32>
    %cst_45 = arith.constant 0.000000e+00 : f32
    %274 = vector.shape_cast %273 : vector<8x1xi1> to vector<8x1xi1>
    %275 = vector.broadcast %274 : vector<8x1xi1> to vector<8x144xi1>
    %276 = vector.shape_cast %271 : vector<1x144xf32> to vector<1x144xf32>
    %277 = vector.broadcast %276 : vector<1x144xf32> to vector<8x144xf32>
    %278 = vector.broadcast %cst_45 : f32 to vector<8x144xf32>
    %279 = arith.select %275, %277, %278 : vector<8x144xi1>, vector<8x144xf32>
    %280 = arith.addf %270, %279 : vector<8x144xf32>
    %281 = arith.select %16, %123, %204 : vector<1x144xi1>, vector<1x144xf32>
    %c2_i32 = arith.constant 2 : i32
    %282 = vector.broadcast %c2_i32 : i32 to vector<8x1xi32>
    %283 = arith.cmpi eq, %259, %282 : vector<8x1xi32>
    %cst_46 = arith.constant 0.000000e+00 : f32
    %284 = vector.shape_cast %283 : vector<8x1xi1> to vector<8x1xi1>
    %285 = vector.broadcast %284 : vector<8x1xi1> to vector<8x144xi1>
    %286 = vector.shape_cast %281 : vector<1x144xf32> to vector<1x144xf32>
    %287 = vector.broadcast %286 : vector<1x144xf32> to vector<8x144xf32>
    %288 = vector.broadcast %cst_46 : f32 to vector<8x144xf32>
    %289 = arith.select %285, %287, %288 : vector<8x144xi1>, vector<8x144xf32>
    %290 = arith.addf %280, %289 : vector<8x144xf32>
    %291 = arith.select %16, %150, %177 : vector<1x144xi1>, vector<1x144xf32>
    %c3_i32 = arith.constant 3 : i32
    %292 = vector.broadcast %c3_i32 : i32 to vector<8x1xi32>
    %293 = arith.cmpi eq, %259, %292 : vector<8x1xi32>
    %cst_47 = arith.constant 0.000000e+00 : f32
    %294 = vector.shape_cast %293 : vector<8x1xi1> to vector<8x1xi1>
    %295 = vector.broadcast %294 : vector<8x1xi1> to vector<8x144xi1>
    %296 = vector.shape_cast %291 : vector<1x144xf32> to vector<1x144xf32>
    %297 = vector.broadcast %296 : vector<1x144xf32> to vector<8x144xf32>
    %298 = vector.broadcast %cst_47 : f32 to vector<8x144xf32>
    %299 = arith.select %295, %297, %298 : vector<8x144xi1>, vector<8x144xf32>
    %300 = arith.addf %290, %299 : vector<8x144xf32>
    %301 = arith.select %16, %177, %150 : vector<1x144xi1>, vector<1x144xf32>
    %c4_i32 = arith.constant 4 : i32
    %302 = vector.broadcast %c4_i32 : i32 to vector<8x1xi32>
    %303 = arith.cmpi eq, %259, %302 : vector<8x1xi32>
    %cst_48 = arith.constant 0.000000e+00 : f32
    %304 = vector.shape_cast %303 : vector<8x1xi1> to vector<8x1xi1>
    %305 = vector.broadcast %304 : vector<8x1xi1> to vector<8x144xi1>
    %306 = vector.shape_cast %301 : vector<1x144xf32> to vector<1x144xf32>
    %307 = vector.broadcast %306 : vector<1x144xf32> to vector<8x144xf32>
    %308 = vector.broadcast %cst_48 : f32 to vector<8x144xf32>
    %309 = arith.select %305, %307, %308 : vector<8x144xi1>, vector<8x144xf32>
    %310 = arith.addf %300, %309 : vector<8x144xf32>
    %311 = arith.select %16, %204, %123 : vector<1x144xi1>, vector<1x144xf32>
    %c5_i32 = arith.constant 5 : i32
    %312 = vector.broadcast %c5_i32 : i32 to vector<8x1xi32>
    %313 = arith.cmpi eq, %259, %312 : vector<8x1xi32>
    %cst_49 = arith.constant 0.000000e+00 : f32
    %314 = vector.shape_cast %313 : vector<8x1xi1> to vector<8x1xi1>
    %315 = vector.broadcast %314 : vector<8x1xi1> to vector<8x144xi1>
    %316 = vector.shape_cast %311 : vector<1x144xf32> to vector<1x144xf32>
    %317 = vector.broadcast %316 : vector<1x144xf32> to vector<8x144xf32>
    %318 = vector.broadcast %cst_49 : f32 to vector<8x144xf32>
    %319 = arith.select %315, %317, %318 : vector<8x144xi1>, vector<8x144xf32>
    %320 = arith.addf %310, %319 : vector<8x144xf32>
    %321 = arith.select %16, %231, %96 : vector<1x144xi1>, vector<1x144xf32>
    %c6_i32 = arith.constant 6 : i32
    %322 = vector.broadcast %c6_i32 : i32 to vector<8x1xi32>
    %323 = arith.cmpi eq, %259, %322 : vector<8x1xi32>
    %cst_50 = arith.constant 0.000000e+00 : f32
    %324 = vector.shape_cast %323 : vector<8x1xi1> to vector<8x1xi1>
    %325 = vector.broadcast %324 : vector<8x1xi1> to vector<8x144xi1>
    %326 = vector.shape_cast %321 : vector<1x144xf32> to vector<1x144xf32>
    %327 = vector.broadcast %326 : vector<1x144xf32> to vector<8x144xf32>
    %328 = vector.broadcast %cst_50 : f32 to vector<8x144xf32>
    %329 = arith.select %325, %327, %328 : vector<8x144xi1>, vector<8x144xf32>
    %330 = arith.addf %320, %329 : vector<8x144xf32>
    %331 = arith.select %16, %258, %69 : vector<1x144xi1>, vector<1x144xf32>
    %c7_i32 = arith.constant 7 : i32
    %332 = vector.broadcast %c7_i32 : i32 to vector<8x1xi32>
    %333 = arith.cmpi eq, %259, %332 : vector<8x1xi32>
    %cst_51 = arith.constant 0.000000e+00 : f32
    %334 = vector.shape_cast %333 : vector<8x1xi1> to vector<8x1xi1>
    %335 = vector.broadcast %334 : vector<8x1xi1> to vector<8x144xi1>
    %336 = vector.shape_cast %331 : vector<1x144xf32> to vector<1x144xf32>
    %337 = vector.broadcast %336 : vector<1x144xf32> to vector<8x144xf32>
    %338 = vector.broadcast %cst_51 : f32 to vector<8x144xf32>
    %339 = arith.select %335, %337, %338 : vector<8x144xi1>, vector<8x144xf32>
    %340 = arith.addf %330, %339 : vector<8x144xf32>
    %341 = vector.extract_strided_slice %340 {offsets = [0, 0], sizes = [8, 143], strides = [1, 1]} : vector<8x144xf32> to vector<8x143xf32>
    %342 = vector.extract_strided_slice %340 {offsets = [0, 1], sizes = [8, 143], strides = [1, 1]} : vector<8x144xf32> to vector<8x143xf32>
    %c0_52 = arith.constant 0 : index
    %c0_53 = arith.constant 0 : index
    %343 = memref.load %arg4[%c0_52, %c0_53] : memref<3x2xf32, #tpu.memory_space<smem>>
    %344 = vector.broadcast %343 : f32 to vector<8x143xf32>
    %345 = arith.mulf %344, %341 : vector<8x143xf32>
    %c0_54 = arith.constant 0 : index
    %c1 = arith.constant 1 : index
    %346 = memref.load %arg4[%c0_54, %c1] : memref<3x2xf32, #tpu.memory_space<smem>>
    %347 = vector.broadcast %346 : f32 to vector<8x143xf32>
    %348 = arith.mulf %347, %342 : vector<8x143xf32>
    %349 = arith.addf %345, %348 : vector<8x143xf32>
    %c0_55 = arith.constant 0 : index
    %350 = memref.load %arg5[%c0_55] : memref<3xf32, #tpu.memory_space<smem>>
    %351 = vector.broadcast %350 : f32 to vector<8x143xf32>
    %352 = arith.addf %349, %351 : vector<8x143xf32>
    %cst_56 = arith.constant 0.000000e+00 : f32
    %353 = vector.broadcast %cst_56 : f32 to vector<8x143xf32>
    %354 = arith.maximumf %352, %353 : vector<8x143xf32>
    %c1_57 = arith.constant 1 : index
    %c0_58 = arith.constant 0 : index
    %355 = memref.load %arg4[%c1_57, %c0_58] : memref<3x2xf32, #tpu.memory_space<smem>>
    %356 = vector.broadcast %355 : f32 to vector<8x143xf32>
    %357 = arith.mulf %356, %341 : vector<8x143xf32>
    %c1_59 = arith.constant 1 : index
    %c1_60 = arith.constant 1 : index
    %358 = memref.load %arg4[%c1_59, %c1_60] : memref<3x2xf32, #tpu.memory_space<smem>>
    %359 = vector.broadcast %358 : f32 to vector<8x143xf32>
    %360 = arith.mulf %359, %342 : vector<8x143xf32>
    %361 = arith.addf %357, %360 : vector<8x143xf32>
    %c1_61 = arith.constant 1 : index
    %362 = memref.load %arg5[%c1_61] : memref<3xf32, #tpu.memory_space<smem>>
    %363 = vector.broadcast %362 : f32 to vector<8x143xf32>
    %364 = arith.addf %361, %363 : vector<8x143xf32>
    %cst_62 = arith.constant 0.000000e+00 : f32
    %365 = vector.broadcast %cst_62 : f32 to vector<8x143xf32>
    %366 = arith.maximumf %364, %365 : vector<8x143xf32>
    %c2 = arith.constant 2 : index
    %c0_63 = arith.constant 0 : index
    %367 = memref.load %arg4[%c2, %c0_63] : memref<3x2xf32, #tpu.memory_space<smem>>
    %368 = vector.broadcast %367 : f32 to vector<8x143xf32>
    %369 = arith.mulf %368, %341 : vector<8x143xf32>
    %c2_64 = arith.constant 2 : index
    %c1_65 = arith.constant 1 : index
    %370 = memref.load %arg4[%c2_64, %c1_65] : memref<3x2xf32, #tpu.memory_space<smem>>
    %371 = vector.broadcast %370 : f32 to vector<8x143xf32>
    %372 = arith.mulf %371, %342 : vector<8x143xf32>
    %373 = arith.addf %369, %372 : vector<8x143xf32>
    %c2_66 = arith.constant 2 : index
    %374 = memref.load %arg5[%c2_66] : memref<3xf32, #tpu.memory_space<smem>>
    %375 = vector.broadcast %374 : f32 to vector<8x143xf32>
    %376 = arith.addf %373, %375 : vector<8x143xf32>
    %cst_67 = arith.constant 0.000000e+00 : f32
    %377 = vector.broadcast %cst_67 : f32 to vector<8x143xf32>
    %378 = arith.maximumf %376, %377 : vector<8x143xf32>
    %379 = tpu.concatenate %354, %366, %378 in 1 : vector<8x143xf32>, vector<8x143xf32>, vector<8x143xf32> -> vector<8x429xf32>
    %380 = vector.extract_strided_slice %379 {offsets = [0, 0], sizes = [8, 428], strides = [1, 1]} : vector<8x429xf32> to vector<8x428xf32>
    %381 = vector.extract_strided_slice %379 {offsets = [0, 1], sizes = [8, 428], strides = [1, 1]} : vector<8x429xf32> to vector<8x428xf32>
    %382 = arith.maximumf %380, %381 : vector<8x428xf32>
    %383 = tpu.iota {dimensions = array<i32: 0>} : vector<428x71xi32>
    %384 = tpu.iota {dimensions = array<i32: 1>} : vector<428x71xi32>
    %c2_i32_68 = arith.constant 2 : i32
    %385 = vector.broadcast %c2_i32_68 : i32 to vector<428x71xi32>
    %386 = arith.muli %385, %384 : vector<428x71xi32>
    %c0_i32_69 = arith.constant 0 : i32
    %387 = vector.broadcast %c0_i32_69 : i32 to vector<428x71xi32>
    %388 = arith.addi %387, %386 : vector<428x71xi32>
    %389 = arith.cmpi eq, %383, %388 : vector<428x71xi32>
    %390 = arith.extui %389 : vector<428x71xi1> to vector<428x71xi32>
    %391 = arith.sitofp %390 : vector<428x71xi32> to vector<428x71xf32>
    %c2_i32_70 = arith.constant 2 : i32
    %392 = vector.broadcast %c2_i32_70 : i32 to vector<428x71xi32>
    %393 = arith.muli %392, %384 : vector<428x71xi32>
    %c143_i32 = arith.constant 143 : i32
    %394 = vector.broadcast %c143_i32 : i32 to vector<428x71xi32>
    %395 = arith.addi %394, %393 : vector<428x71xi32>
    %396 = arith.cmpi eq, %383, %395 : vector<428x71xi32>
    %397 = arith.extui %396 : vector<428x71xi1> to vector<428x71xi32>
    %398 = arith.sitofp %397 : vector<428x71xi32> to vector<428x71xf32>
    %c2_i32_71 = arith.constant 2 : i32
    %399 = vector.broadcast %c2_i32_71 : i32 to vector<428x71xi32>
    %400 = arith.muli %399, %384 : vector<428x71xi32>
    %c286_i32 = arith.constant 286 : i32
    %401 = vector.broadcast %c286_i32 : i32 to vector<428x71xi32>
    %402 = arith.addi %401, %400 : vector<428x71xi32>
    %403 = arith.cmpi eq, %383, %402 : vector<428x71xi32>
    %404 = arith.extui %403 : vector<428x71xi1> to vector<428x71xi32>
    %405 = arith.sitofp %404 : vector<428x71xi32> to vector<428x71xf32>
    %406 = tpu.concatenate %391, %398, %405 in 1 : vector<428x71xf32>, vector<428x71xf32>, vector<428x71xf32> -> vector<428x213xf32>
    %cst_72 = arith.constant dense<0.000000e+00> : vector<8x213xf32>
    %407 = tpu.matmul %382, %406, %cst_72 {dimension_numbers = #tpu.dot_dimension_numbers<[1], [0], [0], [1], [0, 0, 1, 1], [], []>} : vector<8x428xf32>, vector<428x213xf32>, vector<8x213xf32> -> vector<8x213xf32>
    %408 = vector.extract_strided_slice %407 {offsets = [0, 0], sizes = [8, 71], strides = [1, 1]} : vector<8x213xf32> to vector<8x71xf32>
    %409 = vector.extract_strided_slice %407 {offsets = [0, 71], sizes = [8, 71], strides = [1, 1]} : vector<8x213xf32> to vector<8x71xf32>
    %410 = vector.extract_strided_slice %407 {offsets = [0, 142], sizes = [8, 71], strides = [1, 1]} : vector<8x213xf32> to vector<8x71xf32>
    %c0_73 = arith.constant 0 : index
    %c0_74 = arith.constant 0 : index
    %411 = memref.load %arg6[%c0_73, %c0_74] : memref<2x6xf32, #tpu.memory_space<smem>>
    %412 = vector.extract_strided_slice %408 {offsets = [0, 0], sizes = [8, 70], strides = [1, 1]} : vector<8x71xf32> to vector<8x70xf32>
    %413 = vector.broadcast %411 : f32 to vector<8x70xf32>
    %414 = arith.mulf %413, %412 : vector<8x70xf32>
    %c0_75 = arith.constant 0 : index
    %c1_76 = arith.constant 1 : index
    %415 = memref.load %arg6[%c0_75, %c1_76] : memref<2x6xf32, #tpu.memory_space<smem>>
    %416 = vector.extract_strided_slice %408 {offsets = [0, 1], sizes = [8, 70], strides = [1, 1]} : vector<8x71xf32> to vector<8x70xf32>
    %417 = vector.broadcast %415 : f32 to vector<8x70xf32>
    %418 = arith.mulf %417, %416 : vector<8x70xf32>
    %419 = arith.addf %414, %418 : vector<8x70xf32>
    %c0_77 = arith.constant 0 : index
    %c2_78 = arith.constant 2 : index
    %420 = memref.load %arg6[%c0_77, %c2_78] : memref<2x6xf32, #tpu.memory_space<smem>>
    %421 = vector.extract_strided_slice %409 {offsets = [0, 0], sizes = [8, 70], strides = [1, 1]} : vector<8x71xf32> to vector<8x70xf32>
    %422 = vector.broadcast %420 : f32 to vector<8x70xf32>
    %423 = arith.mulf %422, %421 : vector<8x70xf32>
    %424 = arith.addf %419, %423 : vector<8x70xf32>
    %c0_79 = arith.constant 0 : index
    %c3 = arith.constant 3 : index
    %425 = memref.load %arg6[%c0_79, %c3] : memref<2x6xf32, #tpu.memory_space<smem>>
    %426 = vector.extract_strided_slice %409 {offsets = [0, 1], sizes = [8, 70], strides = [1, 1]} : vector<8x71xf32> to vector<8x70xf32>
    %427 = vector.broadcast %425 : f32 to vector<8x70xf32>
    %428 = arith.mulf %427, %426 : vector<8x70xf32>
    %429 = arith.addf %424, %428 : vector<8x70xf32>
    %c0_80 = arith.constant 0 : index
    %c4 = arith.constant 4 : index
    %430 = memref.load %arg6[%c0_80, %c4] : memref<2x6xf32, #tpu.memory_space<smem>>
    %431 = vector.extract_strided_slice %410 {offsets = [0, 0], sizes = [8, 70], strides = [1, 1]} : vector<8x71xf32> to vector<8x70xf32>
    %432 = vector.broadcast %430 : f32 to vector<8x70xf32>
    %433 = arith.mulf %432, %431 : vector<8x70xf32>
    %434 = arith.addf %429, %433 : vector<8x70xf32>
    %c0_81 = arith.constant 0 : index
    %c5 = arith.constant 5 : index
    %435 = memref.load %arg6[%c0_81, %c5] : memref<2x6xf32, #tpu.memory_space<smem>>
    %436 = vector.extract_strided_slice %410 {offsets = [0, 1], sizes = [8, 70], strides = [1, 1]} : vector<8x71xf32> to vector<8x70xf32>
    %437 = vector.broadcast %435 : f32 to vector<8x70xf32>
    %438 = arith.mulf %437, %436 : vector<8x70xf32>
    %439 = arith.addf %434, %438 : vector<8x70xf32>
    %c0_82 = arith.constant 0 : index
    %440 = memref.load %arg7[%c0_82] : memref<2xf32, #tpu.memory_space<smem>>
    %441 = vector.broadcast %440 : f32 to vector<8x70xf32>
    %442 = arith.addf %439, %441 : vector<8x70xf32>
    %cst_83 = arith.constant 0.000000e+00 : f32
    %443 = vector.broadcast %cst_83 : f32 to vector<8x70xf32>
    %444 = arith.maximumf %442, %443 : vector<8x70xf32>
    %c1_84 = arith.constant 1 : index
    %c0_85 = arith.constant 0 : index
    %445 = memref.load %arg6[%c1_84, %c0_85] : memref<2x6xf32, #tpu.memory_space<smem>>
    %446 = vector.extract_strided_slice %408 {offsets = [0, 0], sizes = [8, 70], strides = [1, 1]} : vector<8x71xf32> to vector<8x70xf32>
    %447 = vector.broadcast %445 : f32 to vector<8x70xf32>
    %448 = arith.mulf %447, %446 : vector<8x70xf32>
    %c1_86 = arith.constant 1 : index
    %c1_87 = arith.constant 1 : index
    %449 = memref.load %arg6[%c1_86, %c1_87] : memref<2x6xf32, #tpu.memory_space<smem>>
    %450 = vector.extract_strided_slice %408 {offsets = [0, 1], sizes = [8, 70], strides = [1, 1]} : vector<8x71xf32> to vector<8x70xf32>
    %451 = vector.broadcast %449 : f32 to vector<8x70xf32>
    %452 = arith.mulf %451, %450 : vector<8x70xf32>
    %453 = arith.addf %448, %452 : vector<8x70xf32>
    %c1_88 = arith.constant 1 : index
    %c2_89 = arith.constant 2 : index
    %454 = memref.load %arg6[%c1_88, %c2_89] : memref<2x6xf32, #tpu.memory_space<smem>>
    %455 = vector.extract_strided_slice %409 {offsets = [0, 0], sizes = [8, 70], strides = [1, 1]} : vector<8x71xf32> to vector<8x70xf32>
    %456 = vector.broadcast %454 : f32 to vector<8x70xf32>
    %457 = arith.mulf %456, %455 : vector<8x70xf32>
    %458 = arith.addf %453, %457 : vector<8x70xf32>
    %c1_90 = arith.constant 1 : index
    %c3_91 = arith.constant 3 : index
    %459 = memref.load %arg6[%c1_90, %c3_91] : memref<2x6xf32, #tpu.memory_space<smem>>
    %460 = vector.extract_strided_slice %409 {offsets = [0, 1], sizes = [8, 70], strides = [1, 1]} : vector<8x71xf32> to vector<8x70xf32>
    %461 = vector.broadcast %459 : f32 to vector<8x70xf32>
    %462 = arith.mulf %461, %460 : vector<8x70xf32>
    %463 = arith.addf %458, %462 : vector<8x70xf32>
    %c1_92 = arith.constant 1 : index
    %c4_93 = arith.constant 4 : index
    %464 = memref.load %arg6[%c1_92, %c4_93] : memref<2x6xf32, #tpu.memory_space<smem>>
    %465 = vector.extract_strided_slice %410 {offsets = [0, 0], sizes = [8, 70], strides = [1, 1]} : vector<8x71xf32> to vector<8x70xf32>
    %466 = vector.broadcast %464 : f32 to vector<8x70xf32>
    %467 = arith.mulf %466, %465 : vector<8x70xf32>
    %468 = arith.addf %463, %467 : vector<8x70xf32>
    %c1_94 = arith.constant 1 : index
    %c5_95 = arith.constant 5 : index
    %469 = memref.load %arg6[%c1_94, %c5_95] : memref<2x6xf32, #tpu.memory_space<smem>>
    %470 = vector.extract_strided_slice %410 {offsets = [0, 1], sizes = [8, 70], strides = [1, 1]} : vector<8x71xf32> to vector<8x70xf32>
    %471 = vector.broadcast %469 : f32 to vector<8x70xf32>
    %472 = arith.mulf %471, %470 : vector<8x70xf32>
    %473 = arith.addf %468, %472 : vector<8x70xf32>
    %c1_96 = arith.constant 1 : index
    %474 = memref.load %arg7[%c1_96] : memref<2xf32, #tpu.memory_space<smem>>
    %475 = vector.broadcast %474 : f32 to vector<8x70xf32>
    %476 = arith.addf %473, %475 : vector<8x70xf32>
    %cst_97 = arith.constant 0.000000e+00 : f32
    %477 = vector.broadcast %cst_97 : f32 to vector<8x70xf32>
    %478 = arith.maximumf %476, %477 : vector<8x70xf32>
    %479 = tpu.concatenate %444, %478 in 1 : vector<8x70xf32>, vector<8x70xf32> -> vector<8x140xf32>
    %480 = vector.extract_strided_slice %479 {offsets = [0, 0], sizes = [8, 139], strides = [1, 1]} : vector<8x140xf32> to vector<8x139xf32>
    %481 = vector.extract_strided_slice %479 {offsets = [0, 1], sizes = [8, 139], strides = [1, 1]} : vector<8x140xf32> to vector<8x139xf32>
    %482 = arith.maximumf %480, %481 : vector<8x139xf32>
    %483 = tpu.iota {dimensions = array<i32: 0>} : vector<139x35xi32>
    %484 = tpu.iota {dimensions = array<i32: 1>} : vector<139x35xi32>
    %c2_i32_98 = arith.constant 2 : i32
    %485 = vector.broadcast %c2_i32_98 : i32 to vector<139x35xi32>
    %486 = arith.muli %485, %484 : vector<139x35xi32>
    %c0_i32_99 = arith.constant 0 : i32
    %487 = vector.broadcast %c0_i32_99 : i32 to vector<139x35xi32>
    %488 = arith.addi %487, %486 : vector<139x35xi32>
    %489 = arith.cmpi eq, %483, %488 : vector<139x35xi32>
    %490 = arith.extui %489 : vector<139x35xi1> to vector<139x35xi32>
    %491 = arith.sitofp %490 : vector<139x35xi32> to vector<139x35xf32>
    %c2_i32_100 = arith.constant 2 : i32
    %492 = vector.broadcast %c2_i32_100 : i32 to vector<139x35xi32>
    %493 = arith.muli %492, %484 : vector<139x35xi32>
    %c70_i32 = arith.constant 70 : i32
    %494 = vector.broadcast %c70_i32 : i32 to vector<139x35xi32>
    %495 = arith.addi %494, %493 : vector<139x35xi32>
    %496 = arith.cmpi eq, %483, %495 : vector<139x35xi32>
    %497 = arith.extui %496 : vector<139x35xi1> to vector<139x35xi32>
    %498 = arith.sitofp %497 : vector<139x35xi32> to vector<139x35xf32>
    %499 = tpu.concatenate %491, %498 in 1 : vector<139x35xf32>, vector<139x35xf32> -> vector<139x70xf32>
    %cst_101 = arith.constant dense<0.000000e+00> : vector<8x70xf32>
    %500 = tpu.matmul %482, %499, %cst_101 {dimension_numbers = #tpu.dot_dimension_numbers<[1], [0], [0], [1], [0, 0, 1, 1], [], []>} : vector<8x139xf32>, vector<139x70xf32>, vector<8x70xf32> -> vector<8x70xf32>
    %c0_102 = arith.constant 0 : index
    %c0_103 = arith.constant 0 : index
    %501 = vector.load %arg8[%c0_102, %c0_103] : memref<8x70xf32, #tpu.memory_space<vmem>>, vector<8x70xf32>
    tpu.vector_store %arg8[%c0_102, %c0_103], %500 {strides = array<i32>} : memref<8x70xf32, #tpu.memory_space<vmem>>, vector<8x70xf32>,
    return
  }
}

</mosaic_0001>

<bundles_post_ra>
// kernel: feature_extractor2_forward.1
= control target key start
LH: loop header
LB: loop body
LE: loop exit
PB: predicated region body
PF: predicated region fallthrough
CT: control target
= control target key end

     0   :  { %13 = vsyncpa [#allocation3], 0  ;;  %s9562_s0 = inlined_call_operand.vmem [shape: f32[8,144], index: 0, kind: input, shape index: {}]   ;;  %s9563_s1 = inlined_call_operand.hbm [shape: f32[144,576], index: 1, kind: input, shape index: {}]   ;;  %s9564_s2 = inlined_call_operand.hbm [shape: f32[144,576], index: 2, kind: input, shape index: {}]   ;;  %s9565_s3 = inlined_call_operand.vmem [shape: f32[1,576], index: 3, kind: input, shape index: {}]   ;;  %s9566_s4 = inlined_call_operand.vmem [shape: f32[3,2], index: 4, kind: input, shape index: {}]   ;;  %s9567_s5 = inlined_call_operand.vmem [shape: f32[3], index: 5, kind: input, shape index: {}]   ;;  %s9568_s6 = inlined_call_operand.vmem [shape: f32[2,6], index: 6, kind: input, shape index: {}]   ;;  %s9569_s7 = inlined_call_operand.vmem [shape: f32[2], index: 7, kind: input, shape index: {}]   ;;  %s9570_s8 = inlined_call_operand.hbm [shape: f32[8,70], index: 8, kind: output, shape index: {}]  }
   0x1   :  { %14 = vsyncpa [#allocation7], 0 }
   0x2   :  { %15 = vsyncpa [#allocation5], 0 }
   0x3   :  { %16 = vsyncpa [#allocation10], 0 }
   0x4   :  { %17 = vsyncpa [#allocation13], 0  ;;  %s63_s29 = sshll.u32 %s9567_s5, 4  ;;  %s64_s29 = int_to_ptr.vmem [resolvable:$true] %s63_s29 }
   0x5   :  { %18 = vsyncpa [#allocation4], 0  ;;  %s6899_s30 = scalar_lea.vmem %s64_s29, 16  ;;  %p6904_p1 = scmp.lt.s32.totalorder %s64_s29, %s64_s29 }
   0x6   :  { %p6900_p0 = scmp.ne.s32.totalorder %s64_s29, %s6899_s30  ;;  %p6905_p2 = scmp.lt.s32.totalorder %s6899_s30, %s6899_s30 }
   0x8   :  { %p6906_p3 = por %p6905_p2, %p6904_p1 }
   0xa   :  { %p6907_p4 = pnand %p6906_p3, %p6900_p0 }
   0xc   :  { %6910 = shalt.err (!%p6907_p4)
}
   0xd   :  { %s7025_s9 = smov [#allocation9]   ;;  %s7026_s10 = smov [#allocation2]  }
   0xe   :  { %66 = dma.vmem_to_smem %s64_s29, 16, %s7025_s9, [#allocation10]  }
   0xf   :  { %s26_s11 = sshll.u32 %s7026_s10, 4  ;;  %s6911_s14 = scalar_lea.hbm %s9563_s1, 11520  ;;  %s27_s11 = int_to_ptr.vmem [resolvable:$true] %s26_s11 }
  0x10   :  { %p6912_p5 = scmp.ne.s32.totalorder %s9563_s1, %s6911_s14  ;;  %p6915_p6 = scmp.lt.u32.totalorder %s6911_s14, %s9563_s1 }
  0x12   :  { %p6917_p7 = pnand %p6915_p6, %p6912_p5 }
  0x14   :  { %6920 = shalt.err (!%p6917_p7)
}
  0x15   :  { %s6921_s18 = scalar_lea.vmem %s27_s11, 11520  ;;  %p6926_p9 = scmp.lt.s32.totalorder %s27_s11, %s27_s11 }
  0x16   :  { %p6922_p8 = scmp.ne.s32.totalorder %s27_s11, %s6921_s18  ;;  %p6927_p10 = scmp.lt.s32.totalorder %s6921_s18, %s6921_s18 }
  0x18   :  { %p6928_p11 = por %p6927_p10, %p6926_p9 }
  0x1a   :  { %p6929_p12 = pnand %p6928_p11, %p6922_p8 }
  0x1c   :  { %6932 = shalt.err (!%p6929_p12)
}
  0x1d   :  { %s7027_s19 = smov 640   ;;  %s7028_s20 = smov 40  }
  0x1e   :  { %32 = dma.hbm_to_vmem [thread:$0]  %s9563_s1, 11520, %s27_s11, [#allocation3], %s7027_s19, %s7027_s19, %s7028_s20  }
  0x1f   :  { %s53_s25 = sshll.u32 %s9566_s4, 4  ;;  %s7029_s26 = smov [#allocation6]   ;;  %s54_s25 = int_to_ptr.vmem [resolvable:$true] %s53_s25 }
  0x20   :  { %s38_s27 = sshll.u32 %s7029_s26, 4  ;;  %s6933_s30 = scalar_lea.hbm %s9564_s2, 11520  ;;  %s39_s27 = int_to_ptr.vmem [resolvable:$true] %s38_s27 }
  0x21   :  { %p6934_p13 = scmp.ne.s32.totalorder %s9564_s2, %s6933_s30  ;;  %p6937_p0 = scmp.lt.u32.totalorder %s6933_s30, %s9564_s2 }
  0x23   :  { %p6939_p1 = pnand %p6937_p0, %p6934_p13 }
  0x25   :  { %6942 = shalt.err (!%p6939_p1)
}
  0x26   :  { %s6943_s1 = scalar_lea.vmem %s39_s27, 11520  ;;  %p6948_p3 = scmp.lt.s32.totalorder %s39_s27, %s39_s27 }
  0x27   :  { %p6944_p2 = scmp.ne.s32.totalorder %s39_s27, %s6943_s1  ;;  %p6949_p4 = scmp.lt.s32.totalorder %s6943_s1, %s6943_s1 }
  0x29   :  { %p6950_p5 = por %p6949_p4, %p6948_p3 }
  0x2b   :  { %p6951_p6 = pnand %p6950_p5, %p6944_p2 }
  0x2d   :  { %6954 = shalt.err (!%p6951_p6)
}
  0x2e   :  { %44 = dma.hbm_to_vmem [thread:$0]  %s9564_s2, 11520, %s39_s27, [#allocation7], %s7027_s19, %s7027_s19, %s7028_s20  }
  0x2f   :  { %s6955_s14 = scalar_lea.vmem %s54_s25, 64  ;;  %p6960_p8 = scmp.lt.s32.totalorder %s54_s25, %s54_s25 }
  0x30   :  { %p6956_p7 = scmp.ne.s32.totalorder %s54_s25, %s6955_s14  ;;  %p6961_p9 = scmp.lt.s32.totalorder %s6955_s14, %s6955_s14 }
  0x32   :  { %p6962_p10 = por %p6961_p9, %p6960_p8 }
  0x34   :  { %p6963_p11 = pnand %p6962_p10, %p6956_p7 }
  0x36   :  { %6966 = shalt.err (!%p6963_p11)
}
  0x37   :  { %s7030_s15 = smov [#allocation8]   ;;  %s73_s17 = sshll.u32 %s9568_s6, 4  ;;  %s74_s17 = int_to_ptr.vmem [resolvable:$true] %s73_s17 }
  0x38   :  { %56 = dma.vmem_to_smem %s54_s25, 64, %s7030_s15, [#allocation5]  }
  0x39   :  { %s83_s22 = sshll.u32 %s9569_s7, 4  ;;  %s6967_s23 = scalar_lea.vmem %s74_s17, 32  ;;  %s84_s22 = int_to_ptr.vmem [resolvable:$true] %s83_s22 }
  0x3a   :  { %p6968_p12 = scmp.ne.s32.totalorder %s74_s17, %s6967_s23  ;;  %p6972_p13 = scmp.lt.s32.totalorder %s74_s17, %s74_s17 }
  0x3b   :  { %p6973_p0 = scmp.lt.s32.totalorder %s6967_s23, %s6967_s23 }
  0x3d   :  { %p6974_p1 = por %p6973_p0, %p6972_p13 }
  0x3f   :  { %p6975_p2 = pnand %p6974_p1, %p6968_p12 }
  0x41   :  { %6978 = shalt.err (!%p6975_p2)
}
  0x42   :  { %s7031_s2 = smov [#allocation11]   ;;  %s6979_s19 = scalar_lea.vmem %s84_s22, 16 }
  0x43   :  { %76 = dma.vmem_to_smem %s74_s17, 32, %s7031_s2, [#allocation10]  }
  0x44   :  { %p6980_p3 = scmp.ne.s32.totalorder %s84_s22, %s6979_s19  ;;  %p6984_p4 = scmp.lt.s32.totalorder %s84_s22, %s84_s22 }
  0x45   :  { %p6985_p5 = scmp.lt.s32.totalorder %s6979_s19, %s6979_s19 }
  0x47   :  { %p6986_p6 = por %p6985_p5, %p6984_p4 }
  0x49   :  { %p6987_p7 = pnand %p6986_p6, %p6980_p3 }
  0x4b   :  { %6990 = shalt.err (!%p6987_p7)
}
  0x4c   :  { %s7032_s6 = smov [#allocation12]  }
  0x4d   :  { %86 = dma.vmem_to_smem %s84_s22, 16, %s7032_s6, [#allocation13]  }
  0x4e   :  { %7013 = dma.done.wait [#allocation3], 11520  }
  0x4f   :  { %7014 = vsyncadd [#allocation3], 4294955776 }
  0x50   :  { %7015 = dma.done.wait [#allocation7], 11520  }
  0x51   :  { %7016 = vsyncadd [#allocation7], 4294955776 }
  0x52   :  { %7017 = dma.done.wait [#allocation5], 64  }
  0x53   :  { %7018 = vsyncadd [#allocation5], 4294967232 }
  0x54   :  { %7019 = dma.done.wait [#allocation10], 48  }
  0x55   :  { %7020 = vsyncadd [#allocation10], 4294967248 }
  0x56   :  { %7021 = dma.done.wait [#allocation13], 16  }
  0x57   :  { %7022 = vsyncadd [#allocation13], 4294967280 }
  0x58   :  { %105 = sfence }
  0x59   :  { %v109_v0 = vld [vmem:[#allocation2 + $0x8] sm:$0xff]  ;;  %v114_v1 = vld [vmem:[#allocation2 + $0x30] sm:$0xff]  ;;  %v111_v2 = vld [vmem:[#allocation2 + $0x18] sm:$0xff]  ;;  %vm225_vm0 = vcmask 130048   ;;  %vm872_vm6 = vcmask 785408   ;;  %s7036_s27 = smov 16  }
  0x5a   :  { %v5292_v3 = vpack.c.bf16 %v114_v1, %v109_v0  ;;  %v116_v4 = vld [vmem:[#allocation2 + $0x40] sm:$0xff]  ;;  %v113_v6 = vld [vmem:[#allocation2 + $0x28] sm:$0xff]  ;;  %v110_v9 = vld [vmem:[#allocation2 + $0x10] sm:$0xff]  ;;  %s7037_s28 = smov 32   ;;  %s7038_s29 = smov 80   ;;  %vm897_vm7 = vcmask 261120  }
  0x5b   :  { %v108_v5 = vld [vmem:[#allocation2] sm:$0xff]  ;;  %v5328_v7 = vpack.c.bf16 %v116_v4, %v111_v2  ;;  %v115_v10 = vld [vmem:[#allocation2 + $0x38] sm:$0xff]  ;;  %v121_v14 = vld [vmem:[#allocation2 + $0x68] sm:$0xff]  ;;  %vm909_vm8 = vcmask 654336   ;;  %s8207_s30 = sld [smem:[#allocation8 + $0x81]]  ;;  %s7039_s12 = smov 127  }
  0x5c   :  { %v5294_v8 = vpack.c.bf16 %v113_v6, %v108_v5  ;;  %v119_v11 = vld [vmem:[#allocation2 + $0x58] sm:$0xff]  ;;  %5293 = vmatprep.subr.bf16.mxu0 %v5292_v3  ;;  %v5330_v12 = vpack.c.bf16 %v115_v10, %v110_v9  ;;  %v124_v13 = vld [vmem:[#allocation2 + $0x80] sm:$0xff]  ;;  %v126_v15 = vld [vmem:[#allocation2 + $0x90] sm:$0xff]  ;;  %s8225_s9 = sld [smem:[#allocation8 + $0x101]]  ;;  %s7040_s13 = smov 14  }
  0x5d   :  { %5329 = vmatprep.subr.bf16.mxu1 %v5328_v7  ;;  %v5296_v16 = vpack.c.bf16 %v124_v13, %v119_v11  ;;  %v5332_v17 = vpack.c.bf16 %v126_v15, %v121_v14  ;;  %v118_v18 = vld [vmem:[#allocation2 + $0x50] sm:$0xff]  ;;  %v123_v19 = vld [vmem:[#allocation2 + $0x78] sm:$0xff]  ;;  %v120_v20 = vld [vmem:[#allocation2 + $0x60] sm:$0xff]  ;;  %s8238_s10 = sld [smem:[#allocation8 + $0x1]]  ;;  %s7041_s1 = smov 71  }
  0x5e   :  { %5295 = vmatpush1.bf16.msra.mxu0 %v5294_v8  ;;  %5331 = vmatpush1.bf16.msra.mxu1 %v5330_v12  ;;  %v5298_v21 = vpack.c.bf16 %v123_v19, %v118_v18  ;;  %v125_v22 = vld [vmem:[#allocation2 + $0x88] sm:$0xff]  ;;  %v134_v24 = vld [vmem:[#allocation2 + $0xd0] sm:$0xff]  ;;  %v131_v27 = vld [vmem:[#allocation2 + $0xb8] sm:$0xff]  ;;  %s5089_s4 = sld [smem:[#allocation8 + $0x80]]  ;;  %s8328_s14 = sld [smem:[#allocation9 + $0x1]] }
  0x5f   :  { %v129_v23 = vld [vmem:[#allocation2 + $0xa8] sm:$0xff]  ;;  %5297 = vmatprep.subr.bf16.mxu0 %v5296_v16  ;;  %5333 = vmatprep.subr.bf16.mxu1 %v5332_v17  ;;  %v5334_v25 = vpack.c.bf16 %v125_v22, %v120_v20  ;;  %v136_v28 = vld [vmem:[#allocation2 + $0xe0] sm:$0xff]  ;;  %v130_v32 = vld [vmem:[#allocation2 + $0xb0] sm:$0xff]  ;;  %s8326_s11 = sld [smem:[#allocation8 + $0x100]]  ;;  %s8332_s5 = sld [smem:[#allocation9 + $0x2]] }
  0x60   :  { %v5300_v26 = vpack.c.bf16 %v134_v24, %v129_v23  ;;  %v128_v29 = vld [vmem:[#allocation2 + $0xa0] sm:$0xff]  ;;  %v5336_v30 = vpack.c.bf16 %v136_v28, %v131_v27  ;;  %v133_v31 = vld [vmem:[#allocation2 + $0xc8] sm:$0xff]  ;;  %v135_v33 = vld [vmem:[#allocation2 + $0xd8] sm:$0xff]  ;;  %s8330_s15 = sld [smem:[#allocation8]]  ;;  %s7042_s16 = smov 15  }
  0x61   :  { %v5302_v34 = vpack.c.bf16 %v133_v31, %v128_v29  ;;  %v139_v35 = vld [vmem:[#allocation2 + $0xf8] sm:$0xff]  ;;  %v144_v36 = vld [vmem:[#allocation2 + $0x120] sm:$0xff]  ;;  %v141_v37 = vld [vmem:[#allocation2 + $0x108] sm:$0xff]  ;;  %v5338_v38 = vpack.c.bf16 %v135_v33, %v130_v32  ;;  %s7043_s17 = smov 30   ;;  %s8741_s18 = sld [smem:[#allocation9]] }
  0x62   :  { %5299 = vmatpush1.bf16.msra.mxu0 %v5298_v21  ;;  %5335 = vmatpush1.bf16.msra.mxu1 %v5334_v25  ;;  %v5304_v39 = vpack.c.bf16 %v144_v36, %v139_v35  ;;  %v146_v40 = vld [vmem:[#allocation2 + $0x130] sm:$0xff]  ;;  %v143_v42 = vld [vmem:[#allocation2 + $0x118] sm:$0xff]  ;;  %v140_v44 = vld [vmem:[#allocation2 + $0x100] sm:$0xff]  ;;  %s5267_s21 = sld [smem:[#allocation11 + $0x82]]  ;;  %s5266_s22 = sld [smem:[#allocation11 + $0x81]] }
  0x63   :  { %5301 = vmatprep.subr.bf16.mxu0 %v5300_v26  ;;  %v138_v41 = vld [vmem:[#allocation2 + $0xf0] sm:$0xff]  ;;  %5337 = vmatprep.subr.bf16.mxu1 %v5336_v30  ;;  %v5340_v43 = vpack.c.bf16 %v146_v40, %v141_v37  ;;  %v145_v45 = vld [vmem:[#allocation2 + $0x128] sm:$0xff]  ;;  %v151_v48 = vld [vmem:[#allocation2 + $0x158] sm:$0xff]  ;;  %s5268_s23 = sld [smem:[#allocation11 + $0x83]]  ;;  %s5269_s2 = sld [smem:[#allocation11 + $0x84]] }
  0x64   :  { %v149_v46 = vld [vmem:[#allocation2 + $0x148] sm:$0xff]  ;;  %v154_v47 = vld [vmem:[#allocation2 + $0x170] sm:$0xff]  ;;  %v156_v49 = vld [vmem:[#allocation2 + $0x180] sm:$0xff]  ;;  %v5306_v50 = vpack.c.bf16 %v143_v42, %v138_v41  ;;  %v5342_v51 = vpack.c.bf16 %v145_v45, %v140_v44  ;;  %s5260_s19 = sld [smem:[#allocation11 + $0x1]]  ;;  %s5270_s6 = sld [smem:[#allocation11 + $0x85]] }
  0x65   :  { %v5308_v52 = vpack.c.bf16 %v154_v47, %v149_v46  ;;  %v148_v53 = vld [vmem:[#allocation2 + $0x140] sm:$0xff]  ;;  %v153_v54 = vld [vmem:[#allocation2 + $0x168] sm:$0xff]  ;;  %v150_v55 = vld [vmem:[#allocation2 + $0x150] sm:$0xff]  ;;  %v5344_v56 = vpack.c.bf16 %v156_v49, %v151_v48  ;;  %s7045_s7 = smov 57   ;;  %s5261_s20 = sld [smem:[#allocation11 + $0x2]] }
  0x66   :  { %5303 = vmatpush1.bf16.msra.mxu0 %v5302_v34  ;;  %5339 = vmatpush1.bf16.msra.mxu1 %v5338_v38  ;;  %v155_v57 = vld [vmem:[#allocation2 + $0x178] sm:$0xff]  ;;  %v164_v59 = vld [vmem:[#allocation2 + $0x1c0] sm:$0xff]  ;;  %v161_v60 = vld [vmem:[#allocation2 + $0x1a8] sm:$0xff]  ;;  %v5310_v62 = vpack.c.bf16 %v153_v54, %v148_v53  ;;  %s7046_s24 = smov 56   ;;  %s5262_s25 = sld [smem:[#allocation11 + $0x3]] }
  0x67   :  { %5305 = vmatprep.subr.bf16.mxu0 %v5304_v39  ;;  %5341 = vmatprep.subr.bf16.mxu1 %v5340_v43  ;;  %v159_v58 = vld [vmem:[#allocation2 + $0x198] sm:$0xff]  ;;  %v166_v61 = vld [vmem:[#allocation2 + $0x1d0] sm:$0xff]  ;;  %v5346_v63 = vpack.c.bf16 %v155_v57, %v150_v55  ;;  %v160_v3 = vld [vmem:[#allocation2 + $0x1a0] sm:$0xff]  ;;  %s5263_s26 = sld [smem:[#allocation11 + $0x4]] }
  0x68   :  { %v5312_v0 = vpack.c.bf16 %v164_v59, %v159_v58  ;;  %v158_v1 = vld [vmem:[#allocation2 + $0x190] sm:$0xff]  ;;  %v163_v2 = vld [vmem:[#allocation2 + $0x1b8] sm:$0xff]  ;;  %v5348_v4 = vpack.c.bf16 %v166_v61, %v161_v60  ;;  %v165_v5 = vld [vmem:[#allocation2 + $0x1c8] sm:$0xff] }
  0x69   :  { %v169_v6 = vld [vmem:[#allocation2 + $0x1e8] sm:$0xff]  ;;  %v174_v7 = vld [vmem:[#allocation2 + $0x210] sm:$0xff]  ;;  %v171_v8 = vld [vmem:[#allocation2 + $0x1f8] sm:$0xff]  ;;  %v5314_v10 = vpack.c.bf16 %v163_v2, %v158_v1  ;;  %v5350_v11 = vpack.c.bf16 %v165_v5, %v160_v3 }
  0x6a   :  { %5307 = vmatpush1.bf16.msra.mxu0 %v5306_v50  ;;  %5343 = vmatpush1.bf16.msra.mxu1 %v5342_v51  ;;  %v176_v9 = vld [vmem:[#allocation2 + $0x220] sm:$0xff]  ;;  %v5316_v12 = vpack.c.bf16 %v174_v7, %v169_v6  ;;  %v173_v14 = vld [vmem:[#allocation2 + $0x208] sm:$0xff]  ;;  %v170_v15 = vld [vmem:[#allocation2 + $0x1f0] sm:$0xff] }
  0x6b   :  { %5309 = vmatprep.subr.bf16.mxu0 %v5308_v52  ;;  %5345 = vmatprep.subr.bf16.mxu1 %v5344_v56  ;;  %v168_v13 = vld [vmem:[#allocation2 + $0x1e0] sm:$0xff]  ;;  %v5352_v16 = vpack.c.bf16 %v176_v9, %v171_v8  ;;  %v175_v17 = vld [vmem:[#allocation2 + $0x218] sm:$0xff]  ;;  %v181_v20 = vld [vmem:[#allocation2 + $0x248] sm:$0xff]  ;;  %v9573_v56 = vmov 0.0|0.0  }
  0x6c   :  { %v179_v18 = vld [vmem:[#allocation2 + $0x238] sm:$0xff]  ;;  %v184_v19 = vld [vmem:[#allocation2 + $0x260] sm:$0xff]  ;;  %v186_v21 = vld [vmem:[#allocation2 + $0x270] sm:$0xff]  ;;  %v5318_v22 = vpack.c.bf16 %v173_v14, %v168_v13  ;;  %v5354_v24 = vpack.c.bf16 %v175_v17, %v170_v15 }
  0x6d   :  { %v7136_v23 = vld [vmem:[%s9562_s0 + $0x8] sm:$0xff]  ;;  %v5320_v25 = vpack.c.bf16 %v184_v19, %v179_v18  ;;  %v178_v26 = vld [vmem:[#allocation2 + $0x230] sm:$0xff]  ;;  %v183_v27 = vld [vmem:[#allocation2 + $0x258] sm:$0xff]  ;;  %v5356_v29 = vpack.c.bf16 %v186_v21, %v181_v20 }
  0x6e   :  { %5311 = vmatpush1.bf16.msra.mxu0 %v5310_v62  ;;  %5347 = vmatpush1.bf16.msra.mxu1 %v5346_v63  ;;  %v180_v28 = vld [vmem:[#allocation2 + $0x240] sm:$0xff]  ;;  %v185_v30 = vld [vmem:[#allocation2 + $0x268] sm:$0xff]  ;;  %v194_v32 = vld [vmem:[#allocation2 + $0x2b0] sm:$0xff]  ;;  %v5322_v35 = vpack.c.bf16 %v183_v27, %v178_v26 }
  0x6f   :  { %5313 = vmatprep.subr.bf16.mxu0 %v5312_v0  ;;  %5349 = vmatprep.subr.bf16.mxu1 %v5348_v4  ;;  %v189_v31 = vld [vmem:[#allocation2 + $0x288] sm:$0xff]  ;;  %v191_v33 = vld [vmem:[#allocation2 + $0x298] sm:$0xff]  ;;  %v196_v34 = vld [vmem:[#allocation2 + $0x2c0] sm:$0xff]  ;;  %v5358_v36 = vpack.c.bf16 %v185_v30, %v180_v28 }
  0x70   :  { %5024 = vmatprep.mubr.msk.f32.mxu0 %vm225_vm0, %v7136_v23  ;;  %5025 = vmatprep.mubr.msk.f32.mxu1 %vm225_vm0, %v7136_v23  ;;  %v5324_v37 = vpack.c.bf16 %v194_v32, %v189_v31  ;;  %v188_v38 = vld [vmem:[#allocation2 + $0x280] sm:$0xff]  ;;  %v193_v39 = vld [vmem:[#allocation2 + $0x2a8] sm:$0xff]  ;;  %v5360_v40 = vpack.c.bf16 %v196_v34, %v191_v33  ;;  %v190_v41 = vld [vmem:[#allocation2 + $0x290] sm:$0xff] }
  0x71   :  { %v195_v42 = vld [vmem:[#allocation2 + $0x2b8] sm:$0xff]  ;;  %v447_v44 = vld [vmem:[#allocation6 + $0x30] sm:$0xff]  ;;  %v5326_v45 = vpack.c.bf16 %v193_v39, %v188_v38  ;;  %v117_v48 = vld [vmem:[#allocation2 + $0x48] sm:$0xff] }
  0x72   :  { %5315 = vmatpush1.bf16.msra.mxu0 %v5314_v10  ;;  %5351 = vmatpush1.bf16.msra.mxu1 %v5350_v11  ;;  %v442_v43 = vld [vmem:[#allocation6 + $0x8] sm:$0xff]  ;;  %v5362_v46 = vpack.c.bf16 %v195_v42, %v190_v41  ;;  %v112_v47 = vld [vmem:[#allocation2 + $0x20] sm:$0xff]  ;;  %v441_v50 = vld [vmem:[#allocation6] sm:$0xff]  ;;  %v9571_v10 = vmov 0.0  }
  0x73   :  { %5317 = vmatprep.subr.bf16.mxu0 %v5316_v12  ;;  %5353 = vmatprep.subr.bf16.mxu1 %v5352_v16  ;;  %v7142_v49 = vpack.c.bf16 %v447_v44, %v442_v43  ;;  %v446_v51 = vld [vmem:[#allocation6 + $0x28] sm:$0xff]  ;;  %v452_v52 = vld [vmem:[#allocation6 + $0x58] sm:$0xff]  ;;  %v457_v53 = vld [vmem:[#allocation6 + $0x80] sm:$0xff]  ;;  %v5365_v55 = vpack.c.bf16 %v117_v48, %v112_v47 }
  0x74   :  { %v7147_v54 = vld [vmem:[%s9562_s0] sm:$0xff]  ;;  %v7150_v57 = vpack.c.bf16 %v446_v51, %v441_v50  ;;  %v122_v58 = vld [vmem:[#allocation2 + $0x70] sm:$0xff]  ;;  %v127_v59 = vld [vmem:[#allocation2 + $0x98] sm:$0xff]  ;;  %v7153_v60 = vpack.c.bf16 %v457_v53, %v452_v52  ;;  %s7047_s0 = smov 114  }
  0x75   :  { %9692 = vst [vmem:[#allocation21_spill] sm:$0xff] %v7142_v49  ;;  %v451_v61 = vld [vmem:[#allocation6 + $0x50] sm:$0xff]  ;;  %v456_v62 = vld [vmem:[#allocation6 + $0x78] sm:$0xff]  ;;  %v462_v63 = vld [vmem:[#allocation6 + $0xa8] sm:$0xff]  ;;  %v5368_v1 = vpack.c.bf16 %v127_v59, %v122_v58 }
  0x76   :  { %5319 = vmatpush1.bf16.msra.mxu0 %v5318_v22  ;;  %5355 = vmatpush1.bf16.msra.mxu1 %v5354_v24  ;;  %v467_v0 = vld [vmem:[#allocation6 + $0xd0] sm:$0xff]  ;;  %v7159_v2 = vpack.c.bf16 %v456_v62, %v451_v61  ;;  %v137_v4 = vld [vmem:[#allocation2 + $0xe8] sm:$0xff]  ;;  %v461_v6 = vld [vmem:[#allocation6 + $0xa0] sm:$0xff] }
  0x77   :  { %5321 = vmatprep.subr.bf16.mxu0 %v5320_v25  ;;  %5357 = vmatprep.subr.bf16.mxu1 %v5356_v29  ;;  %v132_v3 = vld [vmem:[#allocation2 + $0xc0] sm:$0xff]  ;;  %v7162_v5 = vpack.c.bf16 %v467_v0, %v462_v63  ;;  %v466_v7 = vld [vmem:[#allocation6 + $0xc8] sm:$0xff]  ;;  %v472_v8 = vld [vmem:[#allocation6 + $0xf8] sm:$0xff] }
  0x78   :  { %v477_v9 = vld [vmem:[#allocation6 + $0x120] sm:$0xff]  ;;  %v5371_v11 = vpack.c.bf16 %v137_v4, %v132_v3  ;;  %v7169_v12 = vpack.c.bf16 %v466_v7, %v461_v6  ;;  %v147_v14 = vld [vmem:[#allocation2 + $0x138] sm:$0xff]  ;;  %v471_v16 = vld [vmem:[#allocation6 + $0xf0] sm:$0xff] }
  0x79   :  { %v142_v13 = vld [vmem:[#allocation2 + $0x110] sm:$0xff]  ;;  %v7172_v15 = vpack.c.bf16 %v477_v9, %v472_v8  ;;  %v476_v17 = vld [vmem:[#allocation6 + $0x118] sm:$0xff]  ;;  %v482_v18 = vld [vmem:[#allocation6 + $0x148] sm:$0xff] }
  0x7a   :  { %5323 = vmatpush1.bf16.msra.mxu0 %v5322_v35  ;;  %5359 = vmatpush1.bf16.msra.mxu1 %v5358_v36  ;;  %v487_v19 = vld [vmem:[#allocation6 + $0x170] sm:$0xff]  ;;  %v5374_v20 = vpack.c.bf16 %v147_v14, %v142_v13  ;;  %v7176_v21 = vpack.c.bf16 %v476_v17, %v471_v16  ;;  %v481_v25 = vld [vmem:[#allocation6 + $0x140] sm:$0xff]  ;;  %v486_v26 = vld [vmem:[#allocation6 + $0x168] sm:$0xff] }
  0x7b   :  { %5325 = vmatprep.subr.bf16.mxu0 %v5324_v37  ;;  %5361 = vmatprep.subr.bf16.mxu1 %v5360_v40  ;;  %v152_v22 = vld [vmem:[#allocation2 + $0x160] sm:$0xff]  ;;  %v7179_v24 = vpack.c.bf16 %v487_v19, %v482_v18  ;;  %v492_v27 = vld [vmem:[#allocation6 + $0x198] sm:$0xff]  ;;  %v497_v28 = vld [vmem:[#allocation6 + $0x1c0] sm:$0xff]  ;;  %v7183_v30 = vpack.c.bf16 %v486_v26, %v481_v25 }
  0x7c   :  { %v162_v31 = vld [vmem:[#allocation2 + $0x1b0] sm:$0xff]  ;;  %v167_v32 = vld [vmem:[#allocation2 + $0x1d8] sm:$0xff]  ;;  %v7186_v33 = vpack.c.bf16 %v497_v28, %v492_v27  ;;  %v491_v34 = vld [vmem:[#allocation6 + $0x190] sm:$0xff] }
  0x7d   :  { %v496_v35 = vld [vmem:[#allocation6 + $0x1b8] sm:$0xff]  ;;  %v502_v36 = vld [vmem:[#allocation6 + $0x1e8] sm:$0xff]  ;;  %v507_v37 = vld [vmem:[#allocation6 + $0x210] sm:$0xff]  ;;  %v5380_v38 = vpack.c.bf16 %v167_v32, %v162_v31 }
  0x7e   :  { %5327 = vmatpush1.bf16.msra.mxu0 %v5326_v45  ;;  %5363 = vmatpush1.bf16.msra.mxu1 %v5362_v46  ;;  %v7190_v39 = vpack.c.bf16 %v496_v35, %v491_v34  ;;  %v172_v40 = vld [vmem:[#allocation2 + $0x200] sm:$0xff]  ;;  %v177_v41 = vld [vmem:[#allocation2 + $0x228] sm:$0xff]  ;;  %v7193_v42 = vpack.c.bf16 %v507_v37, %v502_v36  ;;  %v501_v43 = vld [vmem:[#allocation6 + $0x1e0] sm:$0xff] }
  0x7f   :  { %5364 = vmatprep.subr.bf16.mxu0 %v9573_v56  ;;  %5392 = vmatprep.subr.bf16.mxu1 %v7142_v49  ;;  %v506_v44 = vld [vmem:[#allocation6 + $0x208] sm:$0xff]  ;;  %v512_v45 = vld [vmem:[#allocation6 + $0x238] sm:$0xff]  ;;  %v517_v46 = vld [vmem:[#allocation6 + $0x260] sm:$0xff]  ;;  %v5383_v47 = vpack.c.bf16 %v177_v41, %v172_v40 }
  0x80   :  { %v7197_v48 = vpack.c.bf16 %v506_v44, %v501_v43  ;;  %v182_v50 = vld [vmem:[#allocation2 + $0x250] sm:$0xff]  ;;  %v187_v51 = vld [vmem:[#allocation2 + $0x278] sm:$0xff]  ;;  %v7200_v52 = vpack.c.bf16 %v517_v46, %v512_v45  ;;  %v511_v53 = vld [vmem:[#allocation6 + $0x230] sm:$0xff] }
  0x81   :  { %294 = vmatmul.mubr.f32.vlgmr.msra.gmra.mrb[0].mxu0 %v7147_v54  ;;  %365 = vmatmul.mubr.f32.vlgmr.msra.gmra.mrb[0].mxu1 %v7147_v54  ;;  %v522_v58 = vld [vmem:[#allocation6 + $0x288] sm:$0xff]  ;;  %v527_v59 = vld [vmem:[#allocation6 + $0x2b0] sm:$0xff]  ;;  %v5386_v61 = vpack.c.bf16 %v187_v51, %v182_v50  ;;  %v197_v0 = vld [vmem:[#allocation2 + $0x2c8] sm:$0xff] }
  0x82   :  { %5366 = vmatpush1.bf16.msra.mxu0 %v5365_v55  ;;  %5394 = vmatpush1.bf16.msra.mxu1 %v7150_v57  ;;  %v516_v55 = vld [vmem:[#allocation6 + $0x258] sm:$0xff]  ;;  %v192_v63 = vld [vmem:[#allocation2 + $0x2a0] sm:$0xff]  ;;  %v7207_v3 = vpack.c.bf16 %v527_v59, %v522_v58  ;;  %v526_v4 = vld [vmem:[#allocation6 + $0x2a8] sm:$0xff] }
  0x83   :  { %5367 = vmatprep.subr.bf16.mxu0 %v9573_v56  ;;  %5396 = vmatprep.subr.bf16.mxu1 %v7153_v60  ;;  %v7204_v62 = vpack.c.bf16 %v516_v55, %v511_v53  ;;  %v444_v6 = vld [vmem:[#allocation6 + $0x18] sm:$0xff]  ;;  %v449_v7 = vld [vmem:[#allocation6 + $0x40] sm:$0xff]  ;;  %v5389_v8 = vpack.c.bf16 %v197_v0, %v192_v63  ;;  %v443_v13 = vld [vmem:[#allocation6 + $0x10] sm:$0xff] }
  0x84   :  { %5026 = vmatprep.mubr.msk.f32.mxu0 %vm225_vm0, %v7136_v23  ;;  %679 = vmatprep.mubr.f32.mxu1 %v9571_v10  ;;  %v157_v23 = vld [vmem:[#allocation2 + $0x188] sm:$0xff]  ;;  %v445_v16 = vld [vmem:[#allocation6 + $0x20] sm:$0xff]  ;;  %v450_v17 = vld [vmem:[#allocation6 + $0x48] sm:$0xff] }
  0x85   :  { %v5377_v29 = vpack.c.bf16 %v157_v23, %v152_v22  ;;  %v448_v14 = vld [vmem:[#allocation6 + $0x38] sm:$0xff]  ;;  %v454_v18 = vld [vmem:[#allocation6 + $0x68] sm:$0xff]  ;;  %v459_v19 = vld [vmem:[#allocation6 + $0x90] sm:$0xff]  ;;  %v7220_v22 = vpack.c.bf16 %v450_v17, %v445_v16 }
  0x86   :  { %5369 = vmatpush1.bf16.msra.mxu0 %v5368_v1  ;;  %5398 = vmatpush1.bf16.msra.mxu1 %v7159_v2  ;;  %v521_v1 = vld [vmem:[#allocation6 + $0x280] sm:$0xff]  ;;  %v7222_v23 = vpack.c.bf16 %v459_v19, %v454_v18  ;;  %v458_v26 = vld [vmem:[#allocation6 + $0x88] sm:$0xff]  ;;  %v455_v27 = vld [vmem:[#allocation6 + $0x70] sm:$0xff] }
  0x87   :  { %5370 = vmatprep.subr.bf16.mxu0 %v9573_v56  ;;  %5400 = vmatprep.subr.bf16.mxu1 %v7162_v5  ;;  %v7211_v9 = vpack.c.bf16 %v526_v4, %v521_v1  ;;  %v453_v25 = vld [vmem:[#allocation6 + $0x60] sm:$0xff]  ;;  %v460_v28 = vld [vmem:[#allocation6 + $0x98] sm:$0xff]  ;;  %v463_v36 = vld [vmem:[#allocation6 + $0xb0] sm:$0xff] }
  0x88   :  { %v469_v31 = vld [vmem:[#allocation6 + $0xe0] sm:$0xff]  ;;  %v7228_v32 = vpack.c.bf16 %v458_v26, %v453_v25  ;;  %v7232_v34 = vpack.c.bf16 %v460_v28, %v455_v27  ;;  %v468_v37 = vld [vmem:[#allocation6 + $0xd8] sm:$0xff]  ;;  %v474_v40 = vld [vmem:[#allocation6 + $0x108] sm:$0xff] }
  0x89   :  { %v479_v41 = vld [vmem:[#allocation6 + $0x130] sm:$0xff]  ;;  %v7240_v43 = vpack.c.bf16 %v468_v37, %v463_v36  ;;  %v473_v46 = vld [vmem:[#allocation6 + $0x100] sm:$0xff]  ;;  %v480_v51 = vld [vmem:[#allocation6 + $0x138] sm:$0xff] }
  0x8a   :  { %5372 = vmatpush1.bf16.msra.mxu0 %v5371_v11  ;;  %5402 = vmatpush1.bf16.msra.mxu1 %v7169_v12  ;;  %v7213_v11 = vpack.c.bf16 %v449_v7, %v444_v6  ;;  %v7246_v45 = vpack.c.bf16 %v479_v41, %v474_v40  ;;  %v475_v50 = vld [vmem:[#allocation6 + $0x110] sm:$0xff]  ;;  %v484_v53 = vld [vmem:[#allocation6 + $0x158] sm:$0xff]  ;;  %v489_v55 = vld [vmem:[#allocation6 + $0x180] sm:$0xff] }
  0x8b   :  { %5373 = vmatprep.subr.bf16.mxu0 %v9573_v56  ;;  %5404 = vmatprep.subr.bf16.mxu1 %v7172_v15  ;;  %v7254_v59 = vpack.c.bf16 %v480_v51, %v475_v50  ;;  %v483_v63 = vld [vmem:[#allocation6 + $0x150] sm:$0xff]  ;;  %v488_v0 = vld [vmem:[#allocation6 + $0x178] sm:$0xff]  ;;  %v485_v1 = vld [vmem:[#allocation6 + $0x160] sm:$0xff] }
  0x8c   :  { %v490_v4 = vld [vmem:[#allocation6 + $0x188] sm:$0xff]  ;;  %v499_v7 = vld [vmem:[#allocation6 + $0x1d0] sm:$0xff]  ;;  %v493_v16 = vld [vmem:[#allocation6 + $0x1a0] sm:$0xff] }
  0x8d   :  { %v494_v6 = vld [vmem:[#allocation6 + $0x1a8] sm:$0xff]  ;;  %v495_v18 = vld [vmem:[#allocation6 + $0x1b0] sm:$0xff]  ;;  %v500_v19 = vld [vmem:[#allocation6 + $0x1d8] sm:$0xff] }
  0x8e   :  { %5375 = vmatpush1.bf16.msra.mxu0 %v5374_v20  ;;  %5406 = vmatpush1.bf16.msra.mxu1 %v7176_v21  ;;  %v7216_v20 = vpack.c.bf16 %v448_v14, %v443_v13  ;;  %v7264_v13 = vpack.c.bf16 %v490_v4, %v485_v1  ;;  %v7266_v14 = vpack.c.bf16 %v499_v7, %v494_v6  ;;  %v498_v17 = vld [vmem:[#allocation6 + $0x1c8] sm:$0xff]  ;;  %v504_v25 = vld [vmem:[#allocation6 + $0x1f8] sm:$0xff]  ;;  %v509_v26 = vld [vmem:[#allocation6 + $0x220] sm:$0xff] }
  0x8f   :  { %5376 = vmatprep.subr.bf16.mxu0 %v9573_v56  ;;  %5408 = vmatprep.subr.bf16.mxu1 %v7179_v24  ;;  %v7270_v27 = vpack.c.bf16 %v498_v17, %v493_v16  ;;  %v7274_v28 = vpack.c.bf16 %v500_v19, %v495_v18  ;;  %v508_v36 = vld [vmem:[#allocation6 + $0x218] sm:$0xff]  ;;  %v505_v37 = vld [vmem:[#allocation6 + $0x200] sm:$0xff]  ;;  %v519_v40 = vld [vmem:[#allocation6 + $0x270] sm:$0xff] }
  0x90   :  { %v513_v50 = vld [vmem:[#allocation6 + $0x240] sm:$0xff]  ;;  %v518_v51 = vld [vmem:[#allocation6 + $0x268] sm:$0xff]  ;;  %v523_v7 = vld [vmem:[#allocation6 + $0x290] sm:$0xff] }
  0x91   :  { %9693 = vst [vmem:[#allocation22_spill] sm:$0xff] %v7270_v27  ;;  %v7290_v1 = vpack.c.bf16 %v518_v51, %v513_v50  ;;  %v528_v16 = vld [vmem:[#allocation6 + $0x2b8] sm:$0xff]  ;;  %v525_v17 = vld [vmem:[#allocation6 + $0x2a0] sm:$0xff]  ;;  %v530_v18 = vld [vmem:[#allocation6 + $0x2c8] sm:$0xff] }
  0x92   :  { %5378 = vmatpush1.bf16.msra.mxu0 %v5377_v29  ;;  %5410 = vmatpush1.bf16.msra.mxu1 %v7183_v30  ;;  %v464_v29 = vld [vmem:[#allocation6 + $0xb8] sm:$0xff]  ;;  %v7300_v19 = vpack.c.bf16 %v528_v16, %v523_v7  ;;  %v7360_v50 = vld [vmem:[%s9565_s3] sm:$0x1f]  ;;  %s7035_s3 = smov 96  }
  0x93   :  { %5379 = vmatprep.subr.bf16.mxu0 %v9573_v56  ;;  %5412 = vmatprep.subr.bf16.mxu1 %v7186_v33  ;;  %v7234_v35 = vpack.c.bf16 %v469_v31, %v464_v29  ;;  %v7276_v29 = vpack.c.bf16 %v509_v26, %v504_v25  ;;  %v503_v31 = vld [vmem:[#allocation6 + $0x1f0] sm:$0xff]  ;;  %9697 = vst [vmem:[#allocation26_spill] sm:$0xff] %v7290_v1  ;;  %v200_v26 = vlaneseq }
  0x94   :  { %v7280_v41 = vpack.c.bf16 %v508_v36, %v503_v31  ;;  %9699 = vst [vmem:[#allocation28_spill] sm:$0xff] %v7300_v19  ;;  %v7304_v25 = vpack.c.bf16 %v530_v18, %v525_v17 }
  0x95   :  { %9694 = vst [vmem:[#allocation23_spill] sm:$0xff] %v7276_v29  ;;  %v7349_v31 = vshrl.u32 %v200_v26, 7  ;;  %v7351_v36 = vand.u32 127, %v200_v26 }
  0x96   :  { %5381 = vmatpush1.bf16.msra.mxu0 %v5380_v38  ;;  %5414 = vmatpush1.bf16.msra.mxu1 %v7190_v39  ;;  %v465_v38 = vld [vmem:[#allocation6 + $0xc0] sm:$0xff]  ;;  %9695 = vst [vmem:[#allocation24_spill] sm:$0xff] %v7280_v41 }
  0x97   :  { %5382 = vmatprep.subr.bf16.mxu0 %v9573_v56  ;;  %5416 = vmatprep.subr.bf16.mxu1 %v7193_v42  ;;  %9700 = vst [vmem:[#allocation29_spill] sm:$0xff] %v7349_v31  ;;  %9701 = vst [vmem:[#allocation30_spill] sm:$0xff] %v7351_v36 }
  0x9a   :  { %5384 = vmatpush1.bf16.msra.mxu0 %v5383_v47  ;;  %5418 = vmatpush1.bf16.msra.mxu1 %v7197_v48  ;;  %v478_v47 = vld [vmem:[#allocation6 + $0x128] sm:$0xff] }
  0x9b   :  { %5385 = vmatprep.subr.bf16.mxu0 %v9573_v56  ;;  %5420 = vmatprep.subr.bf16.mxu1 %v7200_v52  ;;  %v7250_v58 = vpack.c.bf16 %v478_v47, %v473_v46 }
  0x9e   :  { %5387 = vmatpush1.bf16.msra.mxu0 %v5386_v61  ;;  %5422 = vmatpush1.bf16.msra.mxu1 %v7204_v62  ;;  %v7256_v61 = vpack.c.bf16 %v489_v55, %v484_v53  ;;  %v515_v53 = vld [vmem:[#allocation6 + $0x250] sm:$0xff]  ;;  %v520_v55 = vld [vmem:[#allocation6 + $0x278] sm:$0xff] }
  0x9f   :  { %5388 = vmatprep.subr.bf16.mxu0 %v9573_v56  ;;  %5424 = vmatprep.subr.bf16.mxu1 %v7207_v3  ;;  %v7294_v4 = vpack.c.bf16 %v520_v55, %v515_v53 }
  0xa2   :  { %5390 = vmatpush1.bf16.msra.mxu0 %v5389_v8  ;;  %5426 = vmatpush1.bf16.msra.mxu1 %v7211_v9  ;;  %v7260_v8 = vpack.c.bf16 %v488_v0, %v483_v63  ;;  %v524_v63 = vld [vmem:[#allocation6 + $0x298] sm:$0xff]  ;;  %v529_v0 = vld [vmem:[#allocation6 + $0x2c0] sm:$0xff] }
  0xa3   :  { %5428 = vmatprep.subr.bf16.mxu0 %v7213_v11  ;;  %5463 = vmatprep.subr.bf16.mxu1 %v9573_v56  ;;  %v7296_v6 = vpack.c.bf16 %v529_v0, %v524_v63 }
  0xa5   :  { %436 = vmatmul.mubr.f32.vlgmr.msra.gmra.mrb[2].mxu0 %v7147_v54  ;;  %680 = vmatmul.mubr.f32.vlgmr.msra.gmra.mrb[2].mxu1 %v9571_v10  ;;  %v470_v54 = vld [vmem:[#allocation6 + $0xe8] sm:$0xff]  ;;  %9698 = vst [vmem:[#allocation27_spill] sm:$0xff] %v7296_v6 }
  0xa6   :  { %5430 = vmatpush1.bf16.msra.mxu0 %v7216_v20  ;;  %5465 = vmatpush1.bf16.msra.mxu1 %v7220_v22  ;;  %v7244_v44 = vpack.c.bf16 %v470_v54, %v465_v38  ;;  %v510_v38 = vld [vmem:[#allocation6 + $0x228] sm:$0xff] }
  0xa7   :  { %5432 = vmatprep.subr.bf16.mxu0 %v7222_v23  ;;  %5466 = vmatprep.subr.bf16.mxu1 %v9573_v56  ;;  %v514_v54 = vld [vmem:[#allocation6 + $0x248] sm:$0xff]  ;;  %v7284_v46 = vpack.c.bf16 %v510_v38, %v505_v37  ;;  %v210_v37 = vsub.s32 2, %v7349_v31  ;;  %v214_v38 = vsub.s32 3, %v7349_v31 }
  0xa8   :  { %750 = vmatprep.mubr.f32.mxu0 %v9571_v10  ;;  %821 = vmatprep.mubr.f32.mxu1 %v9571_v10  ;;  %v7286_v47 = vpack.c.bf16 %v519_v40, %v514_v54  ;;  %v534_v54 = vadd.s32 256, %v7351_v36  ;;  %v535_v40 = vadd.s32 384, %v7351_v36 }
  0xa9   :  { %v211_v51 = vrot.slane %v7360_v50, %v210_v37  ;;  %v215_v53 = vrot.slane %v7360_v50, %v214_v38 }
  0xaa   :  { %5434 = vmatpush1.bf16.msra.mxu0 %v7228_v32  ;;  %5468 = vmatpush1.bf16.msra.mxu1 %v7232_v34  ;;  %9696 = vst [vmem:[#allocation25_spill] sm:$0xff] %v7286_v47  ;;  %v539_v55 = vand.u32 15, %v534_v54  ;;  %v540_v0 = vand.u32 15, %v535_v40 }
  0xab   :  { %5436 = vmatprep.subr.bf16.mxu0 %v7234_v35  ;;  %5469 = vmatprep.subr.bf16.mxu1 %v9573_v56 }
  0xac   :  { %vm7364_vm1 = vcmp.lt.s32.totalorder %v539_v55, 8  ;;  %vm7368_vm2 = vcmp.lt.s32.totalorder %v540_v0, 8 }
  0xae   :  { %5438 = vmatpush1.bf16.msra.mxu0 %v7240_v43  ;;  %5471 = vmatpush1.bf16.msra.mxu1 %v7244_v44 }
  0xaf   :  { %5440 = vmatprep.subr.bf16.mxu0 %v7246_v45  ;;  %5472 = vmatprep.subr.bf16.mxu1 %v9573_v56 }
  0xb2   :  { %5442 = vmatpush1.bf16.msra.mxu0 %v7250_v58  ;;  %5474 = vmatpush1.bf16.msra.mxu1 %v7254_v59 }
  0xb3   :  { %5444 = vmatprep.subr.bf16.mxu0 %v7256_v61  ;;  %5475 = vmatprep.subr.bf16.mxu1 %v9573_v56 }
  0xb6   :  { %5446 = vmatpush1.bf16.msra.mxu0 %v7260_v8  ;;  %5477 = vmatpush1.bf16.msra.mxu1 %v7264_v13 }
  0xb7   :  { %5448 = vmatprep.subr.bf16.mxu0 %v7266_v14  ;;  %5478 = vmatprep.subr.bf16.mxu1 %v9573_v56 }
  0xba   :  { %5450 = vmatpush1.bf16.msra.mxu0 %v7270_v27  ;;  %5480 = vmatpush1.bf16.msra.mxu1 %v7274_v28 }
  0xbb   :  { %5452 = vmatprep.subr.bf16.mxu0 %v7276_v29  ;;  %5481 = vmatprep.subr.bf16.mxu1 %v9573_v56 }
  0xbe   :  { %5454 = vmatpush1.bf16.msra.mxu0 %v7280_v41  ;;  %5483 = vmatpush1.bf16.msra.mxu1 %v7284_v46 }
  0xbf   :  { %5456 = vmatprep.subr.bf16.mxu0 %v7286_v47  ;;  %5484 = vmatprep.subr.bf16.mxu1 %v9573_v56 }
  0xc2   :  { %5458 = vmatpush1.bf16.msra.mxu0 %v7290_v1  ;;  %5486 = vmatpush1.bf16.msra.mxu1 %v7294_v4 }
  0xc3   :  { %5460 = vmatprep.subr.bf16.mxu0 %v7296_v6  ;;  %5487 = vmatprep.subr.bf16.mxu1 %v9573_v56 }
  0xc6   :  { %5462 = vmatpush1.bf16.msra.mxu0 %v7300_v19  ;;  %5489 = vmatpush1.bf16.msra.mxu1 %v7304_v25 }
  0xc7   :  { %5491 = vmatprep.subr.bf16.mxu0 %v7142_v49  ;;  %5527 = vmatprep.subr.bf16.mxu1 %v7213_v11 }
  0xc9   :  { %751 = vmatmul.mubr.f32.vlgmr.msra.gmra.mrb[4].mxu0 %v9571_v10  ;;  %822 = vmatmul.mubr.f32.vlgmr.msra.gmra.mrb[4].mxu1 %v9571_v10 }
  0xca   :  { %5493 = vmatpush1.bf16.msra.mxu0 %v7150_v57  ;;  %5529 = vmatpush1.bf16.msra.mxu1 %v7216_v20 }
  0xcb   :  { %5495 = vmatprep.subr.bf16.mxu0 %v7153_v60  ;;  %5531 = vmatprep.subr.bf16.mxu1 %v7222_v23 }
  0xce   :  { %5497 = vmatpush1.bf16.msra.mxu0 %v7159_v2  ;;  %5533 = vmatpush1.bf16.msra.mxu1 %v7228_v32 }
  0xcf   :  { %5499 = vmatprep.subr.bf16.mxu0 %v7162_v5  ;;  %5535 = vmatprep.subr.bf16.mxu1 %v7234_v35 }
  0xd2   :  { %5501 = vmatpush1.bf16.msra.mxu0 %v7169_v12  ;;  %5537 = vmatpush1.bf16.msra.mxu1 %v7240_v43 }
  0xd3   :  { %5503 = vmatprep.subr.bf16.mxu0 %v7172_v15  ;;  %5539 = vmatprep.subr.bf16.mxu1 %v7246_v45 }
  0xd6   :  { %5505 = vmatpush1.bf16.msra.mxu0 %v7176_v21  ;;  %5541 = vmatpush1.bf16.msra.mxu1 %v7250_v58 }
  0xd7   :  { %5507 = vmatprep.subr.bf16.mxu0 %v7179_v24  ;;  %5543 = vmatprep.subr.bf16.mxu1 %v7256_v61 }
  0xda   :  { %5509 = vmatpush1.bf16.msra.mxu0 %v7183_v30  ;;  %5545 = vmatpush1.bf16.msra.mxu1 %v7260_v8 }
  0xdb   :  { %5511 = vmatprep.subr.bf16.mxu0 %v7186_v33  ;;  %5547 = vmatprep.subr.bf16.mxu1 %v7266_v14 }
  0xde   :  { %5513 = vmatpush1.bf16.msra.mxu0 %v7190_v39  ;;  %5549 = vmatpush1.bf16.msra.mxu1 %v7270_v27 }
  0xdf   :  { %5515 = vmatprep.subr.bf16.mxu0 %v7193_v42  ;;  %5551 = vmatprep.subr.bf16.mxu1 %v7276_v29 }
  0xe2   :  { %5517 = vmatpush1.bf16.msra.mxu0 %v7197_v48  ;;  %5553 = vmatpush1.bf16.msra.mxu1 %v7280_v41 }
  0xe3   :  { %5519 = vmatprep.subr.bf16.mxu0 %v7200_v52  ;;  %5555 = vmatprep.subr.bf16.mxu1 %v7286_v47 }
  0xe6   :  { %5521 = vmatpush1.bf16.msra.mxu0 %v7204_v62  ;;  %5557 = vmatpush1.bf16.msra.mxu1 %v7290_v1 }
  0xe7   :  { %5523 = vmatprep.subr.bf16.mxu0 %v7207_v3  ;;  %5559 = vmatprep.subr.bf16.mxu1 %v7296_v6 }
  0xea   :  { %5525 = vmatpush1.bf16.msra.mxu0 %v7211_v9  ;;  %5561 = vmatpush1.bf16.msra.mxu1 %v7300_v19 }
  0xeb   :  { %5562 = vmatprep.subr.bf16.mxu0 %v9573_v56  ;;  %5590 = vmatprep.subr.bf16.mxu1 %v7142_v49 }
 0x154   :  { %v295_v63 = vpop.f32.mrb[0].mxu0  ;;  %v366_v16 = vpop.f32.mrb[0].mxu1 }
 0x155   :  { %v297_v7 = vpop.f32.mrb[1].mxu0  ;;  %v367_v17 = vadd.f32 %v366_v16, %v211_v51  ;;  %v368_v18 = vpop.f32.mrb[1].mxu1 }
 0x156   :  { %v369_v26 = vadd.f32 %v368_v18, %v215_v53 }
 0x157   :  { %v569_v49 = vrot.slane %v367_v17, 5  ;;  %v584_v40 = vrot.slane %v367_v17, 3  ;;  %v599_v53 = vrot.slane %v367_v17, 1 }
 0x158   :  { %v570_v37 = vrot.slane %v369_v26, 5  ;;  %v585_v51 = vrot.slane %v369_v26, 3  ;;  %v600_v0 = vrot.slane %v369_v26, 1 }
 0x159   :  { %v7374_v38 = vsel %vm7364_vm1, %v367_v17, %v569_v49  ;;  %v7382_v55 = vsel %vm7364_vm1, %v367_v17, %v584_v40  ;;  %v7390_v49 = vsel %vm7364_vm1, %v367_v17, %v599_v53 }
 0x15a   :  { %9706 = vst [vmem:[#allocation31_spill] sm:$0xff] %v7374_v38  ;;  %v7378_v54 = vsel %vm7368_vm2, %v369_v26, %v570_v37  ;;  %9708 = vst [vmem:[#allocation33_spill] sm:$0xff] %v7382_v55  ;;  %v7386_v16 = vsel %vm7368_vm2, %v369_v26, %v585_v51  ;;  %v7394_v18 = vsel %vm7368_vm2, %v369_v26, %v600_v0  ;;  %v218_v37 = vsub.s32 4, %v7349_v31 }
 0x15b   :  { %9707 = vst [vmem:[#allocation32_spill] sm:$0xff] %v7378_v54  ;;  %9709 = vst [vmem:[#allocation34_spill] sm:$0xff] %v7386_v16  ;;  %v536_v54 = vadd.s32 512, %v7351_v36 }
 0x15c   :  { %9710 = vst [vmem:[#allocation35_spill] sm:$0xff] %v7390_v49  ;;  %9711 = vst [vmem:[#allocation36_spill] sm:$0xff] %v7394_v18  ;;  %v219_v40 = vrot.slane %v7360_v50, %v218_v37  ;;  %v554_v37 = vrot.slane %v367_v17, 7 }
 0x15d   :  { %v541_v55 = vand.u32 15, %v536_v54  ;;  %v555_v54 = vrot.slane %v369_v26, 7 }
 0x15f   :  { %vm546_vm3 = vcmp.lt.s32.totalorder %v541_v55, 8 }
 0x178   :  { %v437_v38 = vpop.f32.mrb[2].mxu0  ;;  %v681_v6 = vpop.f32.mrb[2].mxu1 }
 0x179   :  { %v438_v19 = vadd.f32 %v437_v38, %v219_v40  ;;  %v439_v51 = vpop.f32.mrb[3].mxu0  ;;  %v683_v16 = vpop.f32.mrb[3].mxu1  ;;  %v7409_v38 = vsel %vm7364_vm1, %v367_v17, %v554_v37  ;;  %v7425_v17 = vsub.s32 0, %v7349_v31  ;;  %v537_v37 = vand.u32 15, %v7351_v36 }
 0x17a   :  { %9716 = vst [vmem:[#allocation41_spill] sm:$0xff] %v7409_v38 }
 0x17b   :  { %v556_v1 = vrot.slane %v438_v19, 7  ;;  %v571_v53 = vrot.slane %v438_v19, 5  ;;  %v586_v49 = vrot.slane %v438_v19, 3  ;;  %v601_v47 = vrot.slane %v438_v19, 1  ;;  %9718 = vst [vmem:[#allocation43_spill] sm:$0xff] %v7425_v17 }
 0x17c   :  { %v203_v56 = vrot.slane %v7360_v50, %v7425_v17  ;;  %vm7438_vm4 = vcmp.lt.s32.totalorder %v537_v37, 8 }
 0x17d   :  { %v7399_v41 = vsel %vm546_vm3, %v438_v19, %v556_v1  ;;  %v7401_v0 = vsel %vm546_vm3, %v438_v19, %v571_v53  ;;  %v7403_v18 = vsel %vm546_vm3, %v438_v19, %v586_v49  ;;  %v7405_v29 = vsel %vm546_vm3, %v438_v19, %v601_v47 }
 0x17e   :  { %9712 = vst [vmem:[#allocation37_spill] sm:$0xff] %v7399_v41  ;;  %9713 = vst [vmem:[#allocation38_spill] sm:$0xff] %v7401_v0  ;;  %v7416_v1 = vsel %vm7368_vm2, %v369_v26, %v555_v54  ;;  %v206_v26 = vsub.s32 1, %v7349_v31  ;;  %v7430_v53 = vadd.f32 %v295_v63, %v203_v56  ;;  %v533_v54 = vadd.s32 128, %v7351_v36 }
 0x17f   :  { %9714 = vst [vmem:[#allocation39_spill] sm:$0xff] %v7403_v18  ;;  %9715 = vst [vmem:[#allocation40_spill] sm:$0xff] %v7405_v29 }
 0x180   :  { %9717 = vst [vmem:[#allocation42_spill] sm:$0xff] %v7416_v1  ;;  %9719 = vst [vmem:[#allocation44_spill] sm:$0xff] %v7430_v53 }
 0x19c   :  { %v752_v40 = vpop.f32.mrb[4].mxu0  ;;  %v7412_v51 = vpop.f32.mrb[4].mxu1 }
 0x19d   :  { %v829_v55 = vadd.f32 %v752_v40, %v7409_v38  ;;  %v754_v27 = vpop.f32.mrb[5].mxu0  ;;  %v825_v49 = vpop.f32.mrb[5].mxu1  ;;  %v9741_v38 = vld [vmem:[#allocation32_spill] sm:$0xff] }
 0x19e   :  { %v7419_v47 = vadd.f32 %v754_v27, %v7416_v1  ;;  %v207_v27 = vrot.slane %v7360_v50, %v206_v26  ;;  %v552_v49 = vrot.slane %v7430_v53, 7  ;;  %v9725_v26 = vmov 0 }
 0x19f   :  { %6675 = vtanh.f32 %v829_v55 }
 0x1a0   :  { %6677 = vtanh.f32 %v7419_v47  ;;  %v7435_v40 = vadd.f32 %v297_v7, %v207_v27  ;;  %v7445_v63 = vsel %vm7438_vm4, %v7430_v53, %v552_v49 }
 0x1a1   :  { %9724 = vst [vmem:[#allocation47_spill] sm:$0xff] %v7445_v63  ;;  %v827_v56 = vadd.f32 %v681_v6, %v7445_v63 }
 0x1a2   :  { %9720 = vst [vmem:[#allocation45_spill] sm:$0xff] %v7435_v40  ;;  %v553_v50 = vrot.slane %v7435_v40, 7 }
 0x1a3   :  { %v5027_v27 = vmul.f32 -1.442695, %v827_v56 }
 0x1a5   :  { %6679 = vpow2.f32 %v5027_v27  ;;  %v5029_v27 = vmul.f32 -1.442695, %v829_v55 }
 0x1a9   :  { %v6676_v10 = vpop.eup %6675 }
 0x1aa   :  { %868 = vrot.lane.b32.xlu0 %v6676_v10, %s7035_s3  ;;  %v6678_v19 = vpop.eup %6677  ;;  %v9721_v10 = vmov 0 }
 0x1ab   :  { %v9722_v10 = vsel %vm7438_vm4, 4294967295, %v9721_v10 }
 0x1ac   :  { %9723 = vst [vmem:[#allocation46_spill] sm:$0xff] %v9722_v10 }
 0x1ae   :  { %870 = vrot.lane.b32.xlu0 %v6678_v19, %s7035_s3  ;;  %v538_v19 = vand.u32 15, %v533_v54 }
 0x1af   :  { %v6680_v49 = vpop.eup %6679 }
 0x1b0   :  { %vm7449_vm5 = vcmp.lt.s32.totalorder %v538_v19, 8  ;;  %v838_v17 = vadd.f32 1.0, %v6680_v49 }
 0x1b1   :  { %v9726_v26 = vsel %vm7449_vm5, 4294967295, %v9725_v26  ;;  %v7456_v7 = vsel %vm7449_vm5, %v7435_v40, %v553_v50 }
 0x1b2   :  { %9727 = vst [vmem:[#allocation48_spill] sm:$0xff] %v9726_v26  ;;  %9728 = vst [vmem:[#allocation49_spill] sm:$0xff] %v7456_v7  ;;  %v828_v37 = vadd.f32 %v683_v16, %v7456_v7 }
 0x1b4   :  { %v5028_v54 = vmul.f32 -1.442695, %v828_v37 }
 0x1b6   :  { %6681 = vpow2.f32 %v5028_v54 }
 0x1b7   :  { %6683 = vrcp.f32 %v838_v17 }
 0x1c0   :  { %v6682_v31 = vpop.eup %6681 }
 0x1c1   :  { %v839_v6 = vadd.f32 1.0, %v6682_v31  ;;  %v6684_v63 = vpop.eup %6683 }
 0x1c3   :  { %6685 = vrcp.f32 %v839_v6 }
 0x1c4   :  { %6687 = vpow2.f32 %v5029_v27 }
 0x1cd   :  { %v6686_v16 = vpop.eup %6685 }
 0x1ce   :  { %v6688_v37 = vpop.eup %6687  ;;  %v864_v31 = vmul.f32 0.0, %v6686_v16 }
 0x1cf   :  { %v847_v17 = vadd.f32 1.0, %v6688_v37 }
 0x1d1   :  { %6689 = vrcp.f32 %v847_v17 }
 0x1db   :  { %v6690_v49 = vpop.eup %6689 }
 0x21c   :  { %v869_v19 = vpop.permute.xlu0 %868 }
 0x220   :  { %v871_v36 = vpop.permute.xlu0 %870 }
 0x221   :  { %v873_v1 = vsel %vm872_vm6, %v869_v19, %v871_v36  ;;  %v877_v56 = vmul.f32 %v6686_v16, %v871_v36  ;;  %v5030_v16 = vmul.f32 -1.442695, %v7419_v47 }
 0x222   :  { %v876_v50 = vmul.f32 %v6684_v63, %v873_v1  ;;  %v865_v1 = vmul.f32 0.0, %v6690_v49 }
 0x224   :  { %880 = vrot.lane.b32.xlu1 %v876_v50, %s7036_s27 }
 0x228   :  { %882 = vrot.lane.b32.xlu1 %v877_v56, %s7036_s27  ;;  %v831_v56 = vadd.f32 %v7412_v51, %v7399_v41  ;;  %v9740_v41 = vld [vmem:[#allocation31_spill] sm:$0xff] }
 0x22a   :  { %v5031_v27 = vmul.f32 -1.442695, %v831_v56 }
 0x296   :  { %v881_v54 = vpop.permute.xlu1 %880 }
 0x297   :  { %v7462_v6 = vadd.f32 %v881_v54, %v864_v31 }
 0x299   :  { %6691 = vtanh.f32 %v7462_v6 }
 0x29a   :  { %v883_v63 = vpop.permute.xlu1 %882 }
 0x29b   :  { %v884_v19 = vsel %vm225_vm0, %v881_v54, %v883_v63 }
 0x29c   :  { %v7466_v50 = vadd.f32 %v884_v19, %v865_v1 }
 0x29e   :  { %6693 = vtanh.f32 %v7466_v50 }
 0x29f   :  { %6695 = vpow2.f32 %v5030_v16 }
 0x2a0   :  { %6697 = vpow2.f32 %v5031_v27  ;;  %v9731_v27 = vmov 0.0|0.0  }
 0x2a3   :  { %v6692_v36 = vpop.eup %6691 }
 0x2a4   :  { %893 = vrot.lane.b32.xlu0 %v6692_v36, %s7037_s28 }
 0x2a8   :  { %v6694_v55 = vpop.eup %6693 }
 0x2a9   :  { %895 = vrot.lane.b32.xlu1 %v6694_v55, %s7037_s28  ;;  %v6696_v37 = vpop.eup %6695 }
 0x2aa   :  { %v858_v17 = vadd.f32 1.0, %v6696_v37  ;;  %v6698_v31 = vpop.eup %6697  ;;  %v9732_v37 = vld [vmem:[#allocation22_spill] sm:$0xff] }
 0x2ab   :  { %v859_v54 = vadd.f32 1.0, %v6698_v31  ;;  %v9734_v31 = vld [vmem:[#allocation24_spill] sm:$0xff] }
 0x2ac   :  { %6699 = vrcp.f32 %v858_v17  ;;  %v9733_v17 = vld [vmem:[#allocation23_spill] sm:$0xff] }
 0x2ad   :  { %6701 = vrcp.f32 %v859_v54  ;;  %v9735_v54 = vld [vmem:[#allocation25_spill] sm:$0xff] }
 0x2b6   :  { %v6700_v49 = vpop.eup %6699 }
 0x2b7   :  { %v6702_v19 = vpop.eup %6701 }
 0x316   :  { %v894_v1 = vpop.permute.xlu0 %893 }
 0x317   :  { %v901_v63 = vmul.f32 %v6700_v49, %v894_v1  ;;  %v9736_v49 = vld [vmem:[#allocation26_spill] sm:$0xff] }
 0x319   :  { %905 = vrot.lane.b32.xlu0 %v901_v63, %s7038_s29  ;;  %v9738_v63 = vld [vmem:[#allocation28_spill] sm:$0xff] }
 0x31b   :  { %v896_v47 = vpop.permute.xlu1 %895 }
 0x31c   :  { %v898_v51 = vsel %vm897_vm7, %v894_v1, %v896_v47  ;;  %v9737_v1 = vld [vmem:[#allocation27_spill] sm:$0xff]  ;;  %v9739_v47 = vld [vmem:[#allocation21_spill] sm:$0xff] }
 0x31d   :  { %v902_v36 = vmul.f32 %v6702_v19, %v898_v51 }
 0x31f   :  { %907 = vrot.lane.b32.xlu1 %v902_v36, %s7038_s29 }
 0x38b   :  { %v906_v55 = vpop.permute.xlu0 %905 }
 0x391   :  { %v7477_v16 = vpop.permute.xlu1 %907 }
 0x392   :  { %9729 = vst [vmem:[#allocation50_spill] sm:$0xff] %v7477_v16  ;;  %5032 = vmatprep.mubr.msk.f32.mxu0 %vm225_vm0, %v7477_v16  ;;  %5033 = vmatprep.mubr.msk.f32.mxu1 %vm225_vm0, %v7477_v16  ;;  %v7485_v56 = vsel %vm909_vm8, %v906_v55, %v7477_v16 }
 0x393   :  { %9730 = vst [vmem:[#allocation51_spill] sm:$0xff] %v7485_v56  ;;  %979 = vmatmul.mubr.f32.vlgmr.msra.gmra.mrb[6].mxu0 %v7485_v56  ;;  %1050 = vmatmul.mubr.f32.vlgmr.msra.gmra.mrb[6].mxu1 %v7485_v56 }
 0x394   :  { %5564 = vmatpush1.bf16.msra.mxu0 %v7220_v22  ;;  %5034 = vmatprep.mubr.msk.f32.mxu0 %vm225_vm0, %v7477_v16 }
 0x395   :  { %5565 = vmatprep.subr.bf16.mxu0 %v9731_v27  ;;  %5592 = vmatpush1.bf16.msra.mxu1 %v7150_v57 }
 0x396   :  { %5594 = vmatprep.subr.bf16.mxu1 %v7153_v60 }
 0x398   :  { %5567 = vmatpush1.bf16.msra.mxu0 %v7232_v34 }
 0x399   :  { %5568 = vmatprep.subr.bf16.mxu0 %v9731_v27  ;;  %5596 = vmatpush1.bf16.msra.mxu1 %v7159_v2 }
 0x39a   :  { %5598 = vmatprep.subr.bf16.mxu1 %v7162_v5 }
 0x39c   :  { %5570 = vmatpush1.bf16.msra.mxu0 %v7244_v44 }
 0x39d   :  { %5571 = vmatprep.subr.bf16.mxu0 %v9731_v27  ;;  %5600 = vmatpush1.bf16.msra.mxu1 %v7169_v12 }
 0x39e   :  { %5602 = vmatprep.subr.bf16.mxu1 %v7172_v15 }
 0x3a0   :  { %5573 = vmatpush1.bf16.msra.mxu0 %v7254_v59 }
 0x3a1   :  { %5574 = vmatprep.subr.bf16.mxu0 %v9731_v27  ;;  %5604 = vmatpush1.bf16.msra.mxu1 %v7176_v21 }
 0x3a2   :  { %5606 = vmatprep.subr.bf16.mxu1 %v7179_v24 }
 0x3a4   :  { %5576 = vmatpush1.bf16.msra.mxu0 %v7264_v13 }
 0x3a5   :  { %5577 = vmatprep.subr.bf16.mxu0 %v9731_v27  ;;  %5608 = vmatpush1.bf16.msra.mxu1 %v7183_v30 }
 0x3a6   :  { %5610 = vmatprep.subr.bf16.mxu1 %v7186_v33 }
 0x3a8   :  { %5579 = vmatpush1.bf16.msra.mxu0 %v7274_v28 }
 0x3a9   :  { %5580 = vmatprep.subr.bf16.mxu0 %v9731_v27  ;;  %5612 = vmatpush1.bf16.msra.mxu1 %v7190_v39 }
 0x3aa   :  { %5614 = vmatprep.subr.bf16.mxu1 %v7193_v42 }
 0x3ac   :  { %5582 = vmatpush1.bf16.msra.mxu0 %v7284_v46 }
 0x3ad   :  { %5583 = vmatprep.subr.bf16.mxu0 %v9731_v27  ;;  %5616 = vmatpush1.bf16.msra.mxu1 %v7197_v48 }
 0x3ae   :  { %5618 = vmatprep.subr.bf16.mxu1 %v7200_v52 }
 0x3b0   :  { %5585 = vmatpush1.bf16.msra.mxu0 %v7294_v4 }
 0x3b1   :  { %5586 = vmatprep.subr.bf16.mxu0 %v9731_v27  ;;  %5620 = vmatpush1.bf16.msra.mxu1 %v7204_v62 }
 0x3b2   :  { %5622 = vmatprep.subr.bf16.mxu1 %v7207_v3 }
 0x3b4   :  { %5588 = vmatpush1.bf16.msra.mxu0 %v7304_v25 }
 0x3b5   :  { %5626 = vmatprep.subr.bf16.mxu0 %v7213_v11  ;;  %5624 = vmatpush1.bf16.msra.mxu1 %v7211_v9 }
 0x3b6   :  { %5661 = vmatprep.subr.bf16.mxu1 %v9731_v27 }
 0x3b7   :  { %1121 = vmatmul.mubr.f32.vlgmr.msra.gmra.mrb[8].mxu0 %v7485_v56 }
 0x3b8   :  { %5628 = vmatpush1.bf16.msra.mxu0 %v7216_v20 }
 0x3b9   :  { %5630 = vmatprep.subr.bf16.mxu0 %v7222_v23 }
 0x3bc   :  { %5632 = vmatpush1.bf16.msra.mxu0 %v7228_v32 }
 0x3bd   :  { %5634 = vmatprep.subr.bf16.mxu0 %v7234_v35 }
 0x3c0   :  { %5636 = vmatpush1.bf16.msra.mxu0 %v7240_v43 }
 0x3c1   :  { %5638 = vmatprep.subr.bf16.mxu0 %v7246_v45 }
 0x3c4   :  { %5640 = vmatpush1.bf16.msra.mxu0 %v7250_v58 }
 0x3c5   :  { %5642 = vmatprep.subr.bf16.mxu0 %v7256_v61 }
 0x3c8   :  { %5644 = vmatpush1.bf16.msra.mxu0 %v7260_v8 }
 0x3c9   :  { %5646 = vmatprep.subr.bf16.mxu0 %v7266_v14 }
 0x3cc   :  { %5648 = vmatpush1.bf16.msra.mxu0 %v9732_v37 }
 0x3cd   :  { %5650 = vmatprep.subr.bf16.mxu0 %v9733_v17 }
 0x3d0   :  { %5652 = vmatpush1.bf16.msra.mxu0 %v9734_v31 }
 0x3d1   :  { %5654 = vmatprep.subr.bf16.mxu0 %v9735_v54 }
 0x3d4   :  { %5656 = vmatpush1.bf16.msra.mxu0 %v9736_v49 }
 0x3d5   :  { %5658 = vmatprep.subr.bf16.mxu0 %v9737_v1 }
 0x3d8   :  { %5660 = vmatpush1.bf16.msra.mxu0 %v9738_v63 }
 0x3d9   :  { %5689 = vmatprep.subr.bf16.mxu0 %v9739_v47 }
 0x466   :  { %v980_v19 = vpop.f32.mrb[6].mxu0  ;;  %v1051_v51 = vpop.f32.mrb[6].mxu1 }
 0x467   :  { %v1133_v36 = vrot.slane %v1051_v51, 7  ;;  %v982_v55 = vpop.f32.mrb[7].mxu0  ;;  %v1053_v56 = vpop.f32.mrb[7].mxu1  ;;  %v1181_v51 = vrot.slane %v7466_v50, 7 }
 0x468   :  { %v1134_v16 = vrot.slane %v1053_v56, 7 }
 0x469   :  { %v1143_v7 = vadd.f32 %v1133_v36, %v9740_v41 }
 0x46a   :  { %v1144_v29 = vadd.f32 %v1134_v16, %v9741_v38  ;;  %v568_v16 = vrot.slane %v7435_v40, 5  ;;  %v1131_v38 = vrot.slane %v980_v19, 7 }
 0x46b   :  { %v5037_v18 = vmul.f32 -1.442695, %v1143_v7  ;;  %6703 = vtanh.f32 %v1143_v7  ;;  %v567_v7 = vrot.slane %v7430_v53, 5 }
 0x46c   :  { %6705 = vtanh.f32 %v1144_v29 }
 0x46d   :  { %6707 = vpow2.f32 %v5037_v18  ;;  %v1132_v18 = vrot.slane %v982_v55, 7 }
 0x475   :  { %v6704_v49 = vpop.eup %6703 }
 0x476   :  { %v6706_v1 = vpop.eup %6705  ;;  %1188 = vrot.lane.b32.xlu0 %v6704_v49, %s7035_s3  ;;  %v7556_v49 = vsel %vm7449_vm5, %v7435_v40, %v568_v16 }
 0x477   :  { %1190 = vrot.lane.b32.xlu1 %v6706_v1, %s7035_s3  ;;  %v6708_v47 = vpop.eup %6707  ;;  %9742 = vst [vmem:[#allocation22_spill] sm:$0xff] %v7556_v49  ;;  %v7561_v1 = vsel %vm7438_vm4, %v7430_v53, %v567_v7  ;;  %v1142_v50 = vadd.f32 %v1132_v18, %v7556_v49 }
 0x478   :  { %v1161_v63 = vadd.f32 1.0, %v6708_v47  ;;  %9743 = vst [vmem:[#allocation23_spill] sm:$0xff] %v7561_v1 }
 0x47a   :  { %6709 = vrcp.f32 %v1161_v63  ;;  %v5036_v63 = vmul.f32 -1.442695, %v1142_v50 }
 0x47c   :  { %6711 = vpow2.f32 %v5036_v63 }
 0x484   :  { %v6710_v56 = vpop.eup %6709 }
 0x485   :  { %v1185_v54 = vmul.f32 %v6710_v56, %v1181_v51 }
 0x486   :  { %v6712_v55 = vpop.eup %6711 }
 0x487   :  { %v1153_v51 = vadd.f32 1.0, %v6712_v55 }
 0x48a   :  { %v1122_v36 = vpop.f32.mrb[8].mxu0 }
 0x48b   :  { %v1124_v41 = vpop.f32.mrb[9].mxu0 }
 0x48c   :  { %v1141_v41 = vadd.f32 %v1131_v38, %v7561_v1  ;;  %v1180_v38 = vrot.slane %v7462_v6, 7  ;;  %v5038_v6 = vmul.f32 -1.442695, %v1144_v29 }
 0x48e   :  { %v5035_v47 = vmul.f32 -1.442695, %v1141_v41 }
 0x490   :  { %6713 = vpow2.f32 %v5035_v47 }
 0x491   :  { %6715 = vrcp.f32 %v1153_v51 }
 0x49a   :  { %v6714_v19 = vpop.eup %6713 }
 0x49b   :  { %v1152_v56 = vadd.f32 1.0, %v6714_v19  ;;  %v6716_v26 = vpop.eup %6715 }
 0x49c   :  { %v1184_v41 = vmul.f32 %v6716_v26, %v1180_v38 }
 0x49d   :  { %6717 = vrcp.f32 %v1152_v56 }
 0x4a7   :  { %v6718_v10 = vpop.eup %6717 }
 0x4e8   :  { %v1189_v16 = vpop.permute.xlu0 %1188 }
 0x4e9   :  { %v1191_v40 = vpop.permute.xlu1 %1190 }
 0x4ea   :  { %v1192_v7 = vsel %vm872_vm6, %v1189_v16, %v1191_v40  ;;  %v1196_v53 = vmul.f32 %v6716_v26, %v1191_v40 }
 0x4eb   :  { %v1195_v18 = vmul.f32 %v6718_v10, %v1192_v7 }
 0x4ec   :  { %1201 = vrot.lane.b32.xlu1 %v1196_v53, %s7036_s27  ;;  %v1135_v53 = vrot.slane %v1122_v36, 7 }
 0x4ed   :  { %1199 = vrot.lane.b32.xlu0 %v1195_v18, %s7036_s27 }
 0x4ee   :  { %v1145_v26 = vadd.f32 %v1135_v53, %v7401_v0 }
 0x4f0   :  { %v5039_v51 = vmul.f32 -1.442695, %v1145_v26 }
 0x55e   :  { %v1202_v50 = vpop.permute.xlu1 %1201 }
 0x55f   :  { %v1200_v63 = vpop.permute.xlu0 %1199 }
 0x560   :  { %v1203_v47 = vsel %vm225_vm0, %v1200_v63, %v1202_v50  ;;  %v7570_v55 = vadd.f32 %v1200_v63, %v1184_v41 }
 0x561   :  { %v7572_v19 = vadd.f32 %v1203_v47, %v1185_v54 }
 0x562   :  { %6719 = vtanh.f32 %v7570_v55 }
 0x563   :  { %6721 = vtanh.f32 %v7572_v19 }
 0x564   :  { %6723 = vpow2.f32 %v5038_v6  ;;  %v9746_v6 = vld [vmem:[#allocation25_spill] sm:$0xff] }
 0x565   :  { %6725 = vpow2.f32 %v5039_v51  ;;  %v9747_v51 = vld [vmem:[#allocation26_spill] sm:$0xff] }
 0x56c   :  { %v6720_v40 = vpop.eup %6719 }
 0x56d   :  { %v6722_v10 = vpop.eup %6721  ;;  %1212 = vrot.lane.b32.xlu0 %v6720_v40, %s7037_s28 }
 0x56e   :  { %1214 = vrot.lane.b32.xlu1 %v6722_v10, %s7037_s28  ;;  %v6724_v56 = vpop.eup %6723 }
 0x56f   :  { %v6726_v54 = vpop.eup %6725  ;;  %v1172_v16 = vadd.f32 1.0, %v6724_v56  ;;  %v9748_v56 = vld [vmem:[#allocation27_spill] sm:$0xff] }
 0x570   :  { %v1173_v7 = vadd.f32 1.0, %v6726_v54  ;;  %v9749_v54 = vld [vmem:[#allocation28_spill] sm:$0xff] }
 0x571   :  { %6727 = vrcp.f32 %v1172_v16  ;;  %v9750_v16 = vld [vmem:[#allocation21_spill] sm:$0xff] }
 0x572   :  { %6729 = vrcp.f32 %v1173_v7 }
 0x57b   :  { %v6728_v18 = vpop.eup %6727 }
 0x57c   :  { %v6730_v63 = vpop.eup %6729 }
 0x5df   :  { %v1213_v38 = vpop.permute.xlu0 %1212 }
 0x5e0   :  { %v1219_v50 = vmul.f32 %v6728_v18, %v1213_v38  ;;  %v1215_v41 = vpop.permute.xlu1 %1214 }
 0x5e1   :  { %v1216_v47 = vsel %vm897_vm7, %v1213_v38, %v1215_v41 }
 0x5e2   :  { %v1220_v36 = vmul.f32 %v6730_v63, %v1216_v47  ;;  %v1223_v40 = vrot.slane %v1219_v50, 1  ;;  %v9751_v47 = vld [vmem:[#allocation33_spill] sm:$0xff] }
 0x5e4   :  { %v1224_v10 = vrot.slane %v1220_v36, 1  ;;  %1225 = vrot.lane.b32.xlu0 %v1223_v40, %s7038_s29  ;;  %v9752_v40 = vld [vmem:[#allocation34_spill] sm:$0xff] }
 0x5e6   :  { %1227 = vrot.lane.b32.xlu1 %v1224_v10, %s7038_s29 }
 0x656   :  { %v1226_v29 = vpop.permute.xlu0 %1225 }
 0x658   :  { %v7582_v53 = vpop.permute.xlu1 %1227 }
 0x659   :  { %9744 = vst [vmem:[#allocation24_spill] sm:$0xff] %v7582_v53  ;;  %5040 = vmatprep.mubr.msk.f32.mxu1 %vm225_vm0, %v7582_v53  ;;  %5041 = vmatprep.mubr.msk.f32.mxu0 %vm225_vm0, %v7582_v53  ;;  %v7590_v26 = vsel %vm909_vm8, %v1226_v29, %v7582_v53 }
 0x65a   :  { %9745 = vst [vmem:[#allocation52_spill] sm:$0xff] %v7590_v26  ;;  %1298 = vmatmul.mubr.f32.vlgmr.msra.gmra.mrb[8].mxu1 %v7590_v26  ;;  %1369 = vmatmul.mubr.f32.vlgmr.msra.gmra.mrb[10].mxu0 %v7590_v26 }
 0x65b   :  { %5663 = vmatpush1.bf16.msra.mxu1 %v7220_v22  ;;  %5042 = vmatprep.mubr.msk.f32.mxu1 %vm225_vm0, %v7582_v53 }
 0x65c   :  { %5664 = vmatprep.subr.bf16.mxu1 %v9731_v27  ;;  %5691 = vmatpush1.bf16.msra.mxu0 %v7150_v57 }
 0x65d   :  { %5693 = vmatprep.subr.bf16.mxu0 %v7153_v60 }
 0x65f   :  { %5666 = vmatpush1.bf16.msra.mxu1 %v7232_v34 }
 0x660   :  { %5667 = vmatprep.subr.bf16.mxu1 %v9731_v27  ;;  %5695 = vmatpush1.bf16.msra.mxu0 %v7159_v2 }
 0x661   :  { %5697 = vmatprep.subr.bf16.mxu0 %v7162_v5 }
 0x663   :  { %5669 = vmatpush1.bf16.msra.mxu1 %v7244_v44 }
 0x664   :  { %5670 = vmatprep.subr.bf16.mxu1 %v9731_v27  ;;  %5699 = vmatpush1.bf16.msra.mxu0 %v7169_v12 }
 0x665   :  { %5701 = vmatprep.subr.bf16.mxu0 %v7172_v15 }
 0x667   :  { %5672 = vmatpush1.bf16.msra.mxu1 %v7254_v59 }
 0x668   :  { %5673 = vmatprep.subr.bf16.mxu1 %v9731_v27  ;;  %5703 = vmatpush1.bf16.msra.mxu0 %v7176_v21 }
 0x669   :  { %5705 = vmatprep.subr.bf16.mxu0 %v7179_v24 }
 0x66b   :  { %5675 = vmatpush1.bf16.msra.mxu1 %v7264_v13 }
 0x66c   :  { %5676 = vmatprep.subr.bf16.mxu1 %v9731_v27  ;;  %5707 = vmatpush1.bf16.msra.mxu0 %v7183_v30 }
 0x66d   :  { %5709 = vmatprep.subr.bf16.mxu0 %v7186_v33 }
 0x66f   :  { %5678 = vmatpush1.bf16.msra.mxu1 %v7274_v28 }
 0x670   :  { %5679 = vmatprep.subr.bf16.mxu1 %v9731_v27  ;;  %5711 = vmatpush1.bf16.msra.mxu0 %v7190_v39 }
 0x671   :  { %5713 = vmatprep.subr.bf16.mxu0 %v7193_v42 }
 0x673   :  { %5681 = vmatpush1.bf16.msra.mxu1 %v7284_v46 }
 0x674   :  { %5682 = vmatprep.subr.bf16.mxu1 %v9731_v27  ;;  %5715 = vmatpush1.bf16.msra.mxu0 %v7197_v48 }
 0x675   :  { %5717 = vmatprep.subr.bf16.mxu0 %v7200_v52 }
 0x677   :  { %5684 = vmatpush1.bf16.msra.mxu1 %v7294_v4 }
 0x678   :  { %5685 = vmatprep.subr.bf16.mxu1 %v9731_v27  ;;  %5719 = vmatpush1.bf16.msra.mxu0 %v7204_v62 }
 0x679   :  { %5721 = vmatprep.subr.bf16.mxu0 %v7207_v3 }
 0x67b   :  { %5687 = vmatpush1.bf16.msra.mxu1 %v7304_v25 }
 0x67c   :  { %5725 = vmatprep.subr.bf16.mxu1 %v7213_v11  ;;  %5723 = vmatpush1.bf16.msra.mxu0 %v7211_v9 }
 0x67d   :  { %5760 = vmatprep.subr.bf16.mxu0 %v9731_v27 }
 0x67e   :  { %1440 = vmatmul.mubr.f32.vlgmr.msra.gmra.mrb[10].mxu1 %v7590_v26 }
 0x67f   :  { %5727 = vmatpush1.bf16.msra.mxu1 %v7216_v20 }
 0x680   :  { %5729 = vmatprep.subr.bf16.mxu1 %v7222_v23 }
 0x683   :  { %5731 = vmatpush1.bf16.msra.mxu1 %v7228_v32 }
 0x684   :  { %5733 = vmatprep.subr.bf16.mxu1 %v7234_v35 }
 0x687   :  { %5735 = vmatpush1.bf16.msra.mxu1 %v7240_v43 }
 0x688   :  { %5737 = vmatprep.subr.bf16.mxu1 %v7246_v45 }
 0x68b   :  { %5739 = vmatpush1.bf16.msra.mxu1 %v7250_v58 }
 0x68c   :  { %5741 = vmatprep.subr.bf16.mxu1 %v7256_v61 }
 0x68f   :  { %5743 = vmatpush1.bf16.msra.mxu1 %v7260_v8 }
 0x690   :  { %5745 = vmatprep.subr.bf16.mxu1 %v7266_v14 }
 0x693   :  { %5747 = vmatpush1.bf16.msra.mxu1 %v9732_v37 }
 0x694   :  { %5749 = vmatprep.subr.bf16.mxu1 %v9733_v17 }
 0x697   :  { %5751 = vmatpush1.bf16.msra.mxu1 %v9734_v31 }
 0x698   :  { %5753 = vmatprep.subr.bf16.mxu1 %v9746_v6 }
 0x69b   :  { %5755 = vmatpush1.bf16.msra.mxu1 %v9747_v51 }
 0x69c   :  { %5757 = vmatprep.subr.bf16.mxu1 %v9748_v56 }
 0x69f   :  { %5759 = vmatpush1.bf16.msra.mxu1 %v9749_v54 }
 0x6a0   :  { %5788 = vmatprep.subr.bf16.mxu1 %v9750_v16 }
 0x72d   :  { %v1299_v7 = vpop.f32.mrb[8].mxu1  ;;  %v1370_v18 = vpop.f32.mrb[10].mxu0 }
 0x72e   :  { %v1452_v38 = vrot.slane %v1370_v18, 6  ;;  %v1301_v50 = vpop.f32.mrb[9].mxu1  ;;  %v1372_v41 = vpop.f32.mrb[11].mxu0  ;;  %v1500_v18 = vrot.slane %v7572_v19, 7  ;;  %v1450_v54 = vrot.slane %v1299_v7, 6 }
 0x72f   :  { %v1453_v63 = vrot.slane %v1372_v41, 6 }
 0x730   :  { %v1462_v36 = vadd.f32 %v1452_v38, %v9751_v47 }
 0x731   :  { %v1463_v10 = vadd.f32 %v1453_v63, %v9752_v40  ;;  %v9753_v63 = vld [vmem:[#allocation45_spill] sm:$0xff] }
 0x732   :  { %v5045_v29 = vmul.f32 -1.442695, %v1462_v36  ;;  %6731 = vtanh.f32 %v1462_v36  ;;  %v583_v40 = vrot.slane %v9753_v63, 3  ;;  %v9754_v36 = vld [vmem:[#allocation44_spill] sm:$0xff] }
 0x733   :  { %6733 = vtanh.f32 %v1463_v10  ;;  %v582_v16 = vrot.slane %v9754_v36, 3 }
 0x734   :  { %6735 = vpow2.f32 %v5045_v29  ;;  %v1451_v29 = vrot.slane %v1301_v50, 6 }
 0x73c   :  { %v6732_v26 = vpop.eup %6731 }
 0x73d   :  { %v6734_v53 = vpop.eup %6733  ;;  %1507 = vrot.lane.b32.xlu0 %v6732_v26, %s7035_s3  ;;  %v7661_v26 = vsel %vm7449_vm5, %v9753_v63, %v583_v40 }
 0x73e   :  { %1509 = vrot.lane.b32.xlu1 %v6734_v53, %s7035_s3  ;;  %v6736_v0 = vpop.eup %6735  ;;  %9756 = vst [vmem:[#allocation25_spill] sm:$0xff] %v7661_v26  ;;  %v1461_v19 = vadd.f32 %v1451_v29, %v7661_v26 }
 0x73f   :  { %v1480_v1 = vadd.f32 1.0, %v6736_v0 }
 0x741   :  { %6737 = vrcp.f32 %v1480_v1  ;;  %v7666_v1 = vsel %vm7438_vm4, %v9754_v36, %v582_v16 }
 0x742   :  { %9758 = vst [vmem:[#allocation53_spill] sm:$0xff] %v7666_v1  ;;  %v1460_v53 = vadd.f32 %v1450_v54, %v7666_v1  ;;  %v1499_v54 = vrot.slane %v7570_v55, 7 }
 0x74b   :  { %v6738_v41 = vpop.eup %6737 }
 0x74c   :  { %v1504_v49 = vmul.f32 %v6738_v41, %v1500_v18  ;;  %v5043_v18 = vmul.f32 -1.442695, %v1460_v53 }
 0x751   :  { %v1441_v38 = vpop.f32.mrb[10].mxu1 }
 0x752   :  { %v1443_v47 = vpop.f32.mrb[11].mxu1  ;;  %v1454_v55 = vrot.slane %v1441_v38, 6 }
 0x753   :  { %v5044_v47 = vmul.f32 -1.442695, %v1461_v19 }
 0x755   :  { %6739 = vpow2.f32 %v5044_v47 }
 0x756   :  { %6741 = vpow2.f32 %v5043_v18 }
 0x75f   :  { %v6740_v50 = vpop.eup %6739 }
 0x760   :  { %v6742_v7 = vpop.eup %6741  ;;  %v1472_v41 = vadd.f32 1.0, %v6740_v50 }
 0x761   :  { %v1471_v51 = vadd.f32 1.0, %v6742_v7  ;;  %v5046_v7 = vmul.f32 -1.442695, %v1463_v10 }
 0x762   :  { %6743 = vrcp.f32 %v1472_v41 }
 0x763   :  { %6745 = vrcp.f32 %v1471_v51 }
 0x76c   :  { %v6744_v56 = vpop.eup %6743 }
 0x76d   :  { %v6746_v0 = vpop.eup %6745  ;;  %v1503_v53 = vmul.f32 %v6744_v56, %v1499_v54 }
 0x7af   :  { %v1508_v40 = vpop.permute.xlu0 %1507 }
 0x7b0   :  { %v1510_v63 = vpop.permute.xlu1 %1509 }
 0x7b1   :  { %v1511_v16 = vsel %vm872_vm6, %v1508_v40, %v1510_v63  ;;  %v1515_v36 = vmul.f32 %v6744_v56, %v1510_v63 }
 0x7b2   :  { %v1514_v29 = vmul.f32 %v6746_v0, %v1511_v16 }
 0x7b3   :  { %1520 = vrot.lane.b32.xlu1 %v1515_v36, %s7036_s27  ;;  %v9759_v36 = vld [vmem:[#allocation39_spill] sm:$0xff] }
 0x7b4   :  { %1518 = vrot.lane.b32.xlu0 %v1514_v29, %s7036_s27  ;;  %v1464_v56 = vadd.f32 %v1454_v55, %v9759_v36 }
 0x7b6   :  { %v5047_v41 = vmul.f32 -1.442695, %v1464_v56 }
 0x825   :  { %v1521_v19 = vpop.permute.xlu1 %1520 }
 0x826   :  { %v1519_v47 = vpop.permute.xlu0 %1518 }
 0x827   :  { %v1522_v18 = vsel %vm225_vm0, %v1519_v47, %v1521_v19  ;;  %v7675_v51 = vadd.f32 %v1519_v47, %v1503_v53 }
 0x828   :  { %v7677_v50 = vadd.f32 %v1522_v18, %v1504_v49 }
 0x829   :  { %6747 = vtanh.f32 %v7675_v51 }
 0x82a   :  { %6749 = vtanh.f32 %v7677_v50 }
 0x82b   :  { %6751 = vpow2.f32 %v5046_v7 }
 0x82c   :  { %6753 = vpow2.f32 %v5047_v41  ;;  %v9762_v41 = vld [vmem:[#allocation26_spill] sm:$0xff] }
 0x833   :  { %v6748_v63 = vpop.eup %6747 }
 0x834   :  { %v6750_v0 = vpop.eup %6749  ;;  %1531 = vrot.lane.b32.xlu0 %v6748_v63, %s7037_s28 }
 0x835   :  { %1533 = vrot.lane.b32.xlu1 %v6750_v0, %s7037_s28  ;;  %v6752_v40 = vpop.eup %6751 }
 0x836   :  { %v6754_v49 = vpop.eup %6753  ;;  %v1491_v16 = vadd.f32 1.0, %v6752_v40  ;;  %v9763_v40 = vld [vmem:[#allocation27_spill] sm:$0xff] }
 0x837   :  { %v1492_v29 = vadd.f32 1.0, %v6754_v49  ;;  %v9764_v49 = vld [vmem:[#allocation28_spill] sm:$0xff] }
 0x838   :  { %6755 = vrcp.f32 %v1491_v16  ;;  %v9765_v16 = vld [vmem:[#allocation21_spill] sm:$0xff] }
 0x839   :  { %6757 = vrcp.f32 %v1492_v29 }
 0x842   :  { %v6756_v54 = vpop.eup %6755 }
 0x843   :  { %v6758_v18 = vpop.eup %6757 }
 0x8a6   :  { %v1532_v19 = vpop.permute.xlu0 %1531 }
 0x8a7   :  { %v1538_v53 = vmul.f32 %v6756_v54, %v1532_v19  ;;  %v1534_v47 = vpop.permute.xlu1 %1533 }
 0x8a8   :  { %v1535_v63 = vsel %vm897_vm7, %v1532_v19, %v1534_v47 }
 0x8a9   :  { %v1539_v38 = vmul.f32 %v6758_v18, %v1535_v63  ;;  %v1542_v0 = vrot.slane %v1538_v53, 2  ;;  %v9766_v63 = vld [vmem:[#allocation35_spill] sm:$0xff] }
 0x8ab   :  { %v1543_v55 = vrot.slane %v1539_v38, 2  ;;  %1544 = vrot.lane.b32.xlu0 %v1542_v0, %s7038_s29  ;;  %v9767_v0 = vld [vmem:[#allocation36_spill] sm:$0xff] }
 0x8ad   :  { %1546 = vrot.lane.b32.xlu1 %v1543_v55, %s7038_s29 }
 0x91d   :  { %v1545_v10 = vpop.permute.xlu0 %1544 }
 0x91f   :  { %v7687_v56 = vpop.permute.xlu1 %1546 }
 0x920   :  { %9760 = vst [vmem:[#allocation54_spill] sm:$0xff] %v7687_v56  ;;  %5048 = vmatprep.mubr.msk.f32.mxu0 %vm225_vm0, %v7687_v56  ;;  %5049 = vmatprep.mubr.msk.f32.mxu1 %vm225_vm0, %v7687_v56  ;;  %v7695_v7 = vsel %vm909_vm8, %v1545_v10, %v7687_v56 }
 0x921   :  { %9761 = vst [vmem:[#allocation55_spill] sm:$0xff] %v7695_v7  ;;  %1617 = vmatmul.mubr.f32.vlgmr.msra.gmra.mrb[12].mxu0 %v7695_v7  ;;  %1688 = vmatmul.mubr.f32.vlgmr.msra.gmra.mrb[12].mxu1 %v7695_v7 }
 0x922   :  { %5762 = vmatpush1.bf16.msra.mxu0 %v7220_v22  ;;  %5050 = vmatprep.mubr.msk.f32.mxu0 %vm225_vm0, %v7687_v56 }
 0x923   :  { %5763 = vmatprep.subr.bf16.mxu0 %v9731_v27  ;;  %5790 = vmatpush1.bf16.msra.mxu1 %v7150_v57 }
 0x924   :  { %5792 = vmatprep.subr.bf16.mxu1 %v7153_v60 }
 0x926   :  { %5765 = vmatpush1.bf16.msra.mxu0 %v7232_v34 }
 0x927   :  { %5766 = vmatprep.subr.bf16.mxu0 %v9731_v27  ;;  %5794 = vmatpush1.bf16.msra.mxu1 %v7159_v2 }
 0x928   :  { %5796 = vmatprep.subr.bf16.mxu1 %v7162_v5 }
 0x92a   :  { %5768 = vmatpush1.bf16.msra.mxu0 %v7244_v44 }
 0x92b   :  { %5769 = vmatprep.subr.bf16.mxu0 %v9731_v27  ;;  %5798 = vmatpush1.bf16.msra.mxu1 %v7169_v12 }
 0x92c   :  { %5800 = vmatprep.subr.bf16.mxu1 %v7172_v15 }
 0x92e   :  { %5771 = vmatpush1.bf16.msra.mxu0 %v7254_v59 }
 0x92f   :  { %5772 = vmatprep.subr.bf16.mxu0 %v9731_v27  ;;  %5802 = vmatpush1.bf16.msra.mxu1 %v7176_v21 }
 0x930   :  { %5804 = vmatprep.subr.bf16.mxu1 %v7179_v24 }
 0x932   :  { %5774 = vmatpush1.bf16.msra.mxu0 %v7264_v13 }
 0x933   :  { %5775 = vmatprep.subr.bf16.mxu0 %v9731_v27  ;;  %5806 = vmatpush1.bf16.msra.mxu1 %v7183_v30 }
 0x934   :  { %5808 = vmatprep.subr.bf16.mxu1 %v7186_v33 }
 0x936   :  { %5777 = vmatpush1.bf16.msra.mxu0 %v7274_v28 }
 0x937   :  { %5778 = vmatprep.subr.bf16.mxu0 %v9731_v27  ;;  %5810 = vmatpush1.bf16.msra.mxu1 %v7190_v39 }
 0x938   :  { %5812 = vmatprep.subr.bf16.mxu1 %v7193_v42 }
 0x93a   :  { %5780 = vmatpush1.bf16.msra.mxu0 %v7284_v46 }
 0x93b   :  { %5781 = vmatprep.subr.bf16.mxu0 %v9731_v27  ;;  %5814 = vmatpush1.bf16.msra.mxu1 %v7197_v48 }
 0x93c   :  { %5816 = vmatprep.subr.bf16.mxu1 %v7200_v52 }
 0x93e   :  { %5783 = vmatpush1.bf16.msra.mxu0 %v7294_v4 }
 0x93f   :  { %5784 = vmatprep.subr.bf16.mxu0 %v9731_v27  ;;  %5818 = vmatpush1.bf16.msra.mxu1 %v7204_v62 }
 0x940   :  { %5820 = vmatprep.subr.bf16.mxu1 %v7207_v3 }
 0x942   :  { %5786 = vmatpush1.bf16.msra.mxu0 %v7304_v25 }
 0x943   :  { %5824 = vmatprep.subr.bf16.mxu0 %v7213_v11  ;;  %5822 = vmatpush1.bf16.msra.mxu1 %v7211_v9 }
 0x944   :  { %5859 = vmatprep.subr.bf16.mxu1 %v9731_v27 }
 0x945   :  { %1759 = vmatmul.mubr.f32.vlgmr.msra.gmra.mrb[14].mxu0 %v7695_v7 }
 0x946   :  { %5826 = vmatpush1.bf16.msra.mxu0 %v7216_v20 }
 0x947   :  { %5828 = vmatprep.subr.bf16.mxu0 %v7222_v23 }
 0x94a   :  { %5830 = vmatpush1.bf16.msra.mxu0 %v7228_v32 }
 0x94b   :  { %5832 = vmatprep.subr.bf16.mxu0 %v7234_v35 }
 0x94e   :  { %5834 = vmatpush1.bf16.msra.mxu0 %v7240_v43 }
 0x94f   :  { %5836 = vmatprep.subr.bf16.mxu0 %v7246_v45 }
 0x952   :  { %5838 = vmatpush1.bf16.msra.mxu0 %v7250_v58 }
 0x953   :  { %5840 = vmatprep.subr.bf16.mxu0 %v7256_v61 }
 0x956   :  { %5842 = vmatpush1.bf16.msra.mxu0 %v7260_v8 }
 0x957   :  { %5844 = vmatprep.subr.bf16.mxu0 %v7266_v14 }
 0x95a   :  { %5846 = vmatpush1.bf16.msra.mxu0 %v9732_v37 }
 0x95b   :  { %5848 = vmatprep.subr.bf16.mxu0 %v9733_v17 }
 0x95e   :  { %5850 = vmatpush1.bf16.msra.mxu0 %v9734_v31 }
 0x95f   :  { %5852 = vmatprep.subr.bf16.mxu0 %v9746_v6 }
 0x962   :  { %5854 = vmatpush1.bf16.msra.mxu0 %v9762_v41 }
 0x963   :  { %5856 = vmatprep.subr.bf16.mxu0 %v9763_v40 }
 0x966   :  { %5858 = vmatpush1.bf16.msra.mxu0 %v9764_v49 }
 0x967   :  { %5887 = vmatprep.subr.bf16.mxu0 %v9765_v16 }
 0x9f4   :  { %v1618_v29 = vpop.f32.mrb[12].mxu0  ;;  %v1689_v54 = vpop.f32.mrb[12].mxu1 }
 0x9f5   :  { %v1771_v19 = vrot.slane %v1689_v54, 5  ;;  %v1620_v53 = vpop.f32.mrb[13].mxu0  ;;  %v1691_v47 = vpop.f32.mrb[13].mxu1  ;;  %v1819_v54 = vrot.slane %v7677_v50, 7  ;;  %v1769_v49 = vrot.slane %v1618_v29, 5 }
 0x9f6   :  { %v1772_v18 = vrot.slane %v1691_v47, 5 }
 0x9f7   :  { %v1781_v38 = vadd.f32 %v1771_v19, %v9766_v63 }
 0x9f8   :  { %v1782_v55 = vadd.f32 %v1772_v18, %v9767_v0  ;;  %v9768_v18 = vld [vmem:[#allocation45_spill] sm:$0xff] }
 0x9f9   :  { %v5053_v10 = vmul.f32 -1.442695, %v1781_v38  ;;  %6759 = vtanh.f32 %v1781_v38  ;;  %v598_v0 = vrot.slane %v9768_v18, 1  ;;  %v9769_v38 = vld [vmem:[#allocation44_spill] sm:$0xff] }
 0x9fa   :  { %6761 = vtanh.f32 %v1782_v55  ;;  %v597_v16 = vrot.slane %v9769_v38, 1 }
 0x9fb   :  { %6763 = vpow2.f32 %v5053_v10  ;;  %v1770_v10 = vrot.slane %v1620_v53, 5 }
 0xa03   :  { %v6760_v7 = vpop.eup %6759 }
 0xa04   :  { %v6762_v56 = vpop.eup %6761  ;;  %1826 = vrot.lane.b32.xlu0 %v6760_v7, %s7035_s3  ;;  %v7766_v7 = vsel %vm7449_vm5, %v9768_v18, %v598_v0 }
 0xa05   :  { %1828 = vrot.lane.b32.xlu1 %v6762_v56, %s7035_s3  ;;  %v6764_v36 = vpop.eup %6763  ;;  %9771 = vst [vmem:[#allocation45_spill] sm:$0xff] %v7766_v7  ;;  %v1780_v50 = vadd.f32 %v1770_v10, %v7766_v7 }
 0xa06   :  { %v1799_v1 = vadd.f32 1.0, %v6764_v36 }
 0xa08   :  { %6765 = vrcp.f32 %v1799_v1  ;;  %v7771_v1 = vsel %vm7438_vm4, %v9769_v38, %v597_v16 }
 0xa09   :  { %9773 = vst [vmem:[#allocation44_spill] sm:$0xff] %v7771_v1  ;;  %v1779_v56 = vadd.f32 %v1769_v49, %v7771_v1  ;;  %v1818_v49 = vrot.slane %v7675_v51, 7 }
 0xa12   :  { %v6766_v47 = vpop.eup %6765 }
 0xa13   :  { %v1823_v26 = vmul.f32 %v6766_v47, %v1819_v54  ;;  %v5051_v54 = vmul.f32 -1.442695, %v1779_v56 }
 0xa18   :  { %v1760_v19 = vpop.f32.mrb[14].mxu0 }
 0xa19   :  { %v1762_v63 = vpop.f32.mrb[15].mxu0  ;;  %v1773_v51 = vrot.slane %v1760_v19, 5 }
 0xa1a   :  { %v5052_v63 = vmul.f32 -1.442695, %v1780_v50 }
 0xa1c   :  { %6767 = vpow2.f32 %v5052_v63 }
 0xa1d   :  { %6769 = vpow2.f32 %v5051_v54 }
 0xa26   :  { %v6768_v53 = vpop.eup %6767 }
 0xa27   :  { %v6770_v29 = vpop.eup %6769  ;;  %v1791_v47 = vadd.f32 1.0, %v6768_v53 }
 0xa28   :  { %v1790_v41 = vadd.f32 1.0, %v6770_v29  ;;  %v9774_v29 = vld [vmem:[#allocation40_spill] sm:$0xff] }
 0xa29   :  { %6771 = vrcp.f32 %v1791_v47  ;;  %v1783_v47 = vadd.f32 %v1773_v51, %v9774_v29 }
 0xa2a   :  { %6773 = vrcp.f32 %v1790_v41 }
 0xa33   :  { %v6772_v18 = vpop.eup %6771 }
 0xa34   :  { %v6774_v36 = vpop.eup %6773  ;;  %v1822_v56 = vmul.f32 %v6772_v18, %v1818_v49 }
 0xa76   :  { %v1827_v0 = vpop.permute.xlu0 %1826 }
 0xa77   :  { %v1829_v40 = vpop.permute.xlu1 %1828 }
 0xa78   :  { %v1830_v16 = vsel %vm872_vm6, %v1827_v0, %v1829_v40  ;;  %v1834_v38 = vmul.f32 %v6772_v18, %v1829_v40  ;;  %v5054_v0 = vmul.f32 -1.442695, %v1782_v55  ;;  %v5055_v18 = vmul.f32 -1.442695, %v1783_v47 }
 0xa79   :  { %v1833_v10 = vmul.f32 %v6774_v36, %v1830_v16 }
 0xa7a   :  { %1839 = vrot.lane.b32.xlu1 %v1834_v38, %s7036_s27 }
 0xa7b   :  { %1837 = vrot.lane.b32.xlu0 %v1833_v10, %s7036_s27 }
 0xaec   :  { %v1840_v50 = vpop.permute.xlu1 %1839 }
 0xaed   :  { %v1838_v63 = vpop.permute.xlu0 %1837 }
 0xaee   :  { %v1841_v54 = vsel %vm225_vm0, %v1838_v63, %v1840_v50  ;;  %v7780_v41 = vadd.f32 %v1838_v63, %v1822_v56 }
 0xaef   :  { %v7782_v53 = vadd.f32 %v1841_v54, %v1823_v26 }
 0xaf0   :  { %6775 = vtanh.f32 %v7780_v41 }
 0xaf1   :  { %6777 = vtanh.f32 %v7782_v53 }
 0xaf2   :  { %6779 = vpow2.f32 %v5054_v0 }
 0xaf3   :  { %6781 = vpow2.f32 %v5055_v18  ;;  %v9777_v18 = vld [vmem:[#allocation26_spill] sm:$0xff] }
 0xafa   :  { %v6776_v40 = vpop.eup %6775 }
 0xafb   :  { %v6778_v36 = vpop.eup %6777  ;;  %1850 = vrot.lane.b32.xlu0 %v6776_v40, %s7037_s28 }
 0xafc   :  { %1852 = vrot.lane.b32.xlu1 %v6778_v36, %s7037_s28  ;;  %v6780_v16 = vpop.eup %6779 }
 0xafd   :  { %v6782_v26 = vpop.eup %6781  ;;  %v1810_v38 = vadd.f32 1.0, %v6780_v16  ;;  %v9778_v16 = vld [vmem:[#allocation27_spill] sm:$0xff] }
 0xafe   :  { %v1811_v10 = vadd.f32 1.0, %v6782_v26  ;;  %v9779_v26 = vld [vmem:[#allocation28_spill] sm:$0xff] }
 0xaff   :  { %6783 = vrcp.f32 %v1810_v38  ;;  %v9780_v38 = vld [vmem:[#allocation21_spill] sm:$0xff] }
 0xb00   :  { %6785 = vrcp.f32 %v1811_v10 }
 0xb09   :  { %v6784_v49 = vpop.eup %6783 }
 0xb0a   :  { %v6786_v54 = vpop.eup %6785 }
 0xb6d   :  { %v1851_v50 = vpop.permute.xlu0 %1850 }
 0xb6e   :  { %v1857_v56 = vmul.f32 %v6784_v49, %v1851_v50  ;;  %v1853_v63 = vpop.permute.xlu1 %1852 }
 0xb6f   :  { %v1854_v40 = vsel %vm897_vm7, %v1851_v50, %v1853_v63 }
 0xb70   :  { %v1858_v19 = vmul.f32 %v6786_v54, %v1854_v40  ;;  %v1861_v36 = vrot.slane %v1857_v56, 3  ;;  %v9781_v40 = vld [vmem:[#allocation41_spill] sm:$0xff] }
 0xb72   :  { %v1862_v51 = vrot.slane %v1858_v19, 3  ;;  %1863 = vrot.lane.b32.xlu0 %v1861_v36, %s7038_s29  ;;  %v9782_v36 = vld [vmem:[#allocation42_spill] sm:$0xff] }
 0xb74   :  { %1865 = vrot.lane.b32.xlu1 %v1862_v51, %s7038_s29 }
 0xbe4   :  { %v1864_v55 = vpop.permute.xlu0 %1863 }
 0xbe6   :  { %v7792_v47 = vpop.permute.xlu1 %1865 }
 0xbe7   :  { %9775 = vst [vmem:[#allocation56_spill] sm:$0xff] %v7792_v47  ;;  %5056 = vmatprep.mubr.msk.f32.mxu1 %vm225_vm0, %v7792_v47  ;;  %5057 = vmatprep.mubr.msk.f32.mxu0 %vm225_vm0, %v7792_v47  ;;  %v7800_v0 = vsel %vm909_vm8, %v1864_v55, %v7792_v47 }
 0xbe8   :  { %9776 = vst [vmem:[#allocation57_spill] sm:$0xff] %v7800_v0  ;;  %1936 = vmatmul.mubr.f32.vlgmr.msra.gmra.mrb[14].mxu1 %v7800_v0  ;;  %2007 = vmatmul.mubr.f32.vlgmr.msra.gmra.mrb[16].mxu0 %v7800_v0 }
 0xbe9   :  { %5861 = vmatpush1.bf16.msra.mxu1 %v7220_v22  ;;  %5058 = vmatprep.mubr.msk.f32.mxu1 %vm225_vm0, %v7792_v47 }
 0xbea   :  { %5862 = vmatprep.subr.bf16.mxu1 %v9731_v27  ;;  %5889 = vmatpush1.bf16.msra.mxu0 %v7150_v57 }
 0xbeb   :  { %5891 = vmatprep.subr.bf16.mxu0 %v7153_v60 }
 0xbed   :  { %5864 = vmatpush1.bf16.msra.mxu1 %v7232_v34 }
 0xbee   :  { %5865 = vmatprep.subr.bf16.mxu1 %v9731_v27  ;;  %5893 = vmatpush1.bf16.msra.mxu0 %v7159_v2 }
 0xbef   :  { %5895 = vmatprep.subr.bf16.mxu0 %v7162_v5 }
 0xbf1   :  { %5867 = vmatpush1.bf16.msra.mxu1 %v7244_v44 }
 0xbf2   :  { %5868 = vmatprep.subr.bf16.mxu1 %v9731_v27  ;;  %5897 = vmatpush1.bf16.msra.mxu0 %v7169_v12 }
 0xbf3   :  { %5899 = vmatprep.subr.bf16.mxu0 %v7172_v15 }
 0xbf5   :  { %5870 = vmatpush1.bf16.msra.mxu1 %v7254_v59 }
 0xbf6   :  { %5871 = vmatprep.subr.bf16.mxu1 %v9731_v27  ;;  %5901 = vmatpush1.bf16.msra.mxu0 %v7176_v21 }
 0xbf7   :  { %5903 = vmatprep.subr.bf16.mxu0 %v7179_v24 }
 0xbf9   :  { %5873 = vmatpush1.bf16.msra.mxu1 %v7264_v13 }
 0xbfa   :  { %5874 = vmatprep.subr.bf16.mxu1 %v9731_v27  ;;  %5905 = vmatpush1.bf16.msra.mxu0 %v7183_v30 }
 0xbfb   :  { %5907 = vmatprep.subr.bf16.mxu0 %v7186_v33 }
 0xbfd   :  { %5876 = vmatpush1.bf16.msra.mxu1 %v7274_v28 }
 0xbfe   :  { %5877 = vmatprep.subr.bf16.mxu1 %v9731_v27  ;;  %5909 = vmatpush1.bf16.msra.mxu0 %v7190_v39 }
 0xbff   :  { %5911 = vmatprep.subr.bf16.mxu0 %v7193_v42 }
 0xc01   :  { %5879 = vmatpush1.bf16.msra.mxu1 %v7284_v46 }
 0xc02   :  { %5880 = vmatprep.subr.bf16.mxu1 %v9731_v27  ;;  %5913 = vmatpush1.bf16.msra.mxu0 %v7197_v48 }
 0xc03   :  { %5915 = vmatprep.subr.bf16.mxu0 %v7200_v52 }
 0xc05   :  { %5882 = vmatpush1.bf16.msra.mxu1 %v7294_v4 }
 0xc06   :  { %5883 = vmatprep.subr.bf16.mxu1 %v9731_v27  ;;  %5917 = vmatpush1.bf16.msra.mxu0 %v7204_v62 }
 0xc07   :  { %5919 = vmatprep.subr.bf16.mxu0 %v7207_v3 }
 0xc09   :  { %5885 = vmatpush1.bf16.msra.mxu1 %v7304_v25 }
 0xc0a   :  { %5923 = vmatprep.subr.bf16.mxu1 %v7213_v11  ;;  %5921 = vmatpush1.bf16.msra.mxu0 %v7211_v9 }
 0xc0b   :  { %5958 = vmatprep.subr.bf16.mxu0 %v9731_v27 }
 0xc0c   :  { %2078 = vmatmul.mubr.f32.vlgmr.msra.gmra.mrb[16].mxu1 %v7800_v0 }
 0xc0d   :  { %5925 = vmatpush1.bf16.msra.mxu1 %v7216_v20 }
 0xc0e   :  { %5927 = vmatprep.subr.bf16.mxu1 %v7222_v23 }
 0xc11   :  { %5929 = vmatpush1.bf16.msra.mxu1 %v7228_v32 }
 0xc12   :  { %5931 = vmatprep.subr.bf16.mxu1 %v7234_v35 }
 0xc15   :  { %5933 = vmatpush1.bf16.msra.mxu1 %v7240_v43 }
 0xc16   :  { %5935 = vmatprep.subr.bf16.mxu1 %v7246_v45 }
 0xc19   :  { %5937 = vmatpush1.bf16.msra.mxu1 %v7250_v58 }
 0xc1a   :  { %5939 = vmatprep.subr.bf16.mxu1 %v7256_v61 }
 0xc1d   :  { %5941 = vmatpush1.bf16.msra.mxu1 %v7260_v8 }
 0xc1e   :  { %5943 = vmatprep.subr.bf16.mxu1 %v7266_v14 }
 0xc21   :  { %5945 = vmatpush1.bf16.msra.mxu1 %v9732_v37 }
 0xc22   :  { %5947 = vmatprep.subr.bf16.mxu1 %v9733_v17 }
 0xc25   :  { %5949 = vmatpush1.bf16.msra.mxu1 %v9734_v31 }
 0xc26   :  { %5951 = vmatprep.subr.bf16.mxu1 %v9746_v6 }
 0xc29   :  { %5953 = vmatpush1.bf16.msra.mxu1 %v9777_v18 }
 0xc2a   :  { %5955 = vmatprep.subr.bf16.mxu1 %v9778_v16 }
 0xc2d   :  { %5957 = vmatpush1.bf16.msra.mxu1 %v9779_v26 }
 0xc2e   :  { %5986 = vmatprep.subr.bf16.mxu1 %v9780_v38 }
 0xcbb   :  { %v1937_v10 = vpop.f32.mrb[14].mxu1  ;;  %v2008_v49 = vpop.f32.mrb[16].mxu0 }
 0xcbc   :  { %v2090_v50 = vrot.slane %v2008_v49, 4  ;;  %v1939_v56 = vpop.f32.mrb[15].mxu1  ;;  %v2010_v63 = vpop.f32.mrb[17].mxu0  ;;  %v2138_v49 = vrot.slane %v7782_v53, 7 }
 0xcbd   :  { %v2091_v54 = vrot.slane %v2010_v63, 4 }
 0xcbe   :  { %v2100_v19 = vadd.f32 %v2090_v50, %v9781_v40 }
 0xcbf   :  { %v2101_v51 = vadd.f32 %v2091_v54, %v9782_v36  ;;  %v2089_v54 = vrot.slane %v1939_v56, 4  ;;  %v2088_v36 = vrot.slane %v1937_v10, 4 }
 0xcc0   :  { %v5061_v55 = vmul.f32 -1.442695, %v2100_v19  ;;  %6787 = vtanh.f32 %v2100_v19  ;;  %v9783_v19 = vld [vmem:[#allocation49_spill] sm:$0xff] }
 0xcc1   :  { %6789 = vtanh.f32 %v2101_v51  ;;  %v2099_v38 = vadd.f32 %v2089_v54, %v9783_v19 }
 0xcc2   :  { %6791 = vpow2.f32 %v5061_v55  ;;  %v9784_v55 = vld [vmem:[#allocation47_spill] sm:$0xff] }
 0xcc3   :  { %v2098_v26 = vadd.f32 %v2088_v36, %v9784_v55  ;;  %v5060_v16 = vmul.f32 -1.442695, %v2099_v38 }
 0xcc5   :  { %v5059_v18 = vmul.f32 -1.442695, %v2098_v26 }
 0xcca   :  { %v6788_v47 = vpop.eup %6787 }
 0xccb   :  { %v6790_v0 = vpop.eup %6789  ;;  %2145 = vrot.lane.b32.xlu0 %v6788_v47, %s7035_s3 }
 0xccc   :  { %2147 = vrot.lane.b32.xlu1 %v6790_v0, %s7035_s3  ;;  %v6792_v29 = vpop.eup %6791 }
 0xccd   :  { %v2118_v1 = vadd.f32 1.0, %v6792_v29 }
 0xccf   :  { %6793 = vrcp.f32 %v2118_v1 }
 0xcd0   :  { %6795 = vpow2.f32 %v5060_v16 }
 0xcd1   :  { %6797 = vpow2.f32 %v5059_v18  ;;  %v2137_v18 = vrot.slane %v7780_v41, 7 }
 0xcd9   :  { %v6794_v63 = vpop.eup %6793 }
 0xcda   :  { %v2142_v7 = vmul.f32 %v6794_v63, %v2138_v49  ;;  %v6796_v47 = vpop.eup %6795 }
 0xcdb   :  { %v6798_v0 = vpop.eup %6797  ;;  %v2110_v29 = vadd.f32 1.0, %v6796_v47 }
 0xcdc   :  { %v2109_v1 = vadd.f32 1.0, %v6798_v0 }
 0xcdd   :  { %6799 = vrcp.f32 %v2110_v29  ;;  %v9785_v29 = vld [vmem:[#allocation37_spill] sm:$0xff] }
 0xcde   :  { %6801 = vrcp.f32 %v2109_v1 }
 0xcdf   :  { %v2079_v50 = vpop.f32.mrb[16].mxu1 }
 0xce0   :  { %v2081_v40 = vpop.f32.mrb[17].mxu1  ;;  %v2092_v41 = vrot.slane %v2079_v50, 4 }
 0xce2   :  { %v2102_v1 = vadd.f32 %v2092_v41, %v9785_v29  ;;  %v9788_v29 = vld [vmem:[#allocation26_spill] sm:$0xff] }
 0xce7   :  { %v6800_v49 = vpop.eup %6799 }
 0xce8   :  { %v6802_v40 = vpop.eup %6801  ;;  %v2141_v26 = vmul.f32 %v6800_v49, %v2137_v18 }
 0xd3d   :  { %v2146_v53 = vpop.permute.xlu0 %2145 }
 0xd3e   :  { %v2148_v63 = vpop.permute.xlu1 %2147 }
 0xd3f   :  { %v2149_v10 = vsel %vm872_vm6, %v2146_v53, %v2148_v63  ;;  %v2153_v56 = vmul.f32 %v6800_v49, %v2148_v63  ;;  %v5062_v53 = vmul.f32 -1.442695, %v2101_v51  ;;  %v5063_v49 = vmul.f32 -1.442695, %v2102_v1  ;;  %v9789_v1 = vld [vmem:[#allocation27_spill] sm:$0xff] }
 0xd40   :  { %v2152_v54 = vmul.f32 %v6802_v40, %v2149_v10 }
 0xd41   :  { %2158 = vrot.lane.b32.xlu1 %v2153_v56, %s7036_s27 }
 0xd42   :  { %2156 = vrot.lane.b32.xlu0 %v2152_v54, %s7036_s27 }
 0xdb3   :  { %v2159_v16 = vpop.permute.xlu1 %2158 }
 0xdb4   :  { %v2157_v38 = vpop.permute.xlu0 %2156 }
 0xdb5   :  { %v2160_v36 = vsel %vm225_vm0, %v2157_v38, %v2159_v16  ;;  %v7873_v19 = vadd.f32 %v2157_v38, %v2141_v26 }
 0xdb6   :  { %v7875_v55 = vadd.f32 %v2160_v36, %v2142_v7 }
 0xdb7   :  { %6803 = vtanh.f32 %v7873_v19 }
 0xdb8   :  { %6805 = vtanh.f32 %v7875_v55 }
 0xdb9   :  { %6807 = vpow2.f32 %v5062_v53  ;;  %v9790_v53 = vld [vmem:[#allocation28_spill] sm:$0xff] }
 0xdba   :  { %6809 = vpow2.f32 %v5063_v49  ;;  %v9791_v49 = vld [vmem:[#allocation21_spill] sm:$0xff] }
 0xdc1   :  { %v6804_v47 = vpop.eup %6803 }
 0xdc2   :  { %v6806_v0 = vpop.eup %6805  ;;  %2169 = vrot.lane.b32.xlu0 %v6804_v47, %s7037_s28 }
 0xdc3   :  { %2171 = vrot.lane.b32.xlu1 %v6806_v0, %s7037_s28  ;;  %v6808_v63 = vpop.eup %6807 }
 0xdc4   :  { %v6810_v7 = vpop.eup %6809  ;;  %v2129_v40 = vadd.f32 1.0, %v6808_v63 }
 0xdc5   :  { %v2130_v10 = vadd.f32 1.0, %v6810_v7 }
 0xdc6   :  { %6811 = vrcp.f32 %v2129_v40 }
 0xdc7   :  { %6813 = vrcp.f32 %v2130_v10 }
 0xdd0   :  { %v6812_v56 = vpop.eup %6811 }
 0xdd1   :  { %v6814_v26 = vpop.eup %6813 }
 0xe34   :  { %v2170_v54 = vpop.permute.xlu0 %2169 }
 0xe35   :  { %v2176_v18 = vmul.f32 %v6812_v56, %v2170_v54  ;;  %v2172_v16 = vpop.permute.xlu1 %2171 }
 0xe36   :  { %v2173_v38 = vsel %vm897_vm7, %v2170_v54, %v2172_v16 }
 0xe37   :  { %v2177_v50 = vmul.f32 %v6814_v26, %v2173_v38  ;;  %v2180_v36 = vrot.slane %v2176_v18, 4  ;;  %v9792_v18 = vld [vmem:[#allocation31_spill] sm:$0xff]  ;;  %v9793_v26 = vld [vmem:[#allocation32_spill] sm:$0xff] }
 0xe39   :  { %v2181_v47 = vrot.slane %v2177_v50, 4  ;;  %2182 = vrot.lane.b32.xlu0 %v2180_v36, %s7038_s29 }
 0xe3b   :  { %2184 = vrot.lane.b32.xlu1 %v2181_v47, %s7038_s29 }
 0xeab   :  { %v2183_v51 = vpop.permute.xlu0 %2182 }
 0xead   :  { %v7885_v0 = vpop.permute.xlu1 %2184 }
 0xeae   :  { %9786 = vst [vmem:[#allocation41_spill] sm:$0xff] %v7885_v0  ;;  %5064 = vmatprep.mubr.msk.f32.mxu0 %vm225_vm0, %v7885_v0  ;;  %5065 = vmatprep.mubr.msk.f32.mxu1 %vm225_vm0, %v7885_v0  ;;  %v7893_v41 = vsel %vm909_vm8, %v2183_v51, %v7885_v0 }
 0xeaf   :  { %9787 = vst [vmem:[#allocation42_spill] sm:$0xff] %v7893_v41  ;;  %2255 = vmatmul.mubr.f32.vlgmr.msra.gmra.mrb[18].mxu0 %v7893_v41  ;;  %2326 = vmatmul.mubr.f32.vlgmr.msra.gmra.mrb[18].mxu1 %v7893_v41 }
 0xeb0   :  { %5960 = vmatpush1.bf16.msra.mxu0 %v7220_v22  ;;  %5066 = vmatprep.mubr.msk.f32.mxu0 %vm225_vm0, %v7885_v0 }
 0xeb1   :  { %5961 = vmatprep.subr.bf16.mxu0 %v9731_v27  ;;  %5988 = vmatpush1.bf16.msra.mxu1 %v7150_v57 }
 0xeb2   :  { %5990 = vmatprep.subr.bf16.mxu1 %v7153_v60 }
 0xeb4   :  { %5963 = vmatpush1.bf16.msra.mxu0 %v7232_v34 }
 0xeb5   :  { %5964 = vmatprep.subr.bf16.mxu0 %v9731_v27  ;;  %5992 = vmatpush1.bf16.msra.mxu1 %v7159_v2 }
 0xeb6   :  { %5994 = vmatprep.subr.bf16.mxu1 %v7162_v5 }
 0xeb8   :  { %5966 = vmatpush1.bf16.msra.mxu0 %v7244_v44 }
 0xeb9   :  { %5967 = vmatprep.subr.bf16.mxu0 %v9731_v27  ;;  %5996 = vmatpush1.bf16.msra.mxu1 %v7169_v12 }
 0xeba   :  { %5998 = vmatprep.subr.bf16.mxu1 %v7172_v15 }
 0xebc   :  { %5969 = vmatpush1.bf16.msra.mxu0 %v7254_v59 }
 0xebd   :  { %5970 = vmatprep.subr.bf16.mxu0 %v9731_v27  ;;  %6000 = vmatpush1.bf16.msra.mxu1 %v7176_v21 }
 0xebe   :  { %6002 = vmatprep.subr.bf16.mxu1 %v7179_v24 }
 0xec0   :  { %5972 = vmatpush1.bf16.msra.mxu0 %v7264_v13 }
 0xec1   :  { %5973 = vmatprep.subr.bf16.mxu0 %v9731_v27  ;;  %6004 = vmatpush1.bf16.msra.mxu1 %v7183_v30 }
 0xec2   :  { %6006 = vmatprep.subr.bf16.mxu1 %v7186_v33 }
 0xec4   :  { %5975 = vmatpush1.bf16.msra.mxu0 %v7274_v28 }
 0xec5   :  { %5976 = vmatprep.subr.bf16.mxu0 %v9731_v27  ;;  %6008 = vmatpush1.bf16.msra.mxu1 %v7190_v39 }
 0xec6   :  { %6010 = vmatprep.subr.bf16.mxu1 %v7193_v42 }
 0xec8   :  { %5978 = vmatpush1.bf16.msra.mxu0 %v7284_v46 }
 0xec9   :  { %5979 = vmatprep.subr.bf16.mxu0 %v9731_v27  ;;  %6012 = vmatpush1.bf16.msra.mxu1 %v7197_v48 }
 0xeca   :  { %6014 = vmatprep.subr.bf16.mxu1 %v7200_v52 }
 0xecc   :  { %5981 = vmatpush1.bf16.msra.mxu0 %v7294_v4 }
 0xecd   :  { %5982 = vmatprep.subr.bf16.mxu0 %v9731_v27  ;;  %6016 = vmatpush1.bf16.msra.mxu1 %v7204_v62 }
 0xece   :  { %6018 = vmatprep.subr.bf16.mxu1 %v7207_v3 }
 0xed0   :  { %5984 = vmatpush1.bf16.msra.mxu0 %v7304_v25 }
 0xed1   :  { %6022 = vmatprep.subr.bf16.mxu0 %v7213_v11  ;;  %6020 = vmatpush1.bf16.msra.mxu1 %v7211_v9 }
 0xed2   :  { %6057 = vmatprep.subr.bf16.mxu1 %v9731_v27 }
 0xed3   :  { %2397 = vmatmul.mubr.f32.vlgmr.msra.gmra.mrb[20].mxu0 %v7893_v41 }
 0xed4   :  { %6024 = vmatpush1.bf16.msra.mxu0 %v7216_v20 }
 0xed5   :  { %6026 = vmatprep.subr.bf16.mxu0 %v7222_v23 }
 0xed8   :  { %6028 = vmatpush1.bf16.msra.mxu0 %v7228_v32 }
 0xed9   :  { %6030 = vmatprep.subr.bf16.mxu0 %v7234_v35 }
 0xedc   :  { %6032 = vmatpush1.bf16.msra.mxu0 %v7240_v43 }
 0xedd   :  { %6034 = vmatprep.subr.bf16.mxu0 %v7246_v45 }
 0xee0   :  { %6036 = vmatpush1.bf16.msra.mxu0 %v7250_v58 }
 0xee1   :  { %6038 = vmatprep.subr.bf16.mxu0 %v7256_v61 }
 0xee4   :  { %6040 = vmatpush1.bf16.msra.mxu0 %v7260_v8 }
 0xee5   :  { %6042 = vmatprep.subr.bf16.mxu0 %v7266_v14 }
 0xee8   :  { %6044 = vmatpush1.bf16.msra.mxu0 %v9732_v37 }
 0xee9   :  { %6046 = vmatprep.subr.bf16.mxu0 %v9733_v17 }
 0xeec   :  { %6048 = vmatpush1.bf16.msra.mxu0 %v9734_v31 }
 0xeed   :  { %6050 = vmatprep.subr.bf16.mxu0 %v9746_v6 }
 0xef0   :  { %6052 = vmatpush1.bf16.msra.mxu0 %v9788_v29 }
 0xef1   :  { %6054 = vmatprep.subr.bf16.mxu0 %v9789_v1 }
 0xef4   :  { %6056 = vmatpush1.bf16.msra.mxu0 %v9790_v53 }
 0xef5   :  { %6085 = vmatprep.subr.bf16.mxu0 %v9791_v49 }
 0xf82   :  { %v2256_v63 = vpop.f32.mrb[18].mxu0  ;;  %v2327_v7 = vpop.f32.mrb[18].mxu1 }
 0xf83   :  { %v2409_v40 = vrot.slane %v2327_v7, 3  ;;  %v2258_v10 = vpop.f32.mrb[19].mxu0  ;;  %v2329_v56 = vpop.f32.mrb[19].mxu1  ;;  %v2457_v7 = vrot.slane %v7875_v55, 7 }
 0xf84   :  { %v2410_v54 = vrot.slane %v2329_v56, 3 }
 0xf85   :  { %v2419_v16 = vadd.f32 %v2409_v40, %v9792_v18 }
 0xf86   :  { %v2420_v38 = vadd.f32 %v2410_v54, %v9793_v26  ;;  %v2408_v54 = vrot.slane %v2258_v10, 3  ;;  %v2407_v26 = vrot.slane %v2256_v63, 3 }
 0xf87   :  { %v5069_v50 = vmul.f32 -1.442695, %v2419_v16  ;;  %6815 = vtanh.f32 %v2419_v16  ;;  %v9794_v16 = vld [vmem:[#allocation22_spill] sm:$0xff] }
 0xf88   :  { %6817 = vtanh.f32 %v2420_v38  ;;  %v2418_v41 = vadd.f32 %v2408_v54, %v9794_v16 }
 0xf89   :  { %6819 = vpow2.f32 %v5069_v50  ;;  %v9795_v50 = vld [vmem:[#allocation23_spill] sm:$0xff] }
 0xf8a   :  { %v2417_v53 = vadd.f32 %v2407_v26, %v9795_v50  ;;  %v5068_v1 = vmul.f32 -1.442695, %v2418_v41  ;;  %v2456_v41 = vrot.slane %v7873_v19, 7 }
 0xf8c   :  { %v5067_v29 = vmul.f32 -1.442695, %v2417_v53 }
 0xf91   :  { %v6816_v36 = vpop.eup %6815 }
 0xf92   :  { %v6818_v47 = vpop.eup %6817  ;;  %2464 = vrot.lane.b32.xlu0 %v6816_v36, %s7035_s3 }
 0xf93   :  { %2466 = vrot.lane.b32.xlu1 %v6818_v47, %s7035_s3  ;;  %v6820_v51 = vpop.eup %6819 }
 0xf94   :  { %v2437_v49 = vadd.f32 1.0, %v6820_v51 }
 0xf96   :  { %6821 = vrcp.f32 %v2437_v49 }
 0xf97   :  { %6823 = vpow2.f32 %v5068_v1 }
 0xf98   :  { %6825 = vpow2.f32 %v5067_v29 }
 0xfa0   :  { %v6822_v56 = vpop.eup %6821 }
 0xfa1   :  { %v2461_v0 = vmul.f32 %v6822_v56, %v2457_v7  ;;  %v6824_v36 = vpop.eup %6823 }
 0xfa2   :  { %v6826_v47 = vpop.eup %6825  ;;  %v2429_v51 = vadd.f32 1.0, %v6824_v36 }
 0xfa3   :  { %v2428_v49 = vadd.f32 1.0, %v6826_v47 }
 0xfa4   :  { %6827 = vrcp.f32 %v2429_v51  ;;  %v9796_v51 = vld [vmem:[#allocation38_spill] sm:$0xff] }
 0xfa5   :  { %6829 = vrcp.f32 %v2428_v49 }
 0xfa6   :  { %v2398_v40 = vpop.f32.mrb[20].mxu0 }
 0xfa7   :  { %v2400_v18 = vpop.f32.mrb[21].mxu0  ;;  %v2411_v19 = vrot.slane %v2398_v40, 3 }
 0xfa9   :  { %v2421_v49 = vadd.f32 %v2411_v19, %v9796_v51 }
 0xfae   :  { %v6828_v7 = vpop.eup %6827 }
 0xfaf   :  { %v6830_v18 = vpop.eup %6829  ;;  %v2460_v1 = vmul.f32 %v6828_v7, %v2456_v41 }
0x1004   :  { %v2465_v55 = vpop.permute.xlu0 %2464 }
0x1005   :  { %v2467_v56 = vpop.permute.xlu1 %2466 }
0x1006   :  { %v2468_v63 = vsel %vm872_vm6, %v2465_v55, %v2467_v56  ;;  %v2472_v10 = vmul.f32 %v6828_v7, %v2467_v56  ;;  %v5070_v55 = vmul.f32 -1.442695, %v2420_v38  ;;  %v5071_v7 = vmul.f32 -1.442695, %v2421_v49 }
0x1007   :  { %v2471_v54 = vmul.f32 %v6830_v18, %v2468_v63 }
0x1008   :  { %2477 = vrot.lane.b32.xlu1 %v2472_v10, %s7036_s27 }
0x1009   :  { %2475 = vrot.lane.b32.xlu0 %v2471_v54, %s7036_s27 }
0x107a   :  { %v2478_v29 = vpop.permute.xlu1 %2477 }
0x107b   :  { %v2476_v53 = vpop.permute.xlu0 %2475 }
0x107c   :  { %v2479_v26 = vsel %vm225_vm0, %v2476_v53, %v2478_v29  ;;  %v7966_v16 = vadd.f32 %v2476_v53, %v2460_v1 }
0x107d   :  { %v7968_v50 = vadd.f32 %v2479_v26, %v2461_v0 }
0x107e   :  { %6831 = vtanh.f32 %v7966_v16 }
0x107f   :  { %6833 = vtanh.f32 %v7968_v50 }
0x1080   :  { %6835 = vpow2.f32 %v5070_v55 }
0x1081   :  { %6837 = vpow2.f32 %v5071_v7 }
0x1088   :  { %v6832_v36 = vpop.eup %6831 }
0x1089   :  { %v6834_v47 = vpop.eup %6833  ;;  %2488 = vrot.lane.b32.xlu0 %v6832_v36, %s7037_s28 }
0x108a   :  { %2490 = vrot.lane.b32.xlu1 %v6834_v47, %s7037_s28  ;;  %v6836_v56 = vpop.eup %6835 }
0x108b   :  { %v6838_v0 = vpop.eup %6837  ;;  %v2448_v18 = vadd.f32 1.0, %v6836_v56 }
0x108c   :  { %v2449_v63 = vadd.f32 1.0, %v6838_v0 }
0x108d   :  { %6839 = vrcp.f32 %v2448_v18 }
0x108e   :  { %6841 = vrcp.f32 %v2449_v63 }
0x1097   :  { %v6840_v10 = vpop.eup %6839 }
0x1098   :  { %v6842_v1 = vpop.eup %6841 }
0x10fb   :  { %v2489_v54 = vpop.permute.xlu0 %2488 }
0x10fc   :  { %v2495_v41 = vmul.f32 %v6840_v10, %v2489_v54  ;;  %v2491_v29 = vpop.permute.xlu1 %2490 }
0x10fd   :  { %v2492_v53 = vsel %vm897_vm7, %v2489_v54, %v2491_v29  ;;  %v2775_v54 = vrot.slane %v7966_v16, 7 }
0x10fe   :  { %v2496_v40 = vmul.f32 %v6842_v1, %v2492_v53  ;;  %v2499_v26 = vrot.slane %v2495_v41, 5 }
0x1100   :  { %v2500_v36 = vrot.slane %v2496_v40, 5  ;;  %2501 = vrot.lane.b32.xlu0 %v2499_v26, %s7038_s29 }
0x1102   :  { %2503 = vrot.lane.b32.xlu1 %v2500_v36, %s7038_s29 }
0x1172   :  { %v2502_v38 = vpop.permute.xlu0 %2501 }
0x1174   :  { %v7978_v47 = vpop.permute.xlu1 %2503 }
0x1175   :  { %5072 = vmatprep.mubr.msk.f32.mxu1 %vm225_vm0, %v7978_v47  ;;  %5073 = vmatprep.mubr.msk.f32.mxu0 %vm225_vm0, %v7978_v47  ;;  %v7986_v19 = vsel %vm909_vm8, %v2502_v38, %v7978_v47 }
0x1176   :  { %2574 = vmatmul.mubr.f32.vlgmr.msra.gmra.mrb[20].mxu1 %v7986_v19  ;;  %2645 = vmatmul.mubr.f32.vlgmr.msra.gmra.mrb[22].mxu0 %v7986_v19 }
0x1177   :  { %6059 = vmatpush1.bf16.msra.mxu1 %v7220_v22  ;;  %5074 = vmatprep.mubr.msk.f32.mxu1 %vm225_vm0, %v7978_v47 }
0x1178   :  { %6060 = vmatprep.subr.bf16.mxu1 %v9731_v27  ;;  %6087 = vmatpush1.bf16.msra.mxu0 %v7150_v57  ;;  %v9797_v57 = vld [vmem:[#allocation26_spill] sm:$0xff] }
0x1179   :  { %6089 = vmatprep.subr.bf16.mxu0 %v7153_v60  ;;  %v9798_v60 = vld [vmem:[#allocation27_spill] sm:$0xff] }
0x117b   :  { %6062 = vmatpush1.bf16.msra.mxu1 %v7232_v34 }
0x117c   :  { %6063 = vmatprep.subr.bf16.mxu1 %v9731_v27  ;;  %6091 = vmatpush1.bf16.msra.mxu0 %v7159_v2  ;;  %v9799_v2 = vld [vmem:[#allocation28_spill] sm:$0xff] }
0x117d   :  { %6093 = vmatprep.subr.bf16.mxu0 %v7162_v5 }
0x117f   :  { %6065 = vmatpush1.bf16.msra.mxu1 %v7244_v44 }
0x1180   :  { %6066 = vmatprep.subr.bf16.mxu1 %v9731_v27  ;;  %6095 = vmatpush1.bf16.msra.mxu0 %v7169_v12 }
0x1181   :  { %6097 = vmatprep.subr.bf16.mxu0 %v7172_v15 }
0x1183   :  { %6068 = vmatpush1.bf16.msra.mxu1 %v7254_v59 }
0x1184   :  { %6069 = vmatprep.subr.bf16.mxu1 %v9731_v27  ;;  %6099 = vmatpush1.bf16.msra.mxu0 %v7176_v21 }
0x1185   :  { %6101 = vmatprep.subr.bf16.mxu0 %v7179_v24 }
0x1187   :  { %6071 = vmatpush1.bf16.msra.mxu1 %v7264_v13 }
0x1188   :  { %6072 = vmatprep.subr.bf16.mxu1 %v9731_v27  ;;  %6103 = vmatpush1.bf16.msra.mxu0 %v7183_v30 }
0x1189   :  { %6105 = vmatprep.subr.bf16.mxu0 %v7186_v33  ;;  %v9800_v33 = vld [vmem:[#allocation33_spill] sm:$0xff] }
0x118b   :  { %6074 = vmatpush1.bf16.msra.mxu1 %v7274_v28 }
0x118c   :  { %6075 = vmatprep.subr.bf16.mxu1 %v9731_v27  ;;  %6107 = vmatpush1.bf16.msra.mxu0 %v7190_v39 }
0x118d   :  { %6109 = vmatprep.subr.bf16.mxu0 %v7193_v42  ;;  %v9801_v42 = vld [vmem:[#allocation34_spill] sm:$0xff] }
0x118f   :  { %6077 = vmatpush1.bf16.msra.mxu1 %v7284_v46 }
0x1190   :  { %6078 = vmatprep.subr.bf16.mxu1 %v9731_v27  ;;  %6111 = vmatpush1.bf16.msra.mxu0 %v7197_v48 }
0x1191   :  { %6113 = vmatprep.subr.bf16.mxu0 %v7200_v52 }
0x1193   :  { %6080 = vmatpush1.bf16.msra.mxu1 %v7294_v4 }
0x1194   :  { %6081 = vmatprep.subr.bf16.mxu1 %v9731_v27  ;;  %6115 = vmatpush1.bf16.msra.mxu0 %v7204_v62 }
0x1195   :  { %6117 = vmatprep.subr.bf16.mxu0 %v7207_v3 }
0x1197   :  { %6083 = vmatpush1.bf16.msra.mxu1 %v7304_v25 }
0x1198   :  { %6121 = vmatprep.subr.bf16.mxu1 %v7213_v11  ;;  %6119 = vmatpush1.bf16.msra.mxu0 %v7211_v9 }
0x1199   :  { %6156 = vmatprep.subr.bf16.mxu0 %v9731_v27 }
0x119a   :  { %2716 = vmatmul.mubr.f32.vlgmr.msra.gmra.mrb[22].mxu1 %v7986_v19 }
0x119b   :  { %6123 = vmatpush1.bf16.msra.mxu1 %v7216_v20  ;;  %v2776_v20 = vrot.slane %v7968_v50, 7 }
0x119c   :  { %6125 = vmatprep.subr.bf16.mxu1 %v7222_v23 }
0x119f   :  { %6127 = vmatpush1.bf16.msra.mxu1 %v7228_v32 }
0x11a0   :  { %6129 = vmatprep.subr.bf16.mxu1 %v7234_v35 }
0x11a3   :  { %6131 = vmatpush1.bf16.msra.mxu1 %v7240_v43 }
0x11a4   :  { %6133 = vmatprep.subr.bf16.mxu1 %v7246_v45 }
0x11a7   :  { %6135 = vmatpush1.bf16.msra.mxu1 %v7250_v58 }
0x11a8   :  { %6137 = vmatprep.subr.bf16.mxu1 %v7256_v61  ;;  %v9802_v61 = vld [vmem:[#allocation25_spill] sm:$0xff] }
0x11ab   :  { %6139 = vmatpush1.bf16.msra.mxu1 %v7260_v8 }
0x11ac   :  { %6141 = vmatprep.subr.bf16.mxu1 %v7266_v14  ;;  %v9803_v14 = vld [vmem:[#allocation53_spill] sm:$0xff] }
0x11af   :  { %6143 = vmatpush1.bf16.msra.mxu1 %v9732_v37 }
0x11b0   :  { %6145 = vmatprep.subr.bf16.mxu1 %v9733_v17 }
0x11b3   :  { %6147 = vmatpush1.bf16.msra.mxu1 %v9734_v31 }
0x11b4   :  { %6149 = vmatprep.subr.bf16.mxu1 %v9746_v6 }
0x11b7   :  { %6151 = vmatpush1.bf16.msra.mxu1 %v9797_v57  ;;  %v9804_v57 = vld [vmem:[#allocation39_spill] sm:$0xff] }
0x11b8   :  { %6153 = vmatprep.subr.bf16.mxu1 %v9798_v60 }
0x11bb   :  { %6155 = vmatpush1.bf16.msra.mxu1 %v9799_v2 }
0x1249   :  { %v2575_v5 = vpop.f32.mrb[20].mxu1  ;;  %v2646_v12 = vpop.f32.mrb[22].mxu0 }
0x124a   :  { %v2728_v15 = vrot.slane %v2646_v12, 2  ;;  %v2577_v21 = vpop.f32.mrb[21].mxu1  ;;  %v2648_v24 = vpop.f32.mrb[23].mxu0  ;;  %v2726_v58 = vrot.slane %v2575_v5, 2 }
0x124b   :  { %v2729_v30 = vrot.slane %v2648_v24, 2  ;;  %v2727_v45 = vrot.slane %v2577_v21, 2 }
0x124c   :  { %v2738_v39 = vadd.f32 %v2728_v15, %v9800_v33  ;;  %v2736_v37 = vadd.f32 %v2726_v58, %v9803_v14 }
0x124d   :  { %v2739_v48 = vadd.f32 %v2729_v30, %v9801_v42  ;;  %v2737_v8 = vadd.f32 %v2727_v45, %v9802_v61 }
0x124e   :  { %v5077_v52 = vmul.f32 -1.442695, %v2738_v39  ;;  %6843 = vtanh.f32 %v2738_v39  ;;  %v5075_v31 = vmul.f32 -1.442695, %v2736_v37 }
0x124f   :  { %6845 = vtanh.f32 %v2739_v48  ;;  %v5076_v17 = vmul.f32 -1.442695, %v2737_v8  ;;  %v5078_v2 = vmul.f32 -1.442695, %v2739_v48 }
0x1250   :  { %6847 = vpow2.f32 %v5077_v52 }
0x1258   :  { %v6844_v62 = vpop.eup %6843 }
0x1259   :  { %v6846_v3 = vpop.eup %6845  ;;  %2783 = vrot.lane.b32.xlu0 %v6844_v62, %s7035_s3 }
0x125a   :  { %2785 = vrot.lane.b32.xlu1 %v6846_v3, %s7035_s3  ;;  %v6848_v9 = vpop.eup %6847 }
0x125b   :  { %v2756_v11 = vadd.f32 1.0, %v6848_v9 }
0x125d   :  { %6849 = vrcp.f32 %v2756_v11 }
0x125e   :  { %6851 = vpow2.f32 %v5076_v17 }
0x125f   :  { %6853 = vpow2.f32 %v5075_v31 }
0x1267   :  { %v6850_v23 = vpop.eup %6849 }
0x1268   :  { %v2780_v32 = vmul.f32 %v6850_v23, %v2776_v20  ;;  %v6852_v6 = vpop.eup %6851 }
0x1269   :  { %v6854_v51 = vpop.eup %6853  ;;  %v2748_v49 = vadd.f32 1.0, %v6852_v6 }
0x126a   :  { %v2747_v55 = vadd.f32 1.0, %v6854_v51 }
0x126b   :  { %6855 = vrcp.f32 %v2748_v49  ;;  %v9807_v49 = vld [vmem:[#allocation45_spill] sm:$0xff] }
0x126c   :  { %6857 = vrcp.f32 %v2747_v55 }
0x126d   :  { %v2717_v35 = vpop.f32.mrb[22].mxu1 }
0x126e   :  { %v2719_v43 = vpop.f32.mrb[23].mxu1  ;;  %v2730_v16 = vrot.slane %v2717_v35, 2  ;;  %v9806_v35 = vld [vmem:[#allocation36_spill] sm:$0xff] }
0x1270   :  { %v2740_v60 = vadd.f32 %v2730_v16, %v9804_v57 }
0x1272   :  { %v5079_v5 = vmul.f32 -1.442695, %v2740_v60 }
0x1275   :  { %v6856_v7 = vpop.eup %6855 }
0x1276   :  { %v6858_v0 = vpop.eup %6857  ;;  %v2779_v29 = vmul.f32 %v6856_v7, %v2775_v54 }
0x12cb   :  { %v2784_v50 = vpop.permute.xlu0 %2783 }
0x12cc   :  { %v2786_v56 = vpop.permute.xlu1 %2785 }
0x12cd   :  { %v2787_v18 = vsel %vm872_vm6, %v2784_v50, %v2786_v56  ;;  %v2791_v63 = vmul.f32 %v6856_v7, %v2786_v56  ;;  %v9808_v50 = vld [vmem:[#allocation44_spill] sm:$0xff] }
0x12ce   :  { %v2790_v10 = vmul.f32 %v6858_v0, %v2787_v18 }
0x12cf   :  { %2796 = vrot.lane.b32.xlu1 %v2791_v63, %s7036_s27 }
0x12d0   :  { %2794 = vrot.lane.b32.xlu0 %v2790_v10, %s7036_s27 }
0x1341   :  { %v2797_v41 = vpop.permute.xlu1 %2796 }
0x1342   :  { %v2795_v1 = vpop.permute.xlu0 %2794 }
0x1343   :  { %v2798_v53 = vsel %vm225_vm0, %v2795_v1, %v2797_v41  ;;  %v8058_v40 = vadd.f32 %v2795_v1, %v2779_v29 }
0x1344   :  { %v8060_v26 = vadd.f32 %v2798_v53, %v2780_v32  ;;  %v9805_v32 = vld [vmem:[#allocation35_spill] sm:$0xff] }
0x1345   :  { %6859 = vtanh.f32 %v8058_v40  ;;  %v3094_v16 = vrot.slane %v8058_v40, 7 }
0x1346   :  { %6861 = vtanh.f32 %v8060_v26  ;;  %v3095_v8 = vrot.slane %v8060_v26, 7 }
0x1347   :  { %6863 = vpow2.f32 %v5078_v2 }
0x1348   :  { %6865 = vpow2.f32 %v5079_v5 }
0x134f   :  { %v6860_v36 = vpop.eup %6859 }
0x1350   :  { %v6862_v38 = vpop.eup %6861  ;;  %2807 = vrot.lane.b32.xlu0 %v6860_v36, %s7037_s28 }
0x1351   :  { %2809 = vrot.lane.b32.xlu1 %v6862_v38, %s7037_s28  ;;  %v6864_v12 = vpop.eup %6863 }
0x1352   :  { %v6866_v15 = vpop.eup %6865  ;;  %v2767_v21 = vadd.f32 1.0, %v6864_v12 }
0x1353   :  { %v2768_v24 = vadd.f32 1.0, %v6866_v15 }
0x1354   :  { %6867 = vrcp.f32 %v2767_v21 }
0x1355   :  { %6869 = vrcp.f32 %v2768_v24 }
0x135e   :  { %v6868_v30 = vpop.eup %6867 }
0x135f   :  { %v6870_v52 = vpop.eup %6869 }
0x13c2   :  { %v2808_v33 = vpop.permute.xlu0 %2807 }
0x13c3   :  { %v2814_v39 = vmul.f32 %v6868_v30, %v2808_v33  ;;  %v2810_v42 = vpop.permute.xlu1 %2809 }
0x13c4   :  { %v2811_v62 = vsel %vm897_vm7, %v2808_v33, %v2810_v42  ;;  %v9809_v33 = vld [vmem:[#allocation40_spill] sm:$0xff] }
0x13c5   :  { %v2815_v3 = vmul.f32 %v6870_v52, %v2811_v62  ;;  %v2818_v9 = vrot.slane %v2814_v39, 6 }
0x13c7   :  { %v2819_v11 = vrot.slane %v2815_v3, 6  ;;  %2820 = vrot.lane.b32.xlu0 %v2818_v9, %s7038_s29 }
0x13c9   :  { %2822 = vrot.lane.b32.xlu1 %v2819_v11, %s7038_s29 }
0x1439   :  { %v2821_v48 = vpop.permute.xlu0 %2820 }
0x143b   :  { %v8070_v20 = vpop.permute.xlu1 %2822 }
0x143c   :  { %5080 = vmatprep.mubr.msk.f32.mxu0 %vm225_vm0, %v8070_v20  ;;  %5081 = vmatprep.mubr.msk.f32.mxu1 %vm225_vm0, %v8070_v20  ;;  %v8078_v23 = vsel %vm909_vm8, %v2821_v48, %v8070_v20 }
0x143d   :  { %2893 = vmatmul.mubr.f32.vlgmr.msra.gmra.mrb[24].mxu0 %v8078_v23  ;;  %2964 = vmatmul.mubr.f32.vlgmr.msra.gmra.mrb[24].mxu1 %v8078_v23 }
0x143e   :  { %6158 = vmatpush1.bf16.msra.mxu0 %v7220_v22  ;;  %5082 = vmatprep.mubr.msk.f32.mxu0 %vm225_vm0, %v8070_v20 }
0x143f   :  { %6159 = vmatprep.subr.bf16.mxu0 %v9731_v27 }
0x1442   :  { %6161 = vmatpush1.bf16.msra.mxu0 %v7232_v34 }
0x1443   :  { %6162 = vmatprep.subr.bf16.mxu0 %v9731_v27 }
0x1446   :  { %6164 = vmatpush1.bf16.msra.mxu0 %v7244_v44 }
0x1447   :  { %6165 = vmatprep.subr.bf16.mxu0 %v9731_v27 }
0x144a   :  { %6167 = vmatpush1.bf16.msra.mxu0 %v7254_v59 }
0x144b   :  { %6168 = vmatprep.subr.bf16.mxu0 %v9731_v27 }
0x144e   :  { %6170 = vmatpush1.bf16.msra.mxu0 %v7264_v13 }
0x144f   :  { %6171 = vmatprep.subr.bf16.mxu0 %v9731_v27 }
0x1452   :  { %6173 = vmatpush1.bf16.msra.mxu0 %v7274_v28 }
0x1453   :  { %6174 = vmatprep.subr.bf16.mxu0 %v9731_v27 }
0x1456   :  { %6176 = vmatpush1.bf16.msra.mxu0 %v7284_v46 }
0x1457   :  { %6177 = vmatprep.subr.bf16.mxu0 %v9731_v27 }
0x145a   :  { %6179 = vmatpush1.bf16.msra.mxu0 %v7294_v4 }
0x145b   :  { %6180 = vmatprep.subr.bf16.mxu0 %v9731_v27 }
0x145e   :  { %6182 = vmatpush1.bf16.msra.mxu0 %v7304_v25 }
0x145f   :  { %6293 = vmatprep.subr.bf16.mxu0 %v9731_v27 }
0x1461   :  { %3035 = vmatmul.mubr.f32.vlgmr.msra.gmra.mrb[26].mxu0 %v8078_v23 }
0x1510   :  { %v2894_v22 = vpop.f32.mrb[24].mxu0  ;;  %v2965_v34 = vpop.f32.mrb[24].mxu1 }
0x1511   :  { %v3047_v44 = vrot.slane %v2965_v34, 1  ;;  %v2896_v59 = vpop.f32.mrb[25].mxu0  ;;  %v2967_v13 = vpop.f32.mrb[25].mxu1  ;;  %v3045_v51 = vrot.slane %v2894_v22, 1 }
0x1512   :  { %v3048_v28 = vrot.slane %v2967_v13, 1  ;;  %v3046_v6 = vrot.slane %v2896_v59, 1 }
0x1513   :  { %v3057_v46 = vadd.f32 %v3047_v44, %v9805_v32  ;;  %v3055_v7 = vadd.f32 %v3045_v51, %v9808_v50  ;;  %v9819_v51 = vld [vmem:[#allocation41_spill] sm:$0xff] }
0x1514   :  { %v3058_v43 = vadd.f32 %v3048_v28, %v9806_v35  ;;  %v3056_v55 = vadd.f32 %v3046_v6, %v9807_v49  ;;  %v9820_v49 = vld [vmem:[#allocation56_spill] sm:$0xff] }
0x1515   :  { %v5085_v45 = vmul.f32 -1.442695, %v3057_v46  ;;  %6871 = vtanh.f32 %v3057_v46  ;;  %v5083_v0 = vmul.f32 -1.442695, %v3055_v7  ;;  %v9810_v46 = vld [vmem:[#allocation24_spill] sm:$0xff]  ;;  %v9821_v7 = vld [vmem:[#allocation55_spill] sm:$0xff] }
0x1516   :  { %6873 = vtanh.f32 %v3058_v43  ;;  %v5084_v56 = vmul.f32 -1.442695, %v3056_v55  ;;  %v5086_v42 = vmul.f32 -1.442695, %v3058_v43  ;;  %v3169_v43 = vsel %vm7449_vm5, %v9810_v46, %v8070_v20 }
0x1517   :  { %6875 = vpow2.f32 %v5085_v45  ;;  %v9812_v45 = vld [vmem:[#allocation30_spill] sm:$0xff]  ;;  %v3207_v55 = vsel %vm7449_vm5, %v9820_v49, %v9819_v51 }
0x151f   :  { %v6872_v4 = vpop.eup %6871 }
0x1520   :  { %v6874_v25 = vpop.eup %6873  ;;  %3102 = vrot.lane.b32.xlu0 %v6872_v4, %s7035_s3  ;;  %v8126_v4 = vmul.u32 2, %v9812_v45 }
0x1521   :  { %3104 = vrot.lane.b32.xlu1 %v6874_v25, %s7035_s3  ;;  %v6876_v58 = vpop.eup %6875  ;;  %v9813_v25 = vld [vmem:[#allocation52_spill] sm:$0xff]  ;;  %s5264_s3 = sld [smem:[#allocation11 + $0x5]] }
0x1522   :  { %v3075_v61 = vadd.f32 1.0, %v6876_v58 }
0x1524   :  { %6877 = vrcp.f32 %v3075_v61  ;;  %v3168_v61 = vsel %vm7438_vm4, %v9813_v25, %v8078_v23 }
0x1525   :  { %6879 = vpow2.f32 %v5084_v56  ;;  %v3187_v56 = vsel %vm7438_vm4, %v9821_v7, %v7986_v19 }
0x1526   :  { %6881 = vpow2.f32 %v5083_v0 }
0x152e   :  { %v6878_v14 = vpop.eup %6877 }
0x152f   :  { %v3099_v37 = vmul.f32 %v6878_v14, %v3095_v8  ;;  %v6880_v18 = vpop.eup %6879  ;;  %v9815_v8 = vld [vmem:[#allocation42_spill] sm:$0xff]  ;;  %v9816_v14 = vld [vmem:[#allocation57_spill] sm:$0xff] }
0x1530   :  { %v6882_v63 = vpop.eup %6881  ;;  %v3067_v10 = vadd.f32 1.0, %v6880_v18  ;;  %v3223_v50 = vsel %vm7438_vm4, %v9815_v8, %v9816_v14  ;;  %v9822_v18 = vld [vmem:[#allocation43_spill] sm:$0xff] }
0x1531   :  { %v3066_v54 = vadd.f32 1.0, %v6882_v63  ;;  %v3180_v63 = vrot.slane %v3169_v43, %v9822_v18 }
0x1532   :  { %6883 = vrcp.f32 %v3067_v10 }
0x1533   :  { %6885 = vrcp.f32 %v3066_v54  ;;  %v3176_v54 = vrot.slane %v3168_v61, %v9822_v18 }
0x1534   :  { %v3036_v17 = vpop.f32.mrb[26].mxu0 }
0x1535   :  { %v3038_v31 = vpop.f32.mrb[27].mxu0  ;;  %v3049_v30 = vrot.slane %v3036_v17, 1  ;;  %v9817_v17 = vld [vmem:[#allocation29_spill] sm:$0xff] }
0x1536   :  { %vm3225_vm9 = vcmp.eq.s32.totalorder %v9817_v17, 4  ;;  %v9818_v31 = vld [vmem:[#allocation54_spill] sm:$0xff]  ;;  %vm3208_vm10 = vcmp.eq.s32.totalorder %v9817_v17, 3  ;;  %vm3170_vm11 = vcmp.eq.s32.totalorder %v9817_v17, 1  ;;  %vm3151_vm12 = vcmp.eq.s32.totalorder %v9817_v17, 0 }
0x1537   :  { %v3059_v39 = vadd.f32 %v3049_v30, %v9809_v33  ;;  %v3188_v6 = vsel %vm7449_vm5, %v9818_v31, %v7978_v47  ;;  %vm3189_vm13 = vcmp.eq.s32.totalorder %v9817_v17, 2  ;;  %v3241_v30 = vsel %vm7449_vm5, %v7978_v47, %v9818_v31 }
0x1538   :  { %v3258_v47 = vsel %vm7449_vm5, %v8070_v20, %v9810_v46  ;;  %vm3242_vm14 = vcmp.eq.s32.totalorder %v9817_v17, 5  ;;  %vm3259_vm15 = vcmp.eq.s32.totalorder %v9817_v17, 6  ;;  %v8874_v27 = vadd.s32 392, %v9817_v17 }
0x1539   :  { %v5087_v40 = vmul.f32 -1.442695, %v3059_v39 }
0x153c   :  { %v6884_v29 = vpop.eup %6883 }
0x153d   :  { %v6886_v53 = vpop.eup %6885  ;;  %v3098_v60 = vmul.f32 %v6884_v29, %v3094_v16 }
0x1592   :  { %v3103_v41 = vpop.permute.xlu0 %3102 }
0x1593   :  { %v3105_v1 = vpop.permute.xlu1 %3104 }
0x1594   :  { %v3106_v26 = vsel %vm872_vm6, %v3103_v41, %v3105_v1  ;;  %v3110_v36 = vmul.f32 %v6884_v29, %v3105_v1  ;;  %v9823_v29 = vld [vmem:[#allocation50_spill] sm:$0xff] }
0x1595   :  { %v3109_v38 = vmul.f32 %v6886_v53, %v3106_v26  ;;  %v3224_v53 = vsel %vm7449_vm5, %v9819_v51, %v9820_v49  ;;  %v3199_v26 = vrot.slane %v3188_v6, %v9822_v18  ;;  %v8230_v49 = vadd.s32 8, %v9817_v17 }
0x1596   :  { %3115 = vrot.lane.b32.xlu1 %v3110_v36, %s7036_s27  ;;  %v9824_v36 = vld [vmem:[#allocation51_spill] sm:$0xff] }
0x1597   :  { %3113 = vrot.lane.b32.xlu0 %v3109_v38, %s7036_s27  ;;  %9825 = vst [vmem:[#allocation49_spill] sm:$0xff] %v8230_v49  ;;  %s7048_s27 = smov 113  }
0x1608   :  { %v3116_v57 = vpop.permute.xlu1 %3115 }
0x1609   :  { %v3114_v2 = vpop.permute.xlu0 %3113 }
0x160a   :  { %v3117_v5 = vsel %vm225_vm0, %v3114_v2, %v3116_v57  ;;  %v3120_v12 = vadd.f32 %v3114_v2, %v3098_v60  ;;  %v3195_v57 = vrot.slane %v3187_v56, %v9822_v18  ;;  %v3218_v60 = vrot.slane %v3207_v55, %v9822_v18 }
0x160b   :  { %v3121_v15 = vadd.f32 %v3117_v5, %v3099_v37  ;;  %v3206_v37 = vsel %vm7438_vm4, %v9816_v14, %v9815_v8  ;;  %vm3276_vm0 = vcmp.eq.s32.totalorder %v9817_v17, 7  ;;  %v8233_v55 = vadd.s32 286, %v8126_v4 }
0x160c   :  { %6887 = vtanh.f32 %v3120_v12  ;;  %v3214_v5 = vrot.slane %v3206_v37, %v9822_v18  ;;  %v3231_v12 = vrot.slane %v3223_v50, %v9822_v18  ;;  %v3322_v56 = vstv %s8207_s30  ;;  %s4648_s30 = sld [smem:[#allocation11]] }
0x160d   :  { %6889 = vtanh.f32 %v3121_v15  ;;  %v3182_v15 = vsel %vm3170_vm11, %v3180_v63, 0.0  ;;  %vm3791_vm1 = vcmp.eq.s32.totalorder %v9817_v17, %v8233_v55  ;;  %vm3792_vm2 = vcmp.eq.s32.totalorder %v8230_v49, %v8233_v55 }
0x160e   :  { %6891 = vpow2.f32 %v5086_v42  ;;  %v3240_v42 = vsel %vm7438_vm4, %v7986_v19, %v9821_v7  ;;  %v3219_v19 = vsel %vm3208_vm10, %v3214_v5, 0.0  ;;  %v3236_v46 = vsel %vm3225_vm9, %v3231_v12, 0.0 }
0x160f   :  { %6893 = vpow2.f32 %v5087_v40  ;;  %v3201_v40 = vsel %vm3189_vm13, %v3199_v26, 0.0  ;;  %v9828_v26 = vmov 0.0   ;;  %v3296_v12 = vstv %s8238_s10  ;;  %s7050_s10 = smov 70  }
0x1616   :  { %v6888_v21 = vpop.eup %6887 }
0x1617   :  { %v6890_v24 = vpop.eup %6889  ;;  %3126 = vrot.lane.b32.xlu0 %v6888_v21, %s7037_s28 }
0x1618   :  { %3128 = vrot.lane.b32.xlu1 %v6890_v24, %s7037_s28  ;;  %v6892_v52 = vpop.eup %6891  ;;  %v3181_v24 = vsel %vm3170_vm11, %v3176_v54, 0.0  ;;  %v8246_v54 = vadd.s32 143, %v8126_v4  ;;  %s7049_s28 = smov 35  }
0x1619   :  { %v6894_v62 = vpop.eup %6893  ;;  %v3086_v3 = vadd.f32 1.0, %v6892_v52  ;;  %v3235_v52 = vrot.slane %v3224_v53, %v9822_v18  ;;  %v3347_v53 = vstv %s8225_s9  ;;  %s5271_s9 = sld [smem:[#allocation12 + $0x1]] }
0x161a   :  { %v3087_v9 = vadd.f32 1.0, %v6894_v62  ;;  %vm3629_vm6 = vcmp.eq.s32.totalorder %v8230_v49, %v8246_v54 }
0x161b   :  { %6895 = vrcp.f32 %v3086_v3  ;;  %v3200_v3 = vsel %vm3189_vm13, %v3195_v57, 0.0  ;;  %v8268_v57 = vadd.s32 32, %v9817_v17 }
0x161c   :  { %6897 = vrcp.f32 %v3087_v9  ;;  %v3220_v9 = vsel %vm3208_vm10, %v3218_v60, 0.0  ;;  %v8271_v60 = vadd.s32 40, %v9817_v17 }
0x161d   :  { %9829 = vst [vmem:[#allocation21_spill] sm:$0xff] %v8268_v57  ;;  %vm3632_vm11 = vcmp.eq.s32.totalorder %v8268_v57, %v8246_v54 }
0x161e   :  { %9830 = vst [vmem:[#allocation31_spill] sm:$0xff] %v8271_v60 }
0x1625   :  { %v6896_v11 = vpop.eup %6895 }
0x1626   :  { %v6898_v44 = vpop.eup %6897 }
0x1689   :  { %v3127_v48 = vpop.permute.xlu0 %3126 }
0x168a   :  { %v3133_v22 = vmul.f32 %v6896_v11, %v3127_v48  ;;  %v3129_v34 = vpop.permute.xlu1 %3128 }
0x168b   :  { %v3130_v59 = vsel %vm897_vm7, %v3127_v48, %v3129_v34  ;;  %v3257_v48 = vsel %vm7438_vm4, %v8078_v23, %v9813_v25  ;;  %v3237_v23 = vsel %vm3225_vm9, %v3235_v52, 0.0  ;;  %vm3795_vm7 = vcmp.eq.s32.totalorder %v8268_v57, %v8233_v55 }
0x168c   :  { %v3140_v13 = vrot.slane %v3133_v22, 7  ;;  %v3134_v28 = vmul.f32 %v6898_v44, %v3130_v59  ;;  %v3252_v22 = vrot.slane %v3241_v30, %v9822_v18  ;;  %v3248_v44 = vrot.slane %v3240_v42, %v9822_v18 }
0x168d   :  { %v3265_v43 = vrot.slane %v3257_v48, %v9822_v18  ;;  %v5150_v30 = vsel %vm3629_vm6, 1.0, %v9828_v26  ;;  %v5207_v42 = vsel %vm3795_vm7, 1.0, %v9828_v26 }
0x168e   :  { %v3141_v32 = vrot.slane %v3134_v28, 7  ;;  %3142 = vrot.lane.b32.xlu0 %v3140_v13, %s7038_s29  ;;  %v3269_v13 = vrot.slane %v3258_v47, %v9822_v18  ;;  %v3254_v35 = vsel %vm3242_vm14, %v3252_v22, 0.0  ;;  %v3253_v8 = vsel %vm3242_vm14, %v3248_v44, 0.0 }
0x168f   :  { %v3270_v6 = vsel %vm3259_vm15, %v3265_v43, 0.0  ;;  %v8308_v47 = vadd.s32 56, %v9817_v17  ;;  %v8344_v43 = vadd.s32 88, %v9817_v17 }
0x1690   :  { %3144 = vrot.lane.b32.xlu1 %v3141_v32, %s7038_s29  ;;  %v3271_v37 = vsel %vm3259_vm15, %v3269_v13, 0.0  ;;  %v3318_v13 = vstv %s5089_s4  ;;  %vm3305_vm15 = vcmask 1039360   ;;  %s5265_s29 = sld [smem:[#allocation11 + $0x80]] }
0x1691   :  { %9832 = vst [vmem:[#allocation22_spill] sm:$0xff] %v8308_v47  ;;  %vm3635_vm14 = vcmp.eq.s32.totalorder %v8308_v47, %v8246_v54  ;;  %9836 = vst [vmem:[#allocation27_spill] sm:$0xff] %v8344_v43  ;;  %vm3639_vm6 = vcmp.eq.s32.totalorder %v8344_v43, %v8246_v54 }
0x1700   :  { %v3143_v0 = vpop.permute.xlu0 %3142 }
0x1702   :  { %v3145_v10 = vpop.permute.xlu1 %3144 }
0x1703   :  { %v3146_v41 = vsel %vm909_vm8, %v3143_v0, %v3145_v10  ;;  %v3150_v1 = vsel %vm7449_vm5, %v9823_v29, %v3145_v10  ;;  %v3275_v20 = vsel %vm7449_vm5, %v3145_v10, %v9823_v29  ;;  %v8243_v10 = vadd.s32 16, %v9817_v17 }
0x1704   :  { %v3149_v38 = vsel %vm7438_vm4, %v9824_v36, %v3146_v41  ;;  %v3161_v16 = vrot.slane %v3150_v1, %v9822_v18  ;;  %v3274_v32 = vsel %vm7438_vm4, %v3146_v41, %v9824_v36  ;;  %v3286_v61 = vrot.slane %v3275_v20, %v9822_v18 }
0x1705   :  { %v3157_v2 = vrot.slane %v3149_v38, %v9822_v18  ;;  %v3282_v14 = vrot.slane %v3274_v32, %v9822_v18  ;;  %9826 = vst [vmem:[#allocation47_spill] sm:$0xff] %v8243_v10  ;;  %v8254_v29 = vadd.s32 24, %v9817_v17  ;;  %v5203_v36 = vsel %vm3791_vm1, 1.0, %v9828_v26 }
0x1706   :  { %v3163_v21 = vsel %vm3151_vm12, %v3161_v16, 0.0  ;;  %v3288_v7 = vsel %vm3276_vm0, %v3286_v61, 0.0  ;;  %v5204_v38 = vsel %vm3792_vm2, 1.0, %v9828_v26  ;;  %vm3630_vm3 = vcmp.eq.s32.totalorder %v8243_v10, %v8246_v54 }
0x1707   :  { %v3162_v33 = vsel %vm3151_vm12, %v3157_v2, 0.0  ;;  %v3184_v39 = vadd.f32 %v3182_v15, %v3163_v21  ;;  %v3287_v0 = vsel %vm3276_vm0, %v3282_v14, 0.0  ;;  %9827 = vst [vmem:[#allocation37_spill] sm:$0xff] %v8254_v29  ;;  %vm3631_vm4 = vcmp.eq.s32.totalorder %v8254_v29, %v8246_v54 }
0x1708   :  { %v3183_v62 = vadd.f32 %v3181_v24, %v3162_v33  ;;  %vm3628_vm5 = vcmp.eq.s32.totalorder %v9817_v17, %v8246_v54  ;;  %v6355_v5 = vpack.i.bf16 %v5204_v38, %v5203_v36  ;;  %v5151_v15 = vsel %vm3630_vm3, 1.0, %v9828_v26 }
0x1709   :  { %v3203_v11 = vadd.f32 %v3201_v40, %v3184_v39  ;;  %v5152_v21 = vsel %vm3631_vm4, 1.0, %v9828_v26  ;;  %vm3796_vm8 = vcmp.eq.s32.totalorder %v8271_v60, %v8233_v55  ;;  %v5149_v24 = vsel %vm3628_vm5, 1.0, %v9828_v26 }
0x170a   :  { %v3202_v34 = vadd.f32 %v3200_v3, %v3183_v62  ;;  %vm3793_vm9 = vcmp.eq.s32.totalorder %v8243_v10, %v8233_v55  ;;  %vm3794_vm10 = vcmp.eq.s32.totalorder %v8254_v29, %v8233_v55  ;;  %v6360_v39 = vpack.i.bf16 %v5152_v21, %v5151_v15 }
0x170b   :  { %v3222_v59 = vadd.f32 %v3220_v9, %v3203_v11  ;;  %v5208_v40 = vsel %vm3796_vm8, 1.0, %v9828_v26  ;;  %v6350_v52 = vpack.i.bf16 %v5150_v30, %v5149_v24  ;;  %v5205_v62 = vsel %vm3793_vm9, 1.0, %v9828_v26 }
0x170c   :  { %v3221_v28 = vadd.f32 %v3219_v19, %v3202_v34  ;;  %v5206_v3 = vsel %vm3794_vm10, 1.0, %v9828_v26  ;;  %vm3633_vm12 = vcmp.eq.s32.totalorder %v8271_v60, %v8246_v54  ;;  %v8305_v9 = vadd.s32 48, %v9817_v17 }
0x170d   :  { %v3239_v45 = vadd.f32 %v3237_v23, %v3222_v59  ;;  %v6375_v11 = vpack.i.bf16 %v5208_v40, %v5207_v42  ;;  %v6365_v48 = vpack.i.bf16 %v5206_v3, %v5205_v62  ;;  %v5153_v19 = vsel %vm3632_vm11, 1.0, %v9828_v26 }
0x170e   :  { %v3238_v25 = vadd.f32 %v3236_v46, %v3221_v28  ;;  %9831 = vst [vmem:[#allocation32_spill] sm:$0xff] %v8305_v9  ;;  %v5154_v22 = vsel %vm3633_vm12, 1.0, %v9828_v26  ;;  %vm3634_vm13 = vcmp.eq.s32.totalorder %v8305_v9, %v8246_v54  ;;  %v5156_v20 = vsel %vm3635_vm14, 1.0, %v9828_v26 }
0x170f   :  { %v3256_v58 = vadd.f32 %v3254_v35, %v3239_v45  ;;  %v6370_v34 = vpack.i.bf16 %v5154_v22, %v5153_v19  ;;  %v5155_v59 = vsel %vm3634_vm13, 1.0, %v9828_v26  ;;  %v8335_v28 = vadd.s32 64, %v9817_v17 }
0x1710   :  { %v3255_v31 = vadd.f32 %v3253_v8, %v3238_v25  ;;  %v6380_v23 = vpack.i.bf16 %v5156_v20, %v5155_v59  ;;  %v8338_v32 = vadd.s32 72, %v9817_v17  ;;  %v8341_v46 = vadd.s32 80, %v9817_v17 }
0x1711   :  { %v3273_v51 = vadd.f32 %v3271_v37, %v3256_v58  ;;  %9833 = vst [vmem:[#allocation23_spill] sm:$0xff] %v8335_v28  ;;  %v3337_v45 = vstv %s8328_s14  ;;  %v3343_v35 = vstv %s8326_s11  ;;  %v9646_v25 = vstv %s8330_s15 }
0x1712   :  { %v3272_v50 = vadd.f32 %v3270_v6, %v3255_v31  ;;  %9834 = vst [vmem:[#allocation38_spill] sm:$0xff] %v8338_v32  ;;  %9835 = vst [vmem:[#allocation26_spill] sm:$0xff] %v8341_v46  ;;  %v9647_v8 = vstv %s8332_s5  ;;  %vm3467_vm0 = vcmp.eq.s32.totalorder %v8243_v10, %v8126_v4  ;;  %vm3636_vm1 = vcmp.eq.s32.totalorder %v8335_v28, %v8246_v54 }
0x1713   :  { %v8236_v63 = vadd.f32 %v3288_v7, %v3273_v51  ;;  %vm3797_vm2 = vcmp.eq.s32.totalorder %v8305_v9, %v8233_v55  ;;  %vm3798_vm3 = vcmp.eq.s32.totalorder %v8308_v47, %v8233_v55  ;;  %vm3637_vm4 = vcmp.eq.s32.totalorder %v8338_v32, %v8246_v54 }
0x1714   :  { %v8240_v18 = vadd.f32 %v3287_v0, %v3272_v50  ;;  %vm3638_vm5 = vcmp.eq.s32.totalorder %v8341_v46, %v8246_v54  ;;  %vm3468_vm7 = vcmp.eq.s32.totalorder %v8254_v29, %v8126_v4  ;;  %v8375_v31 = vsel %vm3467_vm0, 1.0, %v9828_v26 }
0x1715   :  { %v3324_v41 = vmul.f32 %v3322_v56, %v8236_v63  ;;  %v3349_v16 = vmul.f32 %v3347_v53, %v8236_v63  ;;  %v3298_v33 = vmul.f32 %v3296_v12, %v8236_v63  ;;  %v3320_v61 = vmul.f32 %v3318_v13, %v8236_v63  ;;  %9837 = vst [vmem:[#allocation28_spill] sm:$0xff] %v8375_v31 }
0x1716   :  { %v3323_v1 = vmul.f32 %v3322_v56, %v8240_v18  ;;  %v3348_v2 = vmul.f32 %v3347_v53, %v8240_v18  ;;  %v3297_v44 = vmul.f32 %v3296_v12, %v8240_v18  ;;  %v3319_v58 = vmul.f32 %v3318_v13, %v8240_v18 }
0x1717   :  { %3329 = vrot.lane.b32.xlu1 %v3324_v41, %s7039_s12  ;;  %v3344_v14 = vmul.f32 %v3343_v35, %v8240_v18  ;;  %v3294_v37 = vmul.f32 %v9646_v25, %v8236_v63  ;;  %v8378_v6 = vadd.s32 96, %v9817_v17  ;;  %v8381_v50 = vsel %vm3636_vm1, 1.0, %v9828_v26 }
0x1718   :  { %3327 = vrot.lane.b32.xlu0 %v3323_v1, %s7039_s12  ;;  %v8384_v7 = vsel %vm3797_vm2, 1.0, %v9828_v26  ;;  %v8387_v56 = vsel %vm3798_vm3, 1.0, %v9828_v26  ;;  %v8390_v0 = vadd.s32 104, %v9817_v17  ;;  %v8393_v53 = vsel %vm3637_vm4, 1.0, %v9828_v26 }
0x1719   :  { %9838 = vst [vmem:[#allocation33_spill] sm:$0xff] %v8378_v6  ;;  %v8396_v36 = vsel %vm3638_vm5, 1.0, %v9828_v26  ;;  %v8399_v38 = vsel %vm3639_vm6, 1.0, %v9828_v26  ;;  %v8409_v12 = vadd.s32 120, %v9817_v17  ;;  %v6390_v24 = vpack.i.bf16 %v8387_v56, %v8384_v7 }
0x171a   :  { %9839 = vst [vmem:[#allocation34_spill] sm:$0xff] %v8390_v0  ;;  %vm3640_vm8 = vcmp.eq.s32.totalorder %v8378_v6, %v8246_v54  ;;  %vm3641_vm9 = vcmp.eq.s32.totalorder %v8390_v0, %v8246_v54  ;;  %vm3799_vm10 = vcmp.eq.s32.totalorder %v8335_v28, %v8233_v55  ;;  %vm4385_vm11 = vcmask 580608  }
0x171b   :  { %3354 = vrot.lane.b32.xlu1 %v3349_v16, %s7039_s12  ;;  %9842 = vst [vmem:[#allocation39_spill] sm:$0xff] %v8409_v12  ;;  %vm3800_vm12 = vcmp.eq.s32.totalorder %v8338_v32, %v8233_v55  ;;  %vm3801_vm13 = vcmp.eq.s32.totalorder %v8341_v46, %v8233_v55  ;;  %vm3802_vm14 = vcmp.eq.s32.totalorder %v8344_v43, %v8233_v55  ;;  %v8434_v62 = vsel %vm3640_vm8, 1.0, %v9828_v26 }
0x171c   :  { %3352 = vrot.lane.b32.xlu0 %v3348_v2, %s7039_s12  ;;  %v8403_v2 = vsel %vm3468_vm7, 1.0, %v9828_v26  ;;  %vm3643_vm1 = vcmp.eq.s32.totalorder %v8409_v12, %v8246_v54  ;;  %v8441_v19 = vsel %vm3641_vm9, 1.0, %v9828_v26  ;;  %v8453_v59 = vsel %vm3801_vm13, 1.0, %v9828_v26 }
0x171d   :  { %9840 = vst [vmem:[#allocation25_spill] sm:$0xff] %v8403_v2  ;;  %v8456_v20 = vsel %vm3802_vm14, 1.0, %v9828_v26  ;;  %vm3465_vm2 = vcmp.eq.s32.totalorder %v9817_v17, %v8126_v4  ;;  %vm3466_vm3 = vcmp.eq.s32.totalorder %v8230_v49, %v8126_v4  ;;  %vm4440_vm4 = vcmask 113664  }
0x171e   :  { %vm3803_vm7 = vcmp.eq.s32.totalorder %v8378_v6, %v8233_v55  ;;  %vm3804_vm8 = vcmp.eq.s32.totalorder %v8390_v0, %v8233_v55  ;;  %vm3469_vm9 = vcmp.eq.s32.totalorder %v8268_v57, %v8126_v4  ;;  %v8897_v29 = vadd.s32 416, %v9817_v17 }
0x171f   :  { %6356 = vrot.lane.b32.xlu1 %v6355_v5, %s7040_s13  ;;  %v8406_v5 = vadd.s32 112, %v9817_v17  ;;  %v5215_v7 = vsel %vm3803_vm7, 1.0, %v9828_v26  ;;  %v5216_v56 = vsel %vm3804_vm8, 1.0, %v9828_v26  ;;  %v8900_v10 = vadd.s32 424, %v9817_v17 }
0x1720   :  { %3303 = vrot.lane.b32.xlu0 %v3298_v33, %s7039_s12  ;;  %v6395_v33 = vpack.i.bf16 %v8393_v53, %v8381_v50  ;;  %v6415_v50 = vpack.i.bf16 %v8441_v19, %v8434_v62  ;;  %v8493_v62 = vsel %vm3466_vm3, 1.0, %v9828_v26 }
0x1721   :  { %9841 = vst [vmem:[#allocation53_spill] sm:$0xff] %v8406_v5  ;;  %vm3642_vm0 = vcmp.eq.s32.totalorder %v8406_v5, %v8246_v54  ;;  %9846 = vst [vmem:[#allocation44_spill] sm:$0xff] %v8493_v62  ;;  %vm3805_vm14 = vcmp.eq.s32.totalorder %v8406_v5, %v8233_v55 }
0x1723   :  { %6361 = vrot.lane.b32.xlu1 %v6360_v39, %s7041_s1  ;;  %v6405_v39 = vpack.i.bf16 %v8399_v38, %v8396_v36  ;;  %v8549_v38 = vsel %vm3469_vm9, 1.0, %v9828_v26 }
0x1724   :  { %6351 = vrot.lane.b32.xlu0 %v6350_v52, %s7041_s1  ;;  %9847 = vst [vmem:[#allocation40_spill] sm:$0xff] %v8549_v38 }
0x1727   :  { %6376 = vrot.lane.b32.xlu1 %v6375_v11, %s7040_s13 }
0x1728   :  { %6366 = vrot.lane.b32.xlu0 %v6365_v48, %s7040_s13 }
0x172b   :  { %3301 = vrot.lane.b32.xlu1 %v3297_v44, %s7039_s12  ;;  %v8450_v44 = vsel %vm3800_vm12, 1.0, %v9828_v26 }
0x172c   :  { %6371 = vrot.lane.b32.xlu0 %v6370_v34, %s7041_s1  ;;  %v8447_v34 = vsel %vm3799_vm10, 1.0, %v9828_v26  ;;  %vm3470_vm10 = vcmp.eq.s32.totalorder %v8271_v60, %v8126_v4 }
0x1730   :  { %6381 = vrot.lane.b32.xlu0 %v6380_v23, %s7041_s1 }
0x1789   :  { %v3330_v51 = vpop.permute.xlu1 %3329 }
0x178a   :  { %v3335_v41 = vadd.f32 %v3330_v51, %v3320_v61  ;;  %v3328_v1 = vpop.permute.xlu0 %3327  ;;  %v8464_v61 = vsel %vm3643_vm1, 1.0, %v9828_v26 }
0x178b   :  { %v3331_v16 = vsel %vm3305_vm15, %v3328_v1, %v3330_v51  ;;  %v8485_v1 = vadd.s32 136, %v9817_v17 }
0x178c   :  { %v3339_v15 = vadd.f32 %v3337_v45, %v3335_v41  ;;  %v3334_v21 = vadd.f32 %v3331_v16, %v3319_v58  ;;  %v8467_v58 = vadd.s32 128, %v9817_v17  ;;  %v6400_v41 = vpack.i.bf16 %v8450_v44, %v8447_v34 }
0x178d   :  { %v8415_v30 = vpop.permute.xlu1 %3354  ;;  %9844 = vst [vmem:[#allocation36_spill] sm:$0xff] %v8485_v1  ;;  %vm3645_vm6 = vcmp.eq.s32.totalorder %v8485_v1, %v8246_v54 }
0x178e   :  { %v3338_v42 = vadd.f32 %v3337_v45, %v3334_v21  ;;  %v3353_v40 = vpop.permute.xlu0 %3352  ;;  %v3341_v3 = vmax.f32 %v3339_v15, 0.0  ;;  %v8461_v45 = vsel %vm3642_vm0, 1.0, %v9828_v26  ;;  %9843 = vst [vmem:[#allocation35_spill] sm:$0xff] %v8467_v58  ;;  %vm3644_vm5 = vcmp.eq.s32.totalorder %v8467_v58, %v8246_v54 }
0x178f   :  { %v3356_v52 = vsel %vm3305_vm15, %v3353_v40, %v8415_v30  ;;  %v6425_v21 = vpack.i.bf16 %v8464_v61, %v8461_v45  ;;  %vm3806_vm0 = vcmp.eq.s32.totalorder %v8409_v12, %v8233_v55  ;;  %vm3807_vm3 = vcmp.eq.s32.totalorder %v8467_v58, %v8233_v55 }
0x1790   :  { %v3340_v11 = vmax.f32 %v3338_v42, 0.0  ;;  %v3359_v48 = vadd.f32 %v3356_v52, %v3344_v14  ;;  %v8490_v52 = vsel %vm3465_vm2, 1.0, %v9828_v26  ;;  %v8618_v45 = vadd.s32 176, %v9817_v17 }
0x1791   :  { %v6357_v22 = vpop.permute.xlu1 %6356  ;;  %9845 = vst [vmem:[#allocation45_spill] sm:$0xff] %v8490_v52  ;;  %v8621_v61 = vadd.s32 184, %v9817_v17 }
0x1792   :  { %v8458_v23 = vpop.permute.xlu0 %3303  ;;  %v6385_v13 = vpack.i.bf16 %v3341_v3, %v3340_v11  ;;  %v3363_v51 = vadd.f32 %v9647_v8, %v3359_v48  ;;  %v6358_v53 = vunpack.i.l.bf16 %v6357_v22  ;;  %v6359_v42 = vunpack.i.h.bf16 %v6357_v22 }
0x1793   :  { %v8470_v14 = vadd.f32 %v8458_v23, %v3294_v37  ;;  %v6410_v37 = vpack.i.bf16 %v8456_v20, %v8453_v59  ;;  %v8506_v22 = vadd.s32 144, %v9817_v17  ;;  %v5217_v59 = vsel %vm3805_vm14, 1.0, %v9828_v26 }
0x1794   :  { %6386 = vrot.lane.b32.xlu0 %v6385_v13, %s7042_s16  ;;  %v3365_v15 = vmax.f32 %v3363_v51, 0.0  ;;  %v5218_v20 = vsel %vm3806_vm0, 1.0, %v9828_v26  ;;  %vm3651_vm9 = vcmp.eq.s32.totalorder %v8621_v61, %v8246_v54  ;;  %vm3813_vm0 = vcmp.eq.s32.totalorder %v8618_v45, %v8233_v55 }
0x1795   :  { %v6362_v16 = vpop.permute.xlu1 %6361  ;;  %vm3646_vm12 = vcmp.eq.s32.totalorder %v8506_v22, %v8246_v54  ;;  %vm3809_vm7 = vcmp.eq.s32.totalorder %v8506_v22, %v8233_v55 }
0x1796   :  { %v6364_v40 = vunpack.i.h.bf16 %v6362_v16  ;;  %v6352_v3 = vpop.permute.xlu0 %6351  ;;  %v6363_v11 = vunpack.i.l.bf16 %v6362_v16  ;;  %3379 = vrot.lane.b32.xlu1 %v3365_v15, %s7043_s17 }
0x1797   :  { %v6354_v48 = vunpack.i.h.bf16 %v6352_v3  ;;  %v6353_v19 = vunpack.i.l.bf16 %v6352_v3 }
0x1798   :  { %6396 = vrot.lane.b32.xlu0 %v6395_v33, %s7041_s1  ;;  %v4389_v13 = vsel %vm4385_vm11, %v8403_v2, %v6364_v40  ;;  %v4388_v3 = vsel %vm4385_vm11, %v8375_v31, %v6363_v11  ;;  %v8861_v31 = vadd.s32 376, %v9817_v17  ;;  %v8871_v2 = vadd.s32 384, %v9817_v17 }
0x1799   :  { %v4387_v34 = vsel %vm4385_vm11, %v8493_v62, %v6354_v48  ;;  %v4386_v44 = vsel %vm4385_vm11, %v8490_v52, %v6353_v19  ;;  %v4441_v33 = vsel %vm4440_vm4, %v6353_v19, %v6358_v53  ;;  %v4442_v15 = vsel %vm4440_vm4, %v6354_v48, %v6359_v42  ;;  %v6377_v8 = vpop.permute.xlu1 %6376 }
0x179a   :  { %v6185_v51 = vpack.c.bf16 %v4387_v34, %v4386_v44  ;;  %v6367_v16 = vpop.permute.xlu0 %6366  ;;  %6391 = vrot.lane.b32.xlu1 %v6390_v24, %s7040_s13  ;;  %v6183_v25 = vpack.c.bf16 %v4442_v15, %v4441_v33  ;;  %v5165_v42 = vsel %vm3644_vm5, 1.0, %v9828_v26  ;;  %v8543_v24 = vadd.s32 152, %v9817_v17 }
0x179b   :  { %v6369_v53 = vunpack.i.h.bf16 %v6367_v16  ;;  %v6368_v19 = vunpack.i.l.bf16 %v6367_v16  ;;  %v6378_v36 = vunpack.i.l.bf16 %v6377_v8  ;;  %v6189_v34 = vpack.c.bf16 %v4389_v13, %v4388_v3 }
0x179c   :  { %6406 = vrot.lane.b32.xlu0 %v6405_v39, %s7041_s1  ;;  %6184 = vmatprep.subr.bf16.mxu1 %v6183_v25  ;;  %v6379_v44 = vunpack.i.h.bf16 %v6377_v8  ;;  %v8557_v33 = vsel %vm3470_vm10, 1.0, %v9828_v26  ;;  %vm3647_vm13 = vcmp.eq.s32.totalorder %v8543_v24, %v8246_v54  ;;  %v8577_v13 = vadd.s32 168, %v9817_v17 }
0x179d   :  { %v4443_v39 = vsel %vm4440_vm4, %v6363_v11, %v6368_v19  ;;  %v4444_v48 = vsel %vm4440_vm4, %v6364_v40, %v6369_v53  ;;  %6186 = vmatpush1.bf16.msra.mxu1 %v6185_v51  ;;  %9848 = vst [vmem:[#allocation24_spill] sm:$0xff] %v8557_v33  ;;  %v5166_v11 = vsel %vm3645_vm6, 1.0, %v9828_v26  ;;  %vm3808_vm5 = vcmp.eq.s32.totalorder %v8485_v1, %v8233_v55 }
0x179e   :  { %v6372_v25 = vpop.permute.xlu0 %6371  ;;  %v6187_v16 = vpack.c.bf16 %v4444_v48, %v4443_v39  ;;  %6401 = vrot.lane.b32.xlu1 %v6400_v41, %s7040_s13  ;;  %v8574_v41 = vadd.s32 160, %v9817_v17  ;;  %v6435_v19 = vpack.i.bf16 %v5166_v11, %v5165_v42  ;;  %v6420_v39 = vpack.i.bf16 %v5216_v56, %v5215_v7 }
0x179f   :  { %v6374_v8 = vunpack.i.h.bf16 %v6372_v25  ;;  %v6373_v40 = vunpack.i.l.bf16 %v6372_v25  ;;  %v5167_v48 = vsel %vm3646_vm12, 1.0, %v9828_v26  ;;  %vm3649_vm2 = vcmp.eq.s32.totalorder %v8577_v13, %v8246_v54 }
0x17a0   :  { %6416 = vrot.lane.b32.xlu0 %v6415_v50, %s7041_s1  ;;  %6188 = vmatprep.subr.bf16.mxu1 %v6187_v16  ;;  %vm3648_vm1 = vcmp.eq.s32.totalorder %v8574_v41, %v8246_v54  ;;  %v5170_v7 = vsel %vm3649_vm2, 1.0, %v9828_v26  ;;  %v5219_v56 = vsel %vm3807_vm3, 1.0, %v9828_v26  ;;  %vm3650_vm6 = vcmp.eq.s32.totalorder %v8618_v45, %v8246_v54 }
0x17a1   :  { %v4391_v51 = vsel %vm4385_vm11, %v8557_v33, %v6374_v8  ;;  %v4390_v50 = vsel %vm4385_vm11, %v8549_v38, %v6373_v40  ;;  %v4445_v15 = vsel %vm4440_vm4, %v6373_v40, %v6378_v36  ;;  %6190 = vmatpush1.bf16.msra.mxu1 %v6189_v34  ;;  %v4446_v53 = vsel %vm4440_vm4, %v6374_v8, %v6379_v44 }
0x17a2   :  { %v6193_v3 = vpack.c.bf16 %v4391_v51, %v4390_v50  ;;  %6411 = vrot.lane.b32.xlu1 %v6410_v37, %s7040_s13  ;;  %v6191_v25 = vpack.c.bf16 %v4446_v53, %v4445_v15  ;;  %v5168_v36 = vsel %vm3647_vm13, 1.0, %v9828_v26  ;;  %v5169_v42 = vsel %vm3648_vm1, 1.0, %v9828_v26 }
0x17a3   :  { %v6445_v37 = vpack.i.bf16 %v5168_v36, %v5167_v48  ;;  %v5220_v34 = vsel %vm3808_vm5, 1.0, %v9828_v26  ;;  %vm3810_vm8 = vcmp.eq.s32.totalorder %v8543_v24, %v8233_v55  ;;  %v8636_v44 = vadd.s32 192, %v9817_v17 }
0x17a4   :  { %6426 = vrot.lane.b32.xlu0 %v6425_v21, %s7041_s1  ;;  %6192 = vmatprep.subr.bf16.mxu1 %v6191_v25  ;;  %v6430_v21 = vpack.i.bf16 %v5218_v20, %v5217_v59  ;;  %v8641_v16 = vadd.s32 200, %v9817_v17  ;;  %v6440_v11 = vpack.i.bf16 %v5220_v34, %v5219_v56  ;;  %v6455_v8 = vpack.i.bf16 %v5170_v7, %v5169_v42 }
0x17a5   :  { %6194 = vmatpush1.bf16.msra.mxu1 %v6193_v3  ;;  %v5171_v40 = vsel %vm3650_vm6, 1.0, %v9828_v26  ;;  %v5221_v51 = vsel %vm3809_vm7, 1.0, %v9828_v26  ;;  %v5222_v50 = vsel %vm3810_vm8, 1.0, %v9828_v26  ;;  %v5172_v15 = vsel %vm3651_vm9, 1.0, %v9828_v26 }
0x17a6   :  { %6421 = vrot.lane.b32.xlu1 %v6420_v39, %s7040_s13  ;;  %vm3652_vm10 = vcmp.eq.s32.totalorder %v8636_v44, %v8246_v54  ;;  %vm3811_vm12 = vcmp.eq.s32.totalorder %v8574_v41, %v8233_v55  ;;  %vm3812_vm13 = vcmp.eq.s32.totalorder %v8577_v13, %v8233_v55  ;;  %vm3653_vm14 = vcmp.eq.s32.totalorder %v8641_v16, %v8246_v54 }
0x17a7   :  { %v3345_v3 = vmul.f32 %v3343_v35, %v8236_v63  ;;  %v6450_v53 = vpack.i.bf16 %v5222_v50, %v5221_v51  ;;  %v5173_v39 = vsel %vm3652_vm10, 1.0, %v9828_v26  ;;  %v5223_v48 = vsel %vm3811_vm12, 1.0, %v9828_v26 }
0x17a8   :  { %6436 = vrot.lane.b32.xlu0 %v6435_v19, %s7041_s1  ;;  %v6465_v19 = vpack.i.bf16 %v5172_v15, %v5171_v40  ;;  %v5224_v25 = vsel %vm3812_vm13, 1.0, %v9828_v26  ;;  %v5174_v36 = vsel %vm3653_vm14, 1.0, %v9828_v26  ;;  %vm3814_vm1 = vcmp.eq.s32.totalorder %v8621_v61, %v8233_v55 }
0x17a9   :  { %v8671_v63 = vadd.s32 208, %v9817_v17  ;;  %v3360_v35 = vadd.f32 %v8415_v30, %v3345_v3  ;;  %v8675_v59 = vadd.s32 216, %v9817_v17  ;;  %v6460_v20 = vpack.i.bf16 %v5224_v25, %v5223_v48 }
0x17aa   :  { %6431 = vrot.lane.b32.xlu1 %v6430_v21, %s7040_s13  ;;  %v5225_v21 = vsel %vm3813_vm0, 1.0, %v9828_v26  ;;  %v5226_v42 = vsel %vm3814_vm1, 1.0, %v9828_v26  ;;  %vm3815_vm3 = vcmp.eq.s32.totalorder %v8636_v44, %v8233_v55  ;;  %vm3816_vm5 = vcmp.eq.s32.totalorder %v8641_v16, %v8233_v55 }
0x17ab   :  { %vm3817_vm2 = vcmp.eq.s32.totalorder %v8671_v63, %v8233_v55  ;;  %v8688_v30 = vadd.s32 224, %v9817_v17  ;;  %v9849_v7 = vstv %s8332_s5  ;;  %vm3818_vm6 = vcmp.eq.s32.totalorder %v8675_v59, %v8233_v55 }
0x17ac   :  { %6446 = vrot.lane.b32.xlu0 %v6445_v37, %s7041_s1  ;;  %v6475_v37 = vpack.i.bf16 %v5174_v36, %v5173_v39  ;;  %v3364_v56 = vadd.f32 %v9849_v7, %v3360_v35  ;;  %v8695_v34 = vadd.s32 232, %v9817_v17  ;;  %v5227_v40 = vsel %vm3815_vm3, 1.0, %v9828_v26 }
0x17ad   :  { %v5228_v51 = vsel %vm3816_vm5, 1.0, %v9828_v26  ;;  %v5230_v50 = vsel %vm3818_vm6, 1.0, %v9828_v26  ;;  %vm3819_vm7 = vcmp.eq.s32.totalorder %v8688_v30, %v8233_v55  ;;  %vm3654_vm8 = vcmp.eq.s32.totalorder %v8671_v63, %v8246_v54 }
0x17ae   :  { %6441 = vrot.lane.b32.xlu1 %v6440_v11, %s7040_s13  ;;  %v6470_v11 = vpack.i.bf16 %v5226_v42, %v5225_v21  ;;  %vm3655_vm9 = vcmp.eq.s32.totalorder %v8675_v59, %v8246_v54  ;;  %v3366_v15 = vmax.f32 %v3364_v56, 0.0  ;;  %vm3820_vm10 = vcmp.eq.s32.totalorder %v8695_v34, %v8233_v55  ;;  %v3302_v42 = vpop.permute.xlu1 %3301 }
0x17af   :  { %v8712_v3 = vadd.s32 240, %v9817_v17  ;;  %v5175_v48 = vsel %vm3654_vm8, 1.0, %v9828_v26  ;;  %v5176_v25 = vsel %vm3655_vm9, 1.0, %v9828_v26  ;;  %v5231_v36 = vsel %vm3819_vm7, 1.0, %v9828_v26 }
0x17b0   :  { %6456 = vrot.lane.b32.xlu0 %v6455_v8, %s7041_s1  ;;  %v5229_v8 = vsel %vm3817_vm2, 1.0, %v9828_v26  ;;  %v5232_v35 = vsel %vm3820_vm10, 1.0, %v9828_v26  ;;  %vm3656_vm12 = vcmp.eq.s32.totalorder %v8688_v30, %v8246_v54  ;;  %vm3657_vm13 = vcmp.eq.s32.totalorder %v8695_v34, %v8246_v54 }
0x17b1   :  { %v6490_v39 = vpack.i.bf16 %v5230_v50, %v5229_v8  ;;  %vm3821_vm14 = vcmp.eq.s32.totalorder %v8712_v3, %v8233_v55  ;;  %v6485_v21 = vpack.i.bf16 %v5176_v25, %v5175_v48  ;;  %v6500_v7 = vpack.i.bf16 %v5232_v35, %v5231_v36 }
0x17b2   :  { %6451 = vrot.lane.b32.xlu1 %v6450_v53, %s7040_s13  ;;  %v8715_v53 = vadd.s32 248, %v9817_v17  ;;  %v5177_v56 = vsel %vm3656_vm12, 1.0, %v9828_v26  ;;  %v5233_v8 = vsel %vm3821_vm14, 1.0, %v9828_v26  ;;  %vm3658_vm1 = vcmp.eq.s32.totalorder %v8712_v3, %v8246_v54 }
0x17b3   :  { %v5179_v48 = vsel %vm3658_vm1, 1.0, %v9828_v26  ;;  %v8848_v38 = vadd.s32 360, %v9817_v17  ;;  %v8858_v33 = vadd.s32 368, %v9817_v17  ;;  %v8884_v52 = vadd.s32 400, %v9817_v17 }
0x17b4   :  { %6466 = vrot.lane.b32.xlu0 %v6465_v19, %s7041_s1  ;;  %v6480_v19 = vpack.i.bf16 %v5228_v51, %v5227_v40  ;;  %vm3822_vm0 = vcmp.eq.s32.totalorder %v8715_v53, %v8233_v55  ;;  %vm3659_vm2 = vcmp.eq.s32.totalorder %v8715_v53, %v8246_v54  ;;  %v3306_v51 = vsel %vm3305_vm15, %v3302_v42, %v8458_v23 }
0x17b5   :  { %v5234_v40 = vsel %vm3822_vm0, 1.0, %v9828_v26  ;;  %v5180_v25 = vsel %vm3659_vm2, 1.0, %v9828_v26  ;;  %v8769_v23 = vadd.s32 272, %v9817_v17  ;;  %v8887_v62 = vadd.s32 408, %v9817_v17 }
0x17b6   :  { %6461 = vrot.lane.b32.xlu1 %v6460_v20, %s7040_s13  ;;  %v8732_v20 = vadd.s32 256, %v9817_v17  ;;  %v6505_v42 = vpack.i.bf16 %v5180_v25, %v5179_v48  ;;  %v8803_v25 = vadd.s32 304, %v9817_v17 }
0x17b7   :  { %9851 = vst [vmem:[#allocation48_spill] sm:$0xff] %v8769_v23  ;;  %vm3825_vm8 = vcmp.eq.s32.totalorder %v8769_v23, %v8233_v55 }
0x17b8   :  { %6476 = vrot.lane.b32.xlu0 %v6475_v37, %s7041_s1  ;;  %v8735_v37 = vadd.s32 264, %v9817_v17  ;;  %vm3660_vm3 = vcmp.eq.s32.totalorder %v8732_v20, %v8246_v54  ;;  %vm3823_vm6 = vcmp.eq.s32.totalorder %v8732_v20, %v8233_v55  ;;  %9856 = vst [vmem:[#allocation57_spill] sm:$0xff] %v8803_v25 }
0x17b9   :  { %v5181_v36 = vsel %vm3660_vm3, 1.0, %v9828_v26 }
0x17ba   :  { %6471 = vrot.lane.b32.xlu1 %v6470_v11, %s7040_s13  ;;  %v5178_v11 = vsel %vm3657_vm13, 1.0, %v9828_v26  ;;  %vm3661_vm5 = vcmp.eq.s32.totalorder %v8735_v37, %v8246_v54  ;;  %vm3824_vm7 = vcmp.eq.s32.totalorder %v8735_v37, %v8233_v55  ;;  %vm3829_vm13 = vcmp.eq.s32.totalorder %v8803_v25, %v8233_v55 }
0x17bb   :  { %v6495_v50 = vpack.i.bf16 %v5178_v11, %v5177_v56  ;;  %v5182_v35 = vsel %vm3661_vm5, 1.0, %v9828_v26  ;;  %v5235_v56 = vsel %vm3823_vm6, 1.0, %v9828_v26  ;;  %v5236_v11 = vsel %vm3824_vm7, 1.0, %v9828_v26 }
0x17bc   :  { %3381 = vrot.lane.b32.xlu0 %v3366_v15, %s7043_s17  ;;  %v9850_v15 = vstv %s8330_s15  ;;  %vm3836_vm6 = vcmp.eq.s32.totalorder %v8848_v38, %v8233_v55  ;;  %vm3837_vm7 = vcmp.eq.s32.totalorder %v8858_v33, %v8233_v55 }
0x17be   :  { %6481 = vrot.lane.b32.xlu1 %v6480_v19, %s7040_s13  ;;  %v3293_v19 = vmul.f32 %v9850_v15, %v8240_v18  ;;  %v6520_v15 = vpack.i.bf16 %v5236_v11, %v5235_v56  ;;  %v8822_v56 = vadd.s32 328, %v9817_v17 }
0x17c0   :  { %6491 = vrot.lane.b32.xlu0 %v6490_v39, %s7040_s13  ;;  %v6510_v39 = vpack.i.bf16 %v5234_v40, %v5233_v8  ;;  %v3309_v18 = vadd.f32 %v3306_v51, %v3293_v19  ;;  %v9649_v8 = vstv %s8741_s18  ;;  %v8780_v40 = vadd.s32 288, %v9817_v17 }
0x17c1   :  { %v5237_v19 = vsel %vm3825_vm8, 1.0, %v9828_v26  ;;  %vm3832_vm1 = vcmp.eq.s32.totalorder %v8822_v56, %v8233_v55  ;;  %vm3838_vm8 = vcmp.eq.s32.totalorder %v8861_v31, %v8233_v55 }
0x17c2   :  { %6486 = vrot.lane.b32.xlu1 %v6485_v21, %s7041_s1  ;;  %v8772_v21 = vadd.s32 280, %v9817_v17  ;;  %9853 = vst [vmem:[#allocation52_spill] sm:$0xff] %v8780_v40  ;;  %v8784_v51 = vadd.f32 %v9649_v8, %v3309_v18  ;;  %vm3827_vm10 = vcmp.eq.s32.totalorder %v8780_v40, %v8233_v55  ;;  %v8845_v8 = vadd.s32 352, %v9817_v17 }
0x17c3   :  { %v5239_v18 = vsel %vm3827_vm10, 1.0, %v9828_v26  ;;  %vm3840_vm10 = vcmp.eq.s32.totalorder %v8874_v27, %v8233_v55 }
0x17c4   :  { %6501 = vrot.lane.b32.xlu0 %v6500_v7, %s7040_s13  ;;  %9852 = vst [vmem:[#allocation30_spill] sm:$0xff] %v8772_v21  ;;  %v6515_v7 = vpack.i.bf16 %v5182_v35, %v5181_v36  ;;  %9854 = vst [vmem:[#allocation46_spill] sm:$0xff] %v8784_v51  ;;  %vm3826_vm9 = vcmp.eq.s32.totalorder %v8772_v21, %v8233_v55  ;;  %v9648_v48 = vmax.f32 %v8784_v51, 0.0  ;;  %v8806_v36 = vadd.s32 312, %v9817_v17 }
0x17c5   :  { %vm3835_vm5 = vcmp.eq.s32.totalorder %v8845_v8, %v8233_v55 }
0x17c6   :  { %6496 = vrot.lane.b32.xlu1 %v6495_v50, %s7041_s1  ;;  %v8791_v50 = vadd.s32 296, %v9817_v17  ;;  %9857 = vst [vmem:[#allocation54_spill] sm:$0xff] %v8806_v36  ;;  %vm3830_vm14 = vcmp.eq.s32.totalorder %v8806_v36, %v8233_v55 }
0x17c8   :  { %6511 = vrot.lane.b32.xlu0 %v6510_v39, %s7040_s13  ;;  %9855 = vst [vmem:[#allocation42_spill] sm:$0xff] %v8791_v50  ;;  %v5238_v39 = vsel %vm3826_vm9, 1.0, %v9828_v26  ;;  %vm3828_vm12 = vcmp.eq.s32.totalorder %v8791_v50, %v8233_v55  ;;  %vm3839_vm9 = vcmp.eq.s32.totalorder %v8871_v2, %v8233_v55 }
0x17c9   :  { %v6535_v35 = vpack.i.bf16 %v5238_v39, %v5237_v19  ;;  %v5242_v19 = vsel %vm3830_vm14, 1.0, %v9828_v26  ;;  %v8832_v39 = vadd.s32 336, %v9817_v17  ;;  %vm3843_vm14 = vcmp.eq.s32.totalorder %v8897_v29, %v8233_v55 }
0x17ca   :  { %6506 = vrot.lane.b32.xlu1 %v6505_v42, %s7041_s1  ;;  %v5240_v42 = vsel %vm3828_vm12, 1.0, %v9828_v26  ;;  %vm3841_vm12 = vcmp.eq.s32.totalorder %v8884_v52, %v8233_v55  ;;  %v5255_v57 = vsel %vm3843_vm14, 1.0, %v9828_v26  ;;  %vm3665_vm14 = vcmp.eq.s32.totalorder %v8791_v50, %v8246_v54 }
0x17cb   :  { %v6545_v11 = vpack.i.bf16 %v5240_v42, %v5239_v18  ;;  %v5244_v42 = vsel %vm3832_vm1, 1.0, %v9828_v26  ;;  %vm3833_vm2 = vcmp.eq.s32.totalorder %v8832_v39, %v8233_v55  ;;  %vm3471_vm1 = vcmp.eq.s32.totalorder %v8305_v9, %v8126_v4 }
0x17cc   :  { %6516 = vrot.lane.b32.xlu0 %v6515_v7, %s7041_s1  ;;  %v8819_v7 = vadd.s32 320, %v9817_v17 }
0x17ce   :  { %6521 = vrot.lane.b32.xlu1 %v6520_v15, %s7040_s13  ;;  %9858 = vst [vmem:[#allocation41_spill] sm:$0xff] %v8819_v7  ;;  %v5241_v15 = vsel %vm3829_vm13, 1.0, %v9828_v26  ;;  %vm3831_vm0 = vcmp.eq.s32.totalorder %v8819_v7, %v8233_v55  ;;  %vm3842_vm13 = vcmp.eq.s32.totalorder %v8887_v62, %v8233_v55 }
0x17cf   :  { %v5243_v18 = vsel %vm3831_vm0, 1.0, %v9828_v26  ;;  %vm3844_vm0 = vcmp.eq.s32.totalorder %v8900_v10, %v8233_v55 }
0x17d0   :  { %3392 = vrot.lane.b32.xlu0 %v9648_v48, %s7039_s12  ;;  %v8835_v48 = vadd.s32 344, %v9817_v17  ;;  %v5256_v49 = vsel %vm3844_vm0, 1.0, %v9828_v26  ;;  %vm3477_vm0 = vcmp.eq.s32.totalorder %v8378_v6, %v8126_v4 }
0x17d2   :  { %9859 = vst [vmem:[#allocation56_spill] sm:$0xff] %v8835_v48  ;;  %vm3834_vm3 = vcmp.eq.s32.totalorder %v8835_v48, %v8233_v55  ;;  %v8918_v55 = vpop.permute.xlu0 %6381 }
0x17d4   :  { %6536 = vrot.lane.b32.xlu0 %v6535_v35, %s7040_s13  ;;  %v6555_v35 = vpack.i.bf16 %v5242_v19, %v5241_v15  ;;  %v5245_v15 = vsel %vm3833_vm2, 1.0, %v9828_v26  ;;  %v5246_v19 = vsel %vm3834_vm3, 1.0, %v9828_v26  ;;  %vm3472_vm2 = vcmp.eq.s32.totalorder %v8308_v47, %v8126_v4 }
0x17d5   :  { %vm3662_vm3 = vcmp.eq.s32.totalorder %v8769_v23, %v8246_v54 }
0x17d8   :  { %6546 = vrot.lane.b32.xlu0 %v6545_v11, %s7040_s13  ;;  %v6565_v11 = vpack.i.bf16 %v5244_v42, %v5243_v18  ;;  %v5247_v18 = vsel %vm3835_vm5, 1.0, %v9828_v26  ;;  %v5248_v42 = vsel %vm3836_vm6, 1.0, %v9828_v26  ;;  %vm3663_vm5 = vcmp.eq.s32.totalorder %v8772_v21, %v8246_v54 }
0x17d9   :  { %vm3473_vm6 = vcmp.eq.s32.totalorder %v8335_v28, %v8126_v4 }
0x17dc   :  { %6556 = vrot.lane.b32.xlu0 %v6555_v35, %s7040_s13  ;;  %v6575_v35 = vpack.i.bf16 %v5246_v19, %v5245_v15  ;;  %v5249_v15 = vsel %vm3837_vm7, 1.0, %v9828_v26  ;;  %v5250_v19 = vsel %vm3838_vm8, 1.0, %v9828_v26  ;;  %vm3474_vm7 = vcmp.eq.s32.totalorder %v8338_v32, %v8126_v4 }
0x17dd   :  { %vm3475_vm8 = vcmp.eq.s32.totalorder %v8341_v46, %v8126_v4 }
0x17e0   :  { %6566 = vrot.lane.b32.xlu0 %v6565_v11, %s7040_s13  ;;  %v6585_v11 = vpack.i.bf16 %v5248_v42, %v5247_v18  ;;  %v5251_v18 = vsel %vm3839_vm9, 1.0, %v9828_v26  ;;  %v5252_v42 = vsel %vm3840_vm10, 1.0, %v9828_v26  ;;  %vm3476_vm9 = vcmp.eq.s32.totalorder %v8344_v43, %v8126_v4 }
0x17e1   :  { %vm3373_vm10 = vcmask 121856   ;;  %v6383_v43 = vunpack.i.l.bf16 %v8918_v55 }
0x17e4   :  { %6576 = vrot.lane.b32.xlu0 %v6575_v35, %s7040_s13  ;;  %v6595_v35 = vpack.i.bf16 %v5250_v19, %v5249_v15  ;;  %v5253_v15 = vsel %vm3841_vm12, 1.0, %v9828_v26  ;;  %v5254_v19 = vsel %vm3842_vm13, 1.0, %v9828_v26  ;;  %vm3383_vm12 = vcmask 244736  }
0x17e5   :  { %v6615_v60 = vpack.i.bf16 %v5254_v19, %v5253_v15  ;;  %v8944_v15 = vsel %vm3473_vm6, 1.0, %v9828_v26  ;;  %v8947_v19 = vsel %vm3474_vm7, 1.0, %v9828_v26  ;;  %vm3664_vm13 = vcmp.eq.s32.totalorder %v8780_v40, %v8246_v54 }
0x17e6   :  { %9863 = vst [vmem:[#allocation50_spill] sm:$0xff] %v8944_v15  ;;  %9864 = vst [vmem:[#allocation51_spill] sm:$0xff] %v8947_v19  ;;  %vm3480_vm6 = vcmp.eq.s32.totalorder %v8409_v12, %v8126_v4  ;;  %vm3481_vm7 = vcmp.eq.s32.totalorder %v8467_v58, %v8126_v4 }
0x17e8   :  { %6586 = vrot.lane.b32.xlu0 %v6585_v11, %s7040_s13  ;;  %v6605_v11 = vpack.i.bf16 %v5252_v42, %v5251_v18  ;;  %v8939_v18 = vsel %vm3472_vm2, 1.0, %v9828_v26  ;;  %v5183_v42 = vsel %vm3662_vm3, 1.0, %v9828_v26  ;;  %vm3666_vm2 = vcmp.eq.s32.totalorder %v8803_v25, %v8246_v54 }
0x17e9   :  { %9862 = vst [vmem:[#allocation43_spill] sm:$0xff] %v8939_v18  ;;  %vm3667_vm3 = vcmp.eq.s32.totalorder %v8806_v36, %v8246_v54  ;;  %v8992_v50 = vsel %vm3666_vm2, 1.0, %v9828_v26  ;;  %vm3485_vm2 = vcmp.eq.s32.totalorder %v8574_v41, %v8126_v4 }
0x17ec   :  { %6596 = vrot.lane.b32.xlu0 %v6595_v35, %s7040_s13  ;;  %v6625_v35 = vpack.i.bf16 %v5256_v49, %v5255_v57  ;;  %v9860_v49 = vstv %s8741_s18 }
0x17ed   :  { %v3314_v57 = vadd.f32 %v9860_v49, %v8470_v14  ;;  %v8950_v14 = vsel %vm3475_vm8, 1.0, %v9828_v26  ;;  %v6384_v49 = vunpack.i.h.bf16 %v8918_v55  ;;  %v8970_v55 = vsel %vm3664_vm13, 1.0, %v9828_v26 }
0x17ee   :  { %9865 = vst [vmem:[#allocation58_spill] sm:$0xff] %v8950_v14  ;;  %vm3482_vm8 = vcmp.eq.s32.totalorder %v8485_v1, %v8126_v4  ;;  %vm3669_vm13 = vcmp.eq.s32.totalorder %v8822_v56, %v8246_v54 }
0x17ef   :  { %v3316_v46 = vmax.f32 %v3314_v57, 0.0  ;;  %v5186_v57 = vsel %vm3665_vm14, 1.0, %v9828_v26  ;;  %vm3484_vm14 = vcmp.eq.s32.totalorder %v8543_v24, %v8126_v4 }
0x17f0   :  { %6606 = vrot.lane.b32.xlu0 %v6605_v11, %s7040_s13  ;;  %v5184_v11 = vsel %vm3663_vm5, 1.0, %v9828_v26  ;;  %vm3479_vm5 = vcmp.eq.s32.totalorder %v8406_v5, %v8126_v4 }
0x17f1   :  { %v6530_v9 = vpack.i.bf16 %v5184_v11, %v5183_v42 }
0x17f4   :  { %6616 = vrot.lane.b32.xlu0 %v6615_v60, %s7040_s13  ;;  %v8936_v60 = vsel %vm3471_vm1, 1.0, %v9828_v26  ;;  %vm3478_vm1 = vcmp.eq.s32.totalorder %v8390_v0, %v8126_v4  ;;  %v6540_v0 = vpack.i.bf16 %v5186_v57, %v8970_v55 }
0x17f5   :  { %9861 = vst [vmem:[#allocation55_spill] sm:$0xff] %v8936_v60  ;;  %v4392_v42 = vsel %vm4385_vm11, %v8936_v60, %v6383_v43 }
0x17f8   :  { %6626 = vrot.lane.b32.xlu0 %v6625_v35, %s7040_s13  ;;  %v8953_v35 = vsel %vm3476_vm9, 1.0, %v9828_v26  ;;  %vm3668_vm9 = vcmp.eq.s32.totalorder %v8819_v7, %v8246_v54  ;;  %s4703_s13 = sld [smem:[#allocation12]] }
0x17f9   :  { %9866 = vst [vmem:[#allocation59_spill] sm:$0xff] %v8953_v35  ;;  %v5189_v57 = vsel %vm3668_vm9, 1.0, %v9828_v26  ;;  %vm3674_vm9 = vcmp.eq.s32.totalorder %v8858_v33, %v8246_v54 }
0x1806   :  { %v6387_v47 = vpop.permute.xlu0 %6386 }
0x1807   :  { %v6389_v32 = vunpack.i.h.bf16 %v6387_v47  ;;  %v6388_v28 = vunpack.i.l.bf16 %v6387_v47  ;;  %v4393_v47 = vsel %vm4385_vm11, %v8939_v18, %v6384_v49  ;;  %v8995_v18 = vsel %vm3667_vm3, 1.0, %v9828_v26 }
0x1808   :  { %v8985_v36 = vpop.permute.xlu1 %3379  ;;  %v6197_v6 = vpack.c.bf16 %v4393_v47, %v4392_v42  ;;  %vm3486_vm3 = vcmp.eq.s32.totalorder %v8577_v13, %v8126_v4 }
0x1809   :  { %v3374_v11 = vsel %vm3373_vm10, %v6388_v28, %v6389_v32  ;;  %v8983_v17 = vsel %vm3373_vm10, %v3316_v46, %v6388_v28  ;;  %v9005_v32 = vsel %vm3477_vm0, 1.0, %v9828_v26  ;;  %v9011_v46 = vsel %vm3478_vm1, 1.0, %v9828_v26 }
0x180a   :  { %9867 = vst [vmem:[#allocation60_spill] sm:$0xff] %v8983_v17  ;;  %v8989_v25 = vsel %vm3383_vm12, %v3374_v11, %v8985_v36  ;;  %v6397_v5 = vpop.permute.xlu0 %6396  ;;  %v9014_v11 = vsel %vm3479_vm5, 1.0, %v9828_v26  ;;  %vm3483_vm10 = vcmp.eq.s32.totalorder %v8506_v22, %v8126_v4  ;;  %vm3670_vm0 = vcmp.eq.s32.totalorder %v8832_v39, %v8246_v54 }
0x180b   :  { %9868 = vst [vmem:[#allocation61_spill] sm:$0xff] %v8989_v25  ;;  %v6525_v28 = vpack.i.bf16 %v8989_v25, %v8983_v17  ;;  %v6399_v60 = vunpack.i.h.bf16 %v6397_v5  ;;  %v6398_v58 = vunpack.i.l.bf16 %v6397_v5  ;;  %v9020_v25 = vsel %vm3480_vm6, 1.0, %v9828_v26 }
0x180c   :  { %v6392_v40 = vpop.permute.xlu1 %6391  ;;  %v6550_v17 = vpack.i.bf16 %v8995_v18, %v8992_v50  ;;  %v9029_v5 = vsel %vm3481_vm7, 1.0, %v9828_v26  ;;  %v9051_v1 = vsel %vm3483_vm10, 1.0, %v9828_v26  ;;  %vm3671_vm1 = vcmp.eq.s32.totalorder %v8835_v48, %v8246_v54 }
0x180d   :  { %6526 = vrot.lane.b32.xlu1 %v6525_v28, %s7039_s12  ;;  %v6394_v51 = vunpack.i.h.bf16 %v6392_v40  ;;  %v6393_v21 = vunpack.i.l.bf16 %v6392_v40  ;;  %v9036_v28 = vsel %vm3482_vm8, 1.0, %v9828_v26  ;;  %v4395_v50 = vsel %vm4385_vm11, %v8947_v19, %v6399_v60 }
0x180e   :  { %v6407_v12 = vpop.permute.xlu0 %6406  ;;  %v4394_v40 = vsel %vm4385_vm11, %v8944_v15, %v6398_v58  ;;  %vm3672_vm5 = vcmp.eq.s32.totalorder %v8845_v8, %v8246_v54  ;;  %vm3487_vm6 = vcmp.eq.s32.totalorder %v8618_v45, %v8126_v4  ;;  %vm3673_vm7 = vcmp.eq.s32.totalorder %v8848_v38, %v8246_v54 }
0x180f   :  { %v6409_v47 = vunpack.i.h.bf16 %v6407_v12  ;;  %v6408_v42 = vunpack.i.l.bf16 %v6407_v12  ;;  %v4447_v18 = vsel %vm4440_vm4, %v6383_v43, %v6393_v21  ;;  %v4448_v55 = vsel %vm4440_vm4, %v6384_v49, %v6394_v51 }
0x1810   :  { %v6195_v22 = vpack.c.bf16 %v4448_v55, %v4447_v18  ;;  %v6402_v12 = vpop.permute.xlu1 %6401  ;;  %v5190_v51 = vsel %vm3669_vm13, 1.0, %v9828_v26  ;;  %vm3488_vm8 = vcmp.eq.s32.totalorder %v8621_v61, %v8126_v4  ;;  %vm3675_vm10 = vcmp.eq.s32.totalorder %v8861_v31, %v8246_v54 }
0x1811   :  { %6531 = vrot.lane.b32.xlu1 %v6530_v9, %s7041_s1  ;;  %v6404_v7 = vunpack.i.h.bf16 %v6402_v12  ;;  %v6403_v23 = vunpack.i.l.bf16 %v6402_v12  ;;  %v6201_v9 = vpack.c.bf16 %v4395_v50, %v4394_v40  ;;  %v4397_v43 = vsel %vm4385_vm11, %v8953_v35, %v6409_v47 }
0x1812   :  { %v6417_v19 = vpop.permute.xlu0 %6416  ;;  %v4396_v21 = vsel %vm4385_vm11, %v8950_v14, %v6408_v42  ;;  %6196 = vmatprep.subr.bf16.mxu1 %v6195_v22  ;;  %v9072_v22 = vsel %vm3484_vm14, 1.0, %v9828_v26  ;;  %vm3676_vm13 = vcmp.eq.s32.totalorder %v8871_v2, %v8246_v54  ;;  %vm3677_vm14 = vcmp.eq.s32.totalorder %v8874_v27, %v8246_v54 }
0x1813   :  { %v6419_v49 = vunpack.i.h.bf16 %v6417_v19  ;;  %v6418_v18 = vunpack.i.l.bf16 %v6417_v19  ;;  %6198 = vmatpush1.bf16.msra.mxu1 %v6197_v6  ;;  %v4449_v55 = vsel %vm4440_vm4, %v6398_v58, %v6403_v23  ;;  %v4450_v12 = vsel %vm4440_vm4, %v6399_v60, %v6404_v7 }
0x1814   :  { %v6412_v50 = vpop.permute.xlu1 %6411  ;;  %v6199_v40 = vpack.c.bf16 %v4450_v12, %v4449_v55  ;;  %v5191_v19 = vsel %vm3670_vm0, 1.0, %v9828_v26  ;;  %v5192_v6 = vsel %vm3671_vm1, 1.0, %v9828_v26  ;;  %v6205_v24 = vpack.c.bf16 %v4397_v43, %v4396_v21 }
0x1815   :  { %6541 = vrot.lane.b32.xlu1 %v6540_v0, %s7041_s1  ;;  %v6414_v0 = vunpack.i.h.bf16 %v6412_v50  ;;  %v6413_v23 = vunpack.i.l.bf16 %v6412_v50  ;;  %v6560_v55 = vpack.i.bf16 %v5190_v51, %v5189_v57  ;;  %v4399_v12 = vsel %vm4385_vm11, %v9011_v46, %v6419_v49 }
0x1816   :  { %v6427_v58 = vpop.permute.xlu0 %6426  ;;  %6200 = vmatprep.subr.bf16.mxu1 %v6199_v40  ;;  %v4398_v14 = vsel %vm4385_vm11, %v9005_v32, %v6418_v18  ;;  %v6570_v43 = vpack.i.bf16 %v5192_v6, %v5191_v19  ;;  %v9097_v57 = vsel %vm3485_vm2, 1.0, %v9828_v26  ;;  %v5193_v6 = vsel %vm3672_vm5, 1.0, %v9828_v26 }
0x1817   :  { %v6429_v7 = vunpack.i.h.bf16 %v6427_v58  ;;  %v6428_v60 = vunpack.i.l.bf16 %v6427_v58  ;;  %6202 = vmatpush1.bf16.msra.mxu1 %v6201_v9  ;;  %v4451_v50 = vsel %vm4440_vm4, %v6408_v42, %v6413_v23  ;;  %v4452_v35 = vsel %vm4440_vm4, %v6409_v47, %v6414_v0 }
0x1818   :  { %v6422_v15 = vpop.permute.xlu1 %6421  ;;  %v6203_v48 = vpack.c.bf16 %v4452_v35, %v4451_v50  ;;  %v9103_v9 = vsel %vm3486_vm3, 1.0, %v9828_v26  ;;  %vm3489_vm0 = vcmp.eq.s32.totalorder %v8636_v44, %v8126_v4  ;;  %vm3678_vm1 = vcmp.eq.s32.totalorder %v8884_v52, %v8246_v54 }
0x1819   :  { %6551 = vrot.lane.b32.xlu1 %v6550_v17, %s7041_s1  ;;  %v6424_v21 = vunpack.i.h.bf16 %v6422_v15  ;;  %v6423_v47 = vunpack.i.l.bf16 %v6422_v15  ;;  %v6209_v17 = vpack.c.bf16 %v4399_v12, %v4398_v14  ;;  %v4401_v41 = vsel %vm4385_vm11, %v9020_v25, %v6429_v7 }
0x181a   :  { %v6437_v42 = vpop.permute.xlu0 %6436  ;;  %v4400_v35 = vsel %vm4385_vm11, %v9014_v11, %v6428_v60  ;;  %6204 = vmatprep.subr.bf16.mxu1 %v6203_v48  ;;  %v9125_v48 = vsel %vm3487_vm6, 1.0, %v9828_v26  ;;  %vm3679_vm2 = vcmp.eq.s32.totalorder %v8887_v62, %v8246_v54  ;;  %vm3490_vm3 = vcmp.eq.s32.totalorder %v8641_v16, %v8126_v4 }
0x181b   :  { %v6439_v13 = vunpack.i.h.bf16 %v6437_v42  ;;  %v6438_v51 = vunpack.i.l.bf16 %v6437_v42  ;;  %6206 = vmatpush1.bf16.msra.mxu1 %v6205_v24  ;;  %v4453_v15 = vsel %vm4440_vm4, %v6418_v18, %v6423_v47  ;;  %v4454_v40 = vsel %vm4440_vm4, %v6419_v49, %v6424_v21 }
0x181c   :  { %v6432_v14 = vpop.permute.xlu1 %6431  ;;  %v6207_v19 = vpack.c.bf16 %v4454_v40, %v4453_v15  ;;  %v5194_v49 = vsel %vm3673_vm7, 1.0, %v9828_v26  ;;  %v6213_v23 = vpack.c.bf16 %v4401_v41, %v4400_v35  ;;  %v5118_v41 = vsel %vm3488_vm8, 1.0, %v9828_v26 }
0x181d   :  { %6561 = vrot.lane.b32.xlu1 %v6560_v55, %s7041_s1  ;;  %v6434_v0 = vunpack.i.h.bf16 %v6432_v14  ;;  %v6433_v18 = vunpack.i.l.bf16 %v6432_v14  ;;  %v4403_v45 = vsel %vm4385_vm11, %v9036_v28, %v6439_v13  ;;  %v4402_v12 = vsel %vm4385_vm11, %v9029_v5, %v6438_v51 }
0x181e   :  { %v6447_v58 = vpop.permute.xlu0 %6446  ;;  %6208 = vmatprep.subr.bf16.mxu1 %v6207_v19  ;;  %v6580_v47 = vpack.i.bf16 %v5194_v49, %v5193_v6  ;;  %v5195_v15 = vsel %vm3674_vm9, 1.0, %v9828_v26  ;;  %vm3680_vm5 = vcmp.eq.s32.totalorder %v8897_v29, %v8246_v54  ;;  %vm3681_vm6 = vcmp.eq.s32.totalorder %v8900_v10, %v8246_v54 }
0x181f   :  { %v6449_v24 = vunpack.i.h.bf16 %v6447_v58  ;;  %v6448_v55 = vunpack.i.l.bf16 %v6447_v58  ;;  %6210 = vmatpush1.bf16.msra.mxu1 %v6209_v17  ;;  %v4455_v50 = vsel %vm4440_vm4, %v6428_v60, %v6433_v18  ;;  %v4456_v42 = vsel %vm4440_vm4, %v6429_v7, %v6434_v0 }
0x1820   :  { %v6442_v21 = vpop.permute.xlu1 %6441  ;;  %v6211_v35 = vpack.c.bf16 %v4456_v42, %v4455_v50  ;;  %v5196_v7 = vsel %vm3675_vm10, 1.0, %v9828_v26  ;;  %v5202_v44 = vsel %vm3681_vm6, 1.0, %v9828_v26  ;;  %vm3491_vm7 = vcmp.eq.s32.totalorder %v8671_v63, %v8126_v4 }
0x1821   :  { %6571 = vrot.lane.b32.xlu1 %v6570_v43, %s7041_s1  ;;  %v6444_v40 = vunpack.i.h.bf16 %v6442_v21  ;;  %v6443_v60 = vunpack.i.l.bf16 %v6442_v21  ;;  %v6217_v43 = vpack.c.bf16 %v4403_v45, %v4402_v12  ;;  %v4405_v14 = vsel %vm4385_vm11, %v9072_v22, %v6449_v24 }
0x1822   :  { %v6457_v17 = vpop.permute.xlu0 %6456  ;;  %v4404_v61 = vsel %vm4385_vm11, %v9051_v1, %v6448_v55  ;;  %6212 = vmatprep.subr.bf16.mxu1 %v6211_v35  ;;  %v6590_v49 = vpack.i.bf16 %v5196_v7, %v5195_v15  ;;  %v5197_v1 = vsel %vm3676_vm13, 1.0, %v9828_v26  ;;  %vm3492_vm8 = vcmp.eq.s32.totalorder %v8675_v59, %v8126_v4 }
0x1823   :  { %v6459_v19 = vunpack.i.h.bf16 %v6457_v17  ;;  %v6458_v6 = vunpack.i.l.bf16 %v6457_v17  ;;  %6214 = vmatpush1.bf16.msra.mxu1 %v6213_v23  ;;  %v4457_v58 = vsel %vm4440_vm4, %v6438_v51, %v6443_v60  ;;  %v4458_v0 = vsel %vm4440_vm4, %v6439_v13, %v6444_v40 }
0x1824   :  { %v6452_v18 = vpop.permute.xlu1 %6451  ;;  %v6215_v22 = vpack.c.bf16 %v4458_v0, %v4457_v58  ;;  %v5198_v51 = vsel %vm3677_vm14, 1.0, %v9828_v26  ;;  %v6221_v13 = vpack.c.bf16 %v4405_v14, %v4404_v61  ;;  %vm3493_vm9 = vcmp.eq.s32.totalorder %v8688_v30, %v8126_v4 }
0x1825   :  { %6581 = vrot.lane.b32.xlu1 %v6580_v47, %s7041_s1  ;;  %v6454_v12 = vunpack.i.h.bf16 %v6452_v18  ;;  %v6453_v23 = vunpack.i.l.bf16 %v6452_v18  ;;  %v4407_v21 = vsel %vm4385_vm11, %v9103_v9, %v6459_v19  ;;  %v4406_v47 = vsel %vm4385_vm11, %v9097_v57, %v6458_v6 }
0x1826   :  { %v6467_v45 = vpop.permute.xlu0 %6466  ;;  %6216 = vmatprep.subr.bf16.mxu1 %v6215_v22  ;;  %v6600_v40 = vpack.i.bf16 %v5198_v51, %v5197_v1  ;;  %v5199_v9 = vsel %vm3678_vm1, 1.0, %v9828_v26  ;;  %v5119_v22 = vsel %vm3489_vm0, 1.0, %v9828_v26  ;;  %vm3494_vm10 = vcmp.eq.s32.totalorder %v8695_v34, %v8126_v4 }
0x1827   :  { %v6469_v50 = vunpack.i.h.bf16 %v6467_v45  ;;  %v6468_v42 = vunpack.i.l.bf16 %v6467_v45  ;;  %6218 = vmatpush1.bf16.msra.mxu1 %v6217_v43  ;;  %v4459_v35 = vsel %vm4440_vm4, %v6448_v55, %v6453_v23  ;;  %v4460_v15 = vsel %vm4440_vm4, %v6449_v24, %v6454_v12 }
0x1828   :  { %v6462_v17 = vpop.permute.xlu1 %6461  ;;  %v6219_v60 = vpack.c.bf16 %v4460_v15, %v4459_v35  ;;  %v5200_v55 = vsel %vm3679_vm2, 1.0, %v9828_v26  ;;  %v6225_v24 = vpack.c.bf16 %v4407_v21, %v4406_v47  ;;  %v5123_v34 = vsel %vm3493_vm9, 1.0, %v9828_v26 }
0x1829   :  { %6591 = vrot.lane.b32.xlu1 %v6590_v49, %s7041_s1  ;;  %v6464_v57 = vunpack.i.h.bf16 %v6462_v17  ;;  %v6463_v43 = vunpack.i.l.bf16 %v6462_v17  ;;  %v4409_v14 = vsel %vm4385_vm11, %v5118_v41, %v6469_v50  ;;  %v4408_v61 = vsel %vm4385_vm11, %v9125_v48, %v6468_v42 }
0x182a   :  { %v6477_v7 = vpop.permute.xlu0 %6476  ;;  %6220 = vmatprep.subr.bf16.mxu1 %v6219_v60  ;;  %v5120_v48 = vsel %vm3490_vm3, 1.0, %v9828_v26  ;;  %v6610_v1 = vpack.i.bf16 %v5200_v55, %v5199_v9  ;;  %v6229_v16 = vpack.c.bf16 %v4409_v14, %v4408_v61  ;;  %v5121_v55 = vsel %vm3491_vm7, 1.0, %v9828_v26 }
0x182b   :  { %v6479_v58 = vunpack.i.h.bf16 %v6477_v7  ;;  %v6478_v0 = vunpack.i.l.bf16 %v6477_v7  ;;  %6222 = vmatpush1.bf16.msra.mxu1 %v6221_v13  ;;  %v4461_v18 = vsel %vm4440_vm4, %v6458_v6, %v6463_v43  ;;  %v4462_v49 = vsel %vm4440_vm4, %v6459_v19, %v6464_v57 }
0x182c   :  { %v6472_v41 = vpop.permute.xlu1 %6471  ;;  %v6223_v45 = vpack.c.bf16 %v4462_v49, %v4461_v18  ;;  %v5201_v19 = vsel %vm3680_vm5, 1.0, %v9828_v26  ;;  %vm3496_vm13 = vcmp.eq.s32.totalorder %v8715_v53, %v8126_v4  ;;  %vm3497_vm14 = vcmp.eq.s32.totalorder %v8732_v20, %v8126_v4 }
0x182d   :  { %6601 = vrot.lane.b32.xlu1 %v6600_v40, %s7041_s1  ;;  %v6474_v23 = vunpack.i.h.bf16 %v6472_v41  ;;  %v6473_v6 = vunpack.i.l.bf16 %v6472_v41  ;;  %v4411_v51 = vsel %vm4385_vm11, %v5120_v48, %v6479_v58  ;;  %v4410_v13 = vsel %vm4385_vm11, %v5119_v22, %v6478_v0 }
0x182e   :  { %v3382_v12 = vpop.permute.xlu0 %3381  ;;  %6224 = vmatprep.subr.bf16.mxu1 %v6223_v45  ;;  %v6620_v15 = vpack.i.bf16 %v5202_v44, %v5201_v19  ;;  %v6233_v9 = vpack.c.bf16 %v4411_v51, %v4410_v13  ;;  %vm3498_vm0 = vcmp.eq.s32.totalorder %v8735_v37, %v8126_v4  ;;  %vm3506_vm9 = vcmp.eq.s32.totalorder %v8822_v56, %v8126_v4 }
0x182f   :  { %6226 = vmatpush1.bf16.msra.mxu1 %v6225_v24  ;;  %v4463_v21 = vsel %vm4440_vm4, %v6468_v42, %v6473_v6  ;;  %v4464_v47 = vsel %vm4440_vm4, %v6469_v50, %v6474_v23  ;;  %v5122_v24 = vsel %vm3492_vm8, 1.0, %v9828_v26  ;;  %v5128_v37 = vsel %vm3498_vm0, 1.0, %v9828_v26 }
0x1830   :  { %v6482_v35 = vpop.permute.xlu1 %6481  ;;  %v6227_v17 = vpack.c.bf16 %v4464_v47, %v4463_v21  ;;  %v5126_v47 = vsel %vm3496_vm13, 1.0, %v9828_v26  ;;  %vm3509_vm13 = vcmp.eq.s32.totalorder %v8845_v8, %v8126_v4  ;;  %vm3511_vm0 = vcmp.eq.s32.totalorder %v8858_v33, %v8126_v4 }
0x1831   :  { %6611 = vrot.lane.b32.xlu1 %v6610_v1, %s7041_s1  ;;  %v6484_v60 = vunpack.i.h.bf16 %v6482_v35  ;;  %v6483_v54 = vunpack.i.l.bf16 %v6482_v35  ;;  %v5139_v8 = vsel %vm3509_vm13, 1.0, %v9828_v26  ;;  %vm4495_vm13 = vcmask 359424  }
0x1832   :  { %v6492_v40 = vpop.permute.xlu0 %6491  ;;  %6228 = vmatprep.subr.bf16.mxu1 %v6227_v17 }
0x1833   :  { %v6494_v7 = vunpack.i.h.bf16 %v6492_v40  ;;  %v6493_v42 = vunpack.i.l.bf16 %v6492_v40  ;;  %6230 = vmatpush1.bf16.msra.mxu1 %v6229_v16  ;;  %v4465_v50 = vsel %vm4440_vm4, %v6478_v0, %v6483_v54  ;;  %v4466_v57 = vsel %vm4440_vm4, %v6479_v58, %v6484_v60 }
0x1834   :  { %v6231_v43 = vpack.c.bf16 %v4466_v57, %v4465_v50  ;;  %v6487_v63 = vpop.permute.xlu1 %6486  ;;  %v9230_v58 = vsel %vm3383_vm12, %v8985_v36, %v3382_v12  ;;  %v5124_v36 = vsel %vm3494_vm10, 1.0, %v9828_v26  ;;  %vm3495_vm12 = vcmp.eq.s32.totalorder %v8712_v3, %v8126_v4 }
0x1835   :  { %6621 = vrot.lane.b32.xlu1 %v6620_v15, %s7041_s1  ;;  %v6489_v61 = vunpack.i.h.bf16 %v6487_v63  ;;  %v6488_v59 = vunpack.i.l.bf16 %v6487_v63  ;;  %v5125_v53 = vsel %vm3495_vm12, 1.0, %v9828_v26  ;;  %v5127_v15 = vsel %vm3497_vm14, 1.0, %v9828_v26 }
0x1836   :  { %v6502_v14 = vpop.permute.xlu0 %6501  ;;  %6232 = vmatprep.subr.bf16.mxu1 %v6231_v43  ;;  %vm3507_vm10 = vcmp.eq.s32.totalorder %v8832_v39, %v8126_v4  ;;  %vm3510_vm14 = vcmp.eq.s32.totalorder %v8848_v38, %v8126_v4 }
0x1837   :  { %v6504_v0 = vunpack.i.h.bf16 %v6502_v14  ;;  %v6503_v18 = vunpack.i.l.bf16 %v6502_v14  ;;  %6234 = vmatpush1.bf16.msra.mxu1 %v6233_v9  ;;  %v4413_v49 = vsel %vm4385_vm11, %v5122_v24, %v6489_v61  ;;  %v4412_v22 = vsel %vm4385_vm11, %v5121_v55, %v6488_v59 }
0x1838   :  { %v4467_v48 = vsel %vm4440_vm4, %v6488_v59, %v6493_v42  ;;  %v4468_v41 = vsel %vm4440_vm4, %v6489_v61, %v6494_v7  ;;  %v6237_v30 = vpack.c.bf16 %v4413_v49, %v4412_v22  ;;  %v6497_v1 = vpop.permute.xlu1 %6496  ;;  %v5137_v39 = vsel %vm3507_vm10, 1.0, %v9828_v26 }
0x1839   :  { %3398 = vrot.lane.b32.xlu1 %v9230_v58, %s7039_s12  ;;  %v6235_v45 = vpack.c.bf16 %v4468_v41, %v4467_v48  ;;  %v6499_v23 = vunpack.i.h.bf16 %v6497_v1  ;;  %v6498_v6 = vunpack.i.l.bf16 %v6497_v1  ;;  %v5140_v38 = vsel %vm3510_vm14, 1.0, %v9828_v26 }
0x183a   :  { %v6512_v12 = vpop.permute.xlu0 %6511  ;;  %vm7044_vm10 = vmmov 1  }
0x183b   :  { %v6514_v19 = vunpack.i.h.bf16 %v6512_v12  ;;  %v6513_v44 = vunpack.i.l.bf16 %v6512_v12  ;;  %6236 = vmatprep.subr.bf16.mxu1 %v6235_v45  ;;  %v4415_v16 = vsel %vm4385_vm11, %v5124_v36, %v6499_v23  ;;  %v4414_v51 = vsel %vm4385_vm11, %v5123_v34, %v6498_v6 }
0x183c   :  { %6238 = vmatpush1.bf16.msra.mxu1 %v6237_v30  ;;  %v4469_v13 = vsel %vm4440_vm4, %v6498_v6, %v6503_v18  ;;  %v4470_v3 = vsel %vm4440_vm4, %v6499_v23, %v6504_v0  ;;  %v6241_v21 = vpack.c.bf16 %v4415_v16, %v4414_v51  ;;  %v6507_v35 = vpop.permute.xlu1 %6506  ;;  %v9869_v23 = vld [vmem:[#allocation48_spill] sm:$0xff]  ;;  %v9870_v6 = vld [vmem:[#allocation30_spill] sm:$0xff] }
0x183d   :  { %v6239_v20 = vpack.c.bf16 %v4470_v3, %v4469_v13  ;;  %v6509_v40 = vunpack.i.h.bf16 %v6507_v35  ;;  %v6508_v60 = vunpack.i.l.bf16 %v6507_v35  ;;  %vm3499_vm1 = vcmp.eq.s32.totalorder %v9869_v23, %v8126_v4  ;;  %v9871_v13 = vld [vmem:[#allocation46_spill] sm:$0xff] }
0x183e   :  { %v6517_v17 = vpop.permute.xlu0 %6516  ;;  %vm3500_vm2 = vcmp.eq.s32.totalorder %v9870_v6, %v8126_v4  ;;  %v9872_v3 = vmax.f32 %v9871_v13, 0.0 }
0x183f   :  { %v6519_v54 = vunpack.i.h.bf16 %v6517_v17  ;;  %v6518_v9 = vunpack.i.l.bf16 %v6517_v17  ;;  %6240 = vmatprep.subr.bf16.mxu1 %v6239_v20  ;;  %v4417_v7 = vsel %vm4385_vm11, %v5126_v47, %v6509_v40  ;;  %v4416_v42 = vsel %vm4385_vm11, %v5125_v53, %v6508_v60  ;;  %v9873_v20 = vld [vmem:[#allocation60_spill] sm:$0xff] }
0x1840   :  { %6242 = vmatpush1.bf16.msra.mxu1 %v6241_v21  ;;  %v4471_v50 = vsel %vm4440_vm4, %v6508_v60, %v6513_v44  ;;  %v4472_v57 = vsel %vm4440_vm4, %v6509_v40, %v6514_v19  ;;  %v6245_v24 = vpack.c.bf16 %v4417_v7, %v4416_v42  ;;  %v6522_v63 = vpop.permute.xlu1 %6521  ;;  %v5129_v53 = vsel %vm3499_vm1, 1.0, %v9828_v26  ;;  %v9874_v40 = vld [vmem:[#allocation52_spill] sm:$0xff]  ;;  %v9875_v60 = vld [vmem:[#allocation42_spill] sm:$0xff] }
0x1841   :  { %v4419_v43 = vsel %vm4385_vm11, %v5128_v37, %v6519_v54  ;;  %v4418_v55 = vsel %vm4385_vm11, %v5127_v15, %v6518_v9  ;;  %v6243_v14 = vpack.c.bf16 %v4472_v57, %v4471_v50  ;;  %v6524_v59 = vunpack.i.h.bf16 %v6522_v63 }
0x1842   :  { %v6249_v61 = vpack.c.bf16 %v4419_v43, %v4418_v55  ;;  %v6523_v0 = vunpack.i.l.bf16 %v6522_v63  ;;  %v3393_v48 = vpop.permute.xlu0 %3392  ;;  %v5130_v47 = vsel %vm3500_vm2, 1.0, %v9828_v26  ;;  %vm3501_vm3 = vcmp.eq.s32.totalorder %v9874_v40, %v8126_v4 }
0x1843   :  { %6244 = vmatprep.subr.bf16.mxu1 %v6243_v14  ;;  %v4474_v49 = vsel %vm4440_vm4, %v6519_v54, %v6524_v59  ;;  %vm3502_vm5 = vcmp.eq.s32.totalorder %v9875_v60, %v8126_v4  ;;  %v5136_v60 = vsel %vm3506_vm9, 1.0, %v9828_v26  ;;  %vm3512_vm1 = vcmp.eq.s32.totalorder %v8861_v31, %v8126_v4 }
0x1844   :  { %6246 = vmatpush1.bf16.msra.mxu1 %v6245_v24  ;;  %v4473_v18 = vsel %vm4440_vm4, %v6518_v9, %v6523_v0  ;;  %v5131_v24 = vsel %vm3501_vm3, 1.0, %v9828_v26  ;;  %v5132_v63 = vsel %vm3502_vm5, 1.0, %v9828_v26  ;;  %v5142_v33 = vsel %vm3512_vm1, 1.0, %v9828_v26 }
0x1845   :  { %v6247_v22 = vpack.c.bf16 %v4474_v49, %v4473_v18  ;;  %v9876_v49 = vld [vmem:[#allocation57_spill] sm:$0xff]  ;;  %vm3513_vm2 = vcmp.eq.s32.totalorder %v8871_v2, %v8126_v4  ;;  %vm3514_vm3 = vcmp.eq.s32.totalorder %v8874_v27, %v8126_v4  ;;  %vm3515_vm5 = vcmp.eq.s32.totalorder %v8884_v52, %v8126_v4 }
0x1846   :  { %v6537_v41 = vpop.permute.xlu0 %6536  ;;  %vm3503_vm6 = vcmp.eq.s32.totalorder %v9876_v49, %v8126_v4  ;;  %v5144_v2 = vsel %vm3514_vm3, 1.0, %v9828_v26  ;;  %vm4499_vm9 = vcmask 1043456  }
0x1847   :  { %6248 = vmatprep.subr.bf16.mxu1 %v6247_v22  ;;  %v6539_v44 = vunpack.i.h.bf16 %v6537_v41  ;;  %v6538_v16 = vunpack.i.l.bf16 %v6537_v41  ;;  %v9877_v22 = vld [vmem:[#allocation54_spill] sm:$0xff] }
0x1848   :  { %vm3504_vm7 = vcmp.eq.s32.totalorder %v9877_v22, %v8126_v4 }
0x184a   :  { %v6547_v30 = vpop.permute.xlu0 %6546 }
0x184b   :  { %v6549_v9 = vunpack.i.h.bf16 %v6547_v30  ;;  %v6548_v7 = vunpack.i.l.bf16 %v6547_v30 }
0x184e   :  { %v9264_v34 = vpop.permute.xlu0 %6556 }
0x184f   :  { %v6558_v41 = vunpack.i.l.bf16 %v9264_v34 }
0x1852   :  { %v9266_v36 = vpop.permute.xlu0 %6566 }
0x1856   :  { %v9289_v54 = vpop.permute.xlu0 %6576 }
0x185a   :  { %v9307_v6 = vpop.permute.xlu0 %6586 }
0x187f   :  { %v9268_v1 = vpop.permute.xlu1 %6526 }
0x1880   :  { %v6529_v45 = vunpack.i.h.bf16 %v9268_v1  ;;  %v6528_v12 = vunpack.i.l.bf16 %v9268_v1 }
0x1882   :  { %v3400_v19 = vsel %vm3305_vm15, %v3393_v48, %v6528_v12  ;;  %v3401_v51 = vsel %vm3305_vm15, %v6528_v12, %v6529_v45  ;;  %v6559_v48 = vunpack.i.h.bf16 %v9264_v34 }
0x1883   :  { %v3407_v21 = vmax.f32 %v9872_v3, %v3400_v19  ;;  %v6532_v35 = vpop.permute.xlu1 %6531  ;;  %v3408_v15 = vmax.f32 %v9873_v20, %v3401_v51 }
0x1884   :  { %v6534_v37 = vunpack.i.h.bf16 %v6532_v35  ;;  %v6533_v17 = vunpack.i.l.bf16 %v6532_v35 }
0x1885   :  { %4570 = vmatprep.mubr.f32.mxu1 %v3408_v15 }
0x1886   :  { %v4421_v42 = vsel %vm4385_vm11, %v5130_v47, %v6534_v37  ;;  %v4420_v50 = vsel %vm4385_vm11, %v5129_v53, %v6533_v17  ;;  %4571 = vmatmul.mubr.f32.vlgmr.msra.gmra.mrb[26].mxu1 %v3407_v21  ;;  %v4475_v57 = vsel %vm4440_vm4, %v6533_v17, %v6538_v16  ;;  %v4476_v43 = vsel %vm4440_vm4, %v6534_v37, %v6539_v44  ;;  %v9878_v21 = vld [vmem:[#allocation41_spill] sm:$0xff] }
0x1887   :  { %v6253_v55 = vpack.c.bf16 %v4421_v42, %v4420_v50  ;;  %6250 = vmatpush1.bf16.msra.mxu1 %v6249_v61  ;;  %v6542_v14 = vpop.permute.xlu1 %6541  ;;  %v6251_v59 = vpack.c.bf16 %v4476_v43, %v4475_v57  ;;  %v5133_v44 = vsel %vm3503_vm6, 1.0, %v9828_v26  ;;  %v5134_v16 = vsel %vm3504_vm7, 1.0, %v9828_v26  ;;  %v6597_v50 = vpop.permute.xlu0 %6596 }
0x1888   :  { %v6544_v0 = vunpack.i.h.bf16 %v6542_v14  ;;  %v6543_v18 = vunpack.i.l.bf16 %v6542_v14  ;;  %vm3505_vm8 = vcmp.eq.s32.totalorder %v9878_v21, %v8126_v4  ;;  %v6569_v53 = vunpack.i.h.bf16 %v9266_v36 }
0x1889   :  { %6252 = vmatprep.subr.bf16.mxu1 %v6251_v59  ;;  %v6568_v47 = vunpack.i.l.bf16 %v9266_v36  ;;  %v5135_v40 = vsel %vm3505_vm8, 1.0, %v9828_v26  ;;  %v9879_v36 = vld [vmem:[#allocation56_spill] sm:$0xff]  ;;  %v6579_v57 = vunpack.i.h.bf16 %v9289_v54  ;;  %v6578_v43 = vunpack.i.l.bf16 %v9289_v54 }
0x188a   :  { %v4423_v61 = vsel %vm4385_vm11, %v5132_v63, %v6544_v0  ;;  %v4422_v30 = vsel %vm4385_vm11, %v5131_v24, %v6543_v18  ;;  %v4477_v12 = vsel %vm4440_vm4, %v6543_v18, %v6548_v7  ;;  %v4478_v23 = vsel %vm4440_vm4, %v6544_v0, %v6549_v9 }
0x188b   :  { %v6257_v19 = vpack.c.bf16 %v4423_v61, %v4422_v30  ;;  %6254 = vmatpush1.bf16.msra.mxu1 %v6253_v55  ;;  %v6552_v51 = vpop.permute.xlu1 %6551  ;;  %v6255_v13 = vpack.c.bf16 %v4478_v23, %v4477_v12  ;;  %vm3508_vm12 = vcmp.eq.s32.totalorder %v9879_v36, %v8126_v4  ;;  %v6589_v54 = vunpack.i.h.bf16 %v9307_v6 }
0x188c   :  { %v6554_v3 = vunpack.i.h.bf16 %v6552_v51  ;;  %v6553_v34 = vunpack.i.l.bf16 %v6552_v51  ;;  %v5138_v0 = vsel %vm3508_vm12, 1.0, %v9828_v26  ;;  %vm3516_vm6 = vcmp.eq.s32.totalorder %v8887_v62, %v8126_v4  ;;  %vm6288_vm12 = vmpackc.low %vm4499_vm9, %vm7044_vm10 }
0x188d   :  { %6256 = vmatprep.subr.bf16.mxu1 %v6255_v13  ;;  %vm3517_vm7 = vcmp.eq.s32.totalorder %v8897_v29, %v8126_v4  ;;  %vm3518_vm8 = vcmp.eq.s32.totalorder %v8900_v10, %v8126_v4  ;;  %v5145_v62 = vsel %vm3515_vm5, 1.0, %v9828_v26  ;;  %vm4683_vm9 = vcmask 457728  }
0x188e   :  { %v4425_v35 = vsel %vm4385_vm11, %v5134_v16, %v6554_v3  ;;  %v4424_v20 = vsel %vm4385_vm11, %v5133_v44, %v6553_v34  ;;  %v4479_v15 = vsel %vm4440_vm4, %v6553_v34, %v6558_v41  ;;  %v4480_v37 = vsel %vm4440_vm4, %v6554_v3, %v6559_v48 }
0x188f   :  { %v6261_v17 = vpack.c.bf16 %v4425_v35, %v4424_v20  ;;  %6258 = vmatpush1.bf16.msra.mxu1 %v6257_v19  ;;  %v6562_v56 = vpop.permute.xlu1 %6561  ;;  %v6259_v9 = vpack.c.bf16 %v4480_v37, %v4479_v15  ;;  %v6588_v41 = vunpack.i.l.bf16 %v9307_v6  ;;  %v6607_v19 = vpop.permute.xlu0 %6606  ;;  %v6599_v6 = vunpack.i.h.bf16 %v6597_v50 }
0x1890   :  { %v6564_v7 = vunpack.i.h.bf16 %v6562_v56  ;;  %v6563_v42 = vunpack.i.l.bf16 %v6562_v56  ;;  %v6598_v34 = vunpack.i.l.bf16 %v6597_v50  ;;  %v5141_v15 = vsel %vm3511_vm0, 1.0, %v9828_v26 }
0x1891   :  { %6260 = vmatprep.subr.bf16.mxu1 %v6259_v9  ;;  %v6609_v56 = vunpack.i.h.bf16 %v6607_v19  ;;  %v6608_v9 = vunpack.i.l.bf16 %v6607_v19 }
0x1892   :  { %v4427_v55 = vsel %vm4385_vm11, %v5136_v60, %v6564_v7  ;;  %v4426_v24 = vsel %vm4385_vm11, %v5135_v40, %v6563_v42  ;;  %v4481_v63 = vsel %vm4440_vm4, %v6563_v42, %v6568_v47  ;;  %v4482_v14 = vsel %vm4440_vm4, %v6564_v7, %v6569_v53 }
0x1893   :  { %v6265_v59 = vpack.c.bf16 %v4427_v55, %v4426_v24  ;;  %6262 = vmatpush1.bf16.msra.mxu1 %v6261_v17  ;;  %v6572_v18 = vpop.permute.xlu1 %6571  ;;  %v6263_v49 = vpack.c.bf16 %v4482_v14, %v4481_v63  ;;  %v6617_v60 = vpop.permute.xlu0 %6616 }
0x1894   :  { %v6574_v22 = vunpack.i.h.bf16 %v6572_v18  ;;  %v6573_v48 = vunpack.i.l.bf16 %v6572_v18  ;;  %v6619_v14 = vunpack.i.h.bf16 %v6617_v60 }
0x1895   :  { %6264 = vmatprep.subr.bf16.mxu1 %v6263_v49 }
0x1896   :  { %v4429_v61 = vsel %vm4385_vm11, %v5138_v0, %v6574_v22  ;;  %v4428_v30 = vsel %vm4385_vm11, %v5137_v39, %v6573_v48  ;;  %v4483_v12 = vsel %vm4440_vm4, %v6573_v48, %v6578_v43  ;;  %v4484_v23 = vsel %vm4440_vm4, %v6574_v22, %v6579_v57 }
0x1897   :  { %v6269_v44 = vpack.c.bf16 %v4429_v61, %v4428_v30  ;;  %6266 = vmatpush1.bf16.msra.mxu1 %v6265_v59  ;;  %v6582_v16 = vpop.permute.xlu1 %6581  ;;  %v6267_v51 = vpack.c.bf16 %v4484_v23, %v4483_v12  ;;  %v5143_v43 = vsel %vm3513_vm2, 1.0, %v9828_v26  ;;  %v6618_v59 = vunpack.i.l.bf16 %v6617_v60  ;;  %v6627_v49 = vpop.permute.xlu0 %6626 }
0x1898   :  { %v6584_v13 = vunpack.i.h.bf16 %v6582_v16  ;;  %v6583_v3 = vunpack.i.l.bf16 %v6582_v16  ;;  %v5146_v48 = vsel %vm3516_vm6, 1.0, %v9828_v26  ;;  %v5147_v12 = vsel %vm3517_vm7, 1.0, %v9828_v26 }
0x1899   :  { %6268 = vmatprep.subr.bf16.mxu1 %v6267_v51  ;;  %v5148_v23 = vsel %vm3518_vm8, 1.0, %v9828_v26  ;;  %v6629_v19 = vunpack.i.h.bf16 %v6627_v49  ;;  %v4711_v60 = vstv %s5266_s22  ;;  %vm4669_vm8 = vcmask 465920  }
0x189a   :  { %v4431_v21 = vsel %vm4385_vm11, %v5140_v38, %v6584_v13  ;;  %v4430_v53 = vsel %vm4385_vm11, %v5139_v8, %v6583_v3  ;;  %v4485_v47 = vsel %vm4440_vm4, %v6583_v3, %v6588_v41  ;;  %v4486_v35 = vsel %vm4440_vm4, %v6584_v13, %v6589_v54 }
0x189b   :  { %v6273_v20 = vpack.c.bf16 %v4431_v21, %v4430_v53  ;;  %6270 = vmatpush1.bf16.msra.mxu1 %v6269_v44  ;;  %v6592_v37 = vpop.permute.xlu1 %6591  ;;  %v6271_v17 = vpack.c.bf16 %v4486_v35, %v4485_v47  ;;  %v6628_v44 = vunpack.i.l.bf16 %v6627_v49  ;;  %v4696_v49 = vstv %s5264_s3 }
0x189c   :  { %v6594_v31 = vunpack.i.h.bf16 %v6592_v37  ;;  %v6593_v40 = vunpack.i.l.bf16 %v6592_v37 }
0x189d   :  { %6272 = vmatprep.subr.bf16.mxu1 %v6271_v17  ;;  %v9880_v17 = vld [vmem:[#allocation61_spill] sm:$0xff] }
0x189e   :  { %v4433_v7 = vsel %vm4385_vm11, %v5142_v33, %v6594_v31  ;;  %v4432_v42 = vsel %vm4385_vm11, %v5141_v15, %v6593_v40  ;;  %v4487_v36 = vsel %vm4440_vm4, %v6593_v40, %v6598_v34  ;;  %v4488_v50 = vsel %vm4440_vm4, %v6594_v31, %v6599_v6 }
0x189f   :  { %v6277_v57 = vpack.c.bf16 %v4433_v7, %v4432_v42  ;;  %6274 = vmatpush1.bf16.msra.mxu1 %v6273_v20  ;;  %v6602_v55 = vpop.permute.xlu1 %6601  ;;  %v6275_v27 = vpack.c.bf16 %v4488_v50, %v4487_v36  ;;  %v4719_v40 = vstv %s5267_s21  ;;  %v4745_v36 = vstv %s5269_s2 }
0x18a0   :  { %v6604_v24 = vunpack.i.h.bf16 %v6602_v55  ;;  %v6603_v63 = vunpack.i.l.bf16 %v6602_v55 }
0x18a1   :  { %6276 = vmatprep.subr.bf16.mxu1 %v6275_v27 }
0x18a2   :  { %v4435_v39 = vsel %vm4385_vm11, %v5144_v2, %v6604_v24  ;;  %v4434_v0 = vsel %vm4385_vm11, %v5143_v43, %v6603_v63  ;;  %v4489_v18 = vsel %vm4440_vm4, %v6603_v63, %v6608_v9  ;;  %v4490_v52 = vsel %vm4440_vm4, %v6604_v24, %v6609_v56 }
0x18a3   :  { %v6281_v22 = vpack.c.bf16 %v4435_v39, %v4434_v0  ;;  %6278 = vmatpush1.bf16.msra.mxu1 %v6277_v57  ;;  %v6612_v54 = vpop.permute.xlu1 %6611  ;;  %v6279_v41 = vpack.c.bf16 %v4490_v52, %v4489_v18  ;;  %v4652_v43 = vstv %s5260_s19  ;;  %v4753_v2 = vstv %s5270_s6 }
0x18a4   :  { %v6614_v61 = vunpack.i.h.bf16 %v6612_v54  ;;  %v6613_v30 = vunpack.i.l.bf16 %v6612_v54  ;;  %v4660_v24 = vstv %s5261_s20  ;;  %v9416_v39 = vadd.s32 70, %v8126_v4 }
0x18a5   :  { %6280 = vmatprep.subr.bf16.mxu1 %v6279_v41  ;;  %v4688_v52 = vstv %s5263_s26 }
0x18a6   :  { %v4437_v8 = vsel %vm4385_vm11, %v5146_v48, %v6614_v61  ;;  %v4436_v38 = vsel %vm4385_vm11, %v5145_v62, %v6613_v30  ;;  %v4491_v16 = vsel %vm4440_vm4, %v6613_v30, %v6618_v59  ;;  %v4492_v51 = vsel %vm4440_vm4, %v6614_v61, %v6619_v14  ;;  %v9882_v62 = vld [vmem:[#allocation49_spill] sm:$0xff]  ;;  %v9884_v30 = vld [vmem:[#allocation31_spill] sm:$0xff] }
0x18a7   :  { %v6285_v13 = vpack.c.bf16 %v4437_v8, %v4436_v38  ;;  %6282 = vmatpush1.bf16.msra.mxu1 %v6281_v22  ;;  %v6622_v3 = vpop.permute.xlu1 %6621  ;;  %v6283_v29 = vpack.c.bf16 %v4492_v51, %v4491_v16  ;;  %v4674_v59 = vstv %s5262_s25  ;;  %v9881_v22 = vld [vmem:[#allocation29_spill] sm:$0xff]  ;;  %vm4786_vm0 = vcmp.eq.s32.totalorder %v9884_v30, %v9416_v39  ;;  %v9886_v8 = vld [vmem:[#allocation38_spill] sm:$0xff] }
0x18a8   :  { %v6624_v6 = vunpack.i.h.bf16 %v6622_v3  ;;  %v6623_v34 = vunpack.i.l.bf16 %v6622_v3  ;;  %v9883_v61 = vld [vmem:[#allocation21_spill] sm:$0xff]  ;;  %vm4790_vm2 = vcmp.eq.s32.totalorder %v9886_v8, %v9416_v39  ;;  %v9888_v3 = vld [vmem:[#allocation34_spill] sm:$0xff]  ;;  %v9896_v8 = vld [vmem:[#allocation27_spill] sm:$0xff] }
0x18a9   :  { %6284 = vmatprep.subr.bf16.mxu1 %v6283_v29  ;;  %vm4785_vm14 = vcmp.eq.s32.totalorder %v9883_v61, %v9416_v39  ;;  %v5281_v51 = vsel %vm4790_vm2, 1.0, %v9828_v26  ;;  %vm4794_vm5 = vcmp.eq.s32.totalorder %v9888_v3, %v9416_v39 }
0x18aa   :  { %v4439_v10 = vsel %vm4385_vm11, %v5148_v23, %v6624_v6  ;;  %v4438_v21 = vsel %vm4385_vm11, %v5147_v12, %v6623_v34  ;;  %v4494_v53 = vsel %vm4440_vm4, %v6624_v6, %v6629_v19  ;;  %v4493_v47 = vsel %vm4440_vm4, %v6623_v34, %v6628_v44  ;;  %v9885_v44 = vld [vmem:[#allocation23_spill] sm:$0xff] }
0x18ab   :  { %v6290_v35 = vpack.c.bf16 %v4439_v10, %v4438_v21  ;;  %v6287_v20 = vpack.c.bf16 %v4494_v53, %v4493_v47  ;;  %6286 = vmatpush1.bf16.msra.mxu1 %v6285_v13  ;;  %v3399_v15 = vpop.permute.xlu1 %3398  ;;  %vm4781_vm11 = vcmp.eq.s32.totalorder %v9881_v22, %v9416_v39  ;;  %vm4782_vm4 = vcmp.eq.s32.totalorder %v9882_v62, %v9416_v39  ;;  %v9887_v13 = vld [vmem:[#allocation33_spill] sm:$0xff]  ;;  %v9889_v10 = vld [vmem:[#allocation35_spill] sm:$0xff]  ;;  %v9890_v21 = vld [vmem:[#allocation36_spill] sm:$0xff] }
0x18ac   :  { %v3410_v33 = vmax.f32 %v9230_v58, %v3399_v15  ;;  %v3402_v37 = vsel %vm3305_vm15, %v6529_v45, %v3399_v15  ;;  %v4732_v45 = vstv %s5268_s23  ;;  %v5272_v48 = vsel %vm4781_vm11, 1.0, %v9828_v26 }
0x18ad   :  { %6289 = vmatprep.subr.msk.bf16.mxu1 %vm6288_vm12, %v6287_v20  ;;  %v3409_v31 = vmax.f32 %v9880_v17, %v3402_v37  ;;  %v5273_v4 = vsel %vm4782_vm4, 1.0, %v9828_v26  ;;  %v5276_v23 = vsel %vm4785_vm14, 1.0, %v9828_v26  ;;  %v5277_v19 = vsel %vm4786_vm0, 1.0, %v9828_v26 }
0x18ae   :  { %5259 = vmatprep.mubr.msk.f32.mxu1 %vm4495_vm13, %v3410_v33  ;;  %v6630_v12 = vpack.i.bf16 %v5273_v4, %v5272_v48  ;;  %vm4789_vm1 = vcmp.eq.s32.totalorder %v9885_v44, %v9416_v39  ;;  %v6640_v38 = vpack.i.bf16 %v5277_v19, %v5276_v23  ;;  %vm4793_vm3 = vcmp.eq.s32.totalorder %v9887_v13, %v9416_v39  ;;  %v9893_v48 = vld [vmem:[#allocation32_spill] sm:$0xff]  ;;  %v9894_v4 = vld [vmem:[#allocation22_spill] sm:$0xff] }
0x18af   :  { %6292 = vmatpush1.bf16.msk.msra.mxu1 %vm6288_vm12, %v6290_v35  ;;  %v5280_v16 = vsel %vm4789_vm1, 1.0, %v9828_v26  ;;  %v5284_v6 = vsel %vm4793_vm3, 1.0, %v9828_v26  ;;  %v5285_v34 = vsel %vm4794_vm5, 1.0, %v9828_v26  ;;  %vm4797_vm6 = vcmp.eq.s32.totalorder %v9889_v10, %v9416_v39  ;;  %v9895_v44 = vld [vmem:[#allocation26_spill] sm:$0xff] }
0x18b0   :  { %v6650_v29 = vpack.i.bf16 %v5281_v51, %v5280_v16  ;;  %vm4798_vm7 = vcmp.eq.s32.totalorder %v9890_v21, %v9416_v39  ;;  %v6660_v53 = vpack.i.bf16 %v5285_v34, %v5284_v6  ;;  %v5288_v47 = vsel %vm4797_vm6, 1.0, %v9828_v26  ;;  %v9897_v6 = vld [vmem:[#allocation53_spill] sm:$0xff]  ;;  %v9898_v34 = vld [vmem:[#allocation39_spill] sm:$0xff] }
0x18b1   :  { %v5289_v35 = vsel %vm4798_vm7, 1.0, %v9828_v26  ;;  %v4708_v37 = vstv %s5265_s29  ;;  %vm4787_vm11 = vcmp.eq.s32.totalorder %v9893_v48, %v9416_v39  ;;  %vm4788_vm4 = vcmp.eq.s32.totalorder %v9894_v4, %v9416_v39  ;;  %v9906_v48 = vld [vmem:[#allocation43_spill] sm:$0xff] }
0x18b2   :  { %4642 = vmatmul.mubr.f32.vlgmr.msra.gmra.mrb[26].mxu1 %v3409_v31  ;;  %v6670_v20 = vpack.i.bf16 %v5289_v35, %v5288_v47  ;;  %v5279_v23 = vsel %vm4788_vm4, 1.0, %v9828_v26  ;;  %vm4791_vm14 = vcmp.eq.s32.totalorder %v9895_v44, %v9416_v39  ;;  %vm4792_vm0 = vcmp.eq.s32.totalorder %v9896_v8, %v9416_v39  ;;  %v9909_v8 = vld [vmem:[#allocation50_spill] sm:$0xff] }
0x18b3   :  { %v5282_v3 = vsel %vm4791_vm14, 1.0, %v9828_v26  ;;  %vm4795_vm1 = vcmp.eq.s32.totalorder %v9897_v6, %v9416_v39  ;;  %vm4796_vm2 = vcmp.eq.s32.totalorder %v9898_v34, %v9416_v39  ;;  %vm4907_vm3 = vcmask 285696   ;;  %v9911_v34 = vld [vmem:[#allocation58_spill] sm:$0xff] }
0x18b4   :  { %v5286_v47 = vsel %vm4795_vm1, 1.0, %v9828_v26  ;;  %v5287_v35 = vsel %vm4796_vm2, 1.0, %v9828_v26  ;;  %vm4768_vm5 = vcmask 572416   ;;  %vm4930_vm6 = vcmask 1042432  }
0x18b5   :  { %vm6319_vm7 = vmpackc.low %vm4930_vm6, %vm7044_vm10 }
0x1985   :  { %v9403_v56 = vpop.f32.mrb[26].mxu1 }
0x1986   :  { %v4645_v9 = vpop.f32.mrb[27].mxu1  ;;  %v4720_v58 = vmul.f32 %v4719_v40, %v9403_v56  ;;  %v4712_v1 = vmul.f32 %v4711_v60, %v9403_v56  ;;  %v4733_v7 = vmul.f32 %v4732_v45, %v9403_v56  ;;  %v4653_v55 = vmul.f32 %v4652_v43, %v9403_v56 }
0x1987   :  { %v4721_v42 = vmul.f32 %v4719_v40, %v4645_v9  ;;  %v4746_v50 = vmul.f32 %v4745_v36, %v4645_v9  ;;  %v4734_v57 = vmul.f32 %v4732_v45, %v4645_v9  ;;  %v4754_v27 = vmul.f32 %v4753_v2, %v4645_v9 }
0x1988   :  { %4724 = vrot.lane.b32.xlu1 %v4720_v58, %s7045_s7  ;;  %4714 = vrot.lane.b32.xlu0 %v4712_v1, %s7039_s12  ;;  %v4661_v63 = vmul.f32 %v4660_v24, %v9403_v56  ;;  %v4662_v14 = vmul.f32 %v4660_v24, %v4645_v9  ;;  %v4675_v0 = vmul.f32 %v4674_v59, %v9403_v56 }
0x1989   :  { %v4676_v18 = vmul.f32 %v4674_v59, %v4645_v9  ;;  %v4689_v54 = vmul.f32 %v4688_v52, %v4645_v9  ;;  %v4697_v41 = vmul.f32 %v4696_v49, %v4645_v9  ;;  %v4709_v17 = vmul.f32 %v4708_v37, %v9403_v56 }
0x198c   :  { %4737 = vrot.lane.b32.xlu1 %v4733_v7, %s7046_s24  ;;  %4726 = vrot.lane.b32.xlu0 %v4721_v42, %s7045_s7  ;;  %v4649_v7 = vstv %s4648_s30 }
0x1990   :  { %4748 = vrot.lane.b32.xlu1 %v4746_v50, %s7047_s0  ;;  %4739 = vrot.lane.b32.xlu0 %v4734_v57, %s7046_s24  ;;  %v4650_v50 = vmul.f32 %v4649_v7, %v9403_v56 }
0x1994   :  { %4655 = vrot.lane.b32.xlu1 %v4653_v55, %s7039_s12  ;;  %4756 = vrot.lane.b32.xlu0 %v4754_v27, %s7048_s27  ;;  %v4761_v27 = vstv %s5271_s9 }
0x1998   :  { %4665 = vrot.lane.b32.xlu0 %v4661_v63, %s7045_s7  ;;  %4667 = vrot.lane.b32.xlu1 %v4662_v14, %s7045_s7  ;;  %v9891_v63 = vld [vmem:[#allocation47_spill] sm:$0xff]  ;;  %v9892_v14 = vld [vmem:[#allocation37_spill] sm:$0xff] }
0x1999   :  { %vm4783_vm12 = vcmp.eq.s32.totalorder %v9891_v63, %v9416_v39  ;;  %vm4784_vm13 = vcmp.eq.s32.totalorder %v9892_v14, %v9416_v39  ;;  %v6665_v39 = vpack.i.bf16 %v5287_v35, %v5286_v47  ;;  %v9904_v63 = vld [vmem:[#allocation24_spill] sm:$0xff] }
0x199a   :  { %v5274_v49 = vsel %vm4783_vm12, 1.0, %v9828_v26  ;;  %v5275_v56 = vsel %vm4784_vm13, 1.0, %v9828_v26 }
0x199b   :  { %v6635_v61 = vpack.i.bf16 %v5275_v56, %v5274_v49 }
0x199c   :  { %4679 = vrot.lane.b32.xlu0 %v4675_v0, %s7046_s24  ;;  %4681 = vrot.lane.b32.xlu1 %v4676_v18, %s7046_s24 }
0x19a0   :  { %4691 = vrot.lane.b32.xlu0 %v4689_v54, %s7047_s0  ;;  %4699 = vrot.lane.b32.xlu1 %v4697_v41, %s7048_s27 }
0x19a4   :  { %6631 = vrot.lane.b32.xlu1 %v6630_v12, %s7049_s28  ;;  %v5278_v12 = vsel %vm4787_vm11, 1.0, %v9828_v26 }
0x19a5   :  { %v6645_v51 = vpack.i.bf16 %v5279_v23, %v5278_v12 }
0x19a8   :  { %6641 = vrot.lane.b32.xlu1 %v6640_v38, %s7049_s28 }
0x19ac   :  { %6651 = vrot.lane.b32.xlu1 %v6650_v29, %s7049_s28  ;;  %v5283_v29 = vsel %vm4792_vm0, 1.0, %v9828_v26 }
0x19ad   :  { %v6655_v21 = vpack.i.bf16 %v5283_v29, %v5282_v3  ;;  %v9910_v29 = vld [vmem:[#allocation59_spill] sm:$0xff] }
0x19b0   :  { %6661 = vrot.lane.b32.xlu1 %v6660_v53, %s7049_s28 }
0x19b4   :  { %6671 = vrot.lane.b32.xlu1 %v6670_v20, %s7049_s28 }
0x19fa   :  { %v4725_v15 = vpop.permute.xlu1 %4724  ;;  %v4715_v33 = vpop.permute.xlu0 %4714 }
0x19fb   :  { %v4717_v9 = vadd.f32 %v4715_v33, %v4709_v17  ;;  %v9899_v33 = vld [vmem:[#allocation44_spill] sm:$0xff]  ;;  %v9900_v17 = vld [vmem:[#allocation45_spill] sm:$0xff] }
0x19fe   :  { %v4738_v31 = vpop.permute.xlu1 %4737  ;;  %v4727_v40 = vpop.permute.xlu0 %4726 }
0x19ff   :  { %v4728_v60 = vsel %vm4669_vm8, %v4725_v15, %v4727_v40 }
0x1a00   :  { %v4730_v58 = vadd.f32 %v4728_v60, %v4717_v9  ;;  %v9901_v60 = vmov 0.0|0.0   ;;  %v4704_v9 = vstv %s4703_s13 }
0x1a02   :  { %v4749_v1 = vpop.permute.xlu1 %4748  ;;  %v4740_v45 = vpop.permute.xlu0 %4739 }
0x1a03   :  { %v4741_v42 = vsel %vm4683_vm9, %v4738_v31, %v4740_v45 }
0x1a04   :  { %v4743_v36 = vadd.f32 %v4741_v42, %v4730_v58 }
0x1a06   :  { %v4656_v57 = vpop.permute.xlu1 %4655  ;;  %v4751_v43 = vadd.f32 %v4749_v1, %v4743_v36  ;;  %v4757_v2 = vpop.permute.xlu0 %4756 }
0x1a07   :  { %v4658_v55 = vadd.f32 %v4656_v57, %v4650_v50 }
0x1a08   :  { %v4759_v24 = vadd.f32 %v4757_v2, %v4751_v43  ;;  %v9902_v2 = vld [vmem:[#allocation25_spill] sm:$0xff] }
0x1a0a   :  { %v4762_v59 = vadd.f32 %v4761_v27, %v4759_v24  ;;  %v4666_v0 = vpop.permute.xlu0 %4665  ;;  %v4668_v18 = vpop.permute.xlu1 %4667  ;;  %v9903_v27 = vld [vmem:[#allocation28_spill] sm:$0xff] }
0x1a0b   :  { %v4670_v52 = vsel %vm4669_vm8, %v4666_v0, %v4668_v18  ;;  %vm4926_vm8 = vcmask 89088  }
0x1a0c   :  { %v4763_v22 = vmax.f32 %v4762_v59, 0.0  ;;  %v4672_v62 = vadd.f32 %v4670_v52, %v4658_v55  ;;  %v9905_v59 = vld [vmem:[#allocation40_spill] sm:$0xff] }
0x1a0e   :  { %v4680_v54 = vpop.permute.xlu0 %4679  ;;  %4765 = vrot.lane.b32.xlu0 %v4763_v22, %s7050_s10  ;;  %v4682_v41 = vpop.permute.xlu1 %4681 }
0x1a0f   :  { %v4684_v30 = vsel %vm4683_vm9, %v4680_v54, %v4682_v41  ;;  %v9907_v54 = vld [vmem:[#allocation55_spill] sm:$0xff] }
0x1a10   :  { %v4686_v19 = vadd.f32 %v4684_v30, %v4672_v62 }
0x1a12   :  { %v4692_v38 = vpop.permute.xlu0 %4691  ;;  %v4700_v16 = vpop.permute.xlu1 %4699  ;;  %6636 = vrot.lane.b32.xlu0 %v6635_v61, %s7049_s28 }
0x1a13   :  { %v4694_v13 = vadd.f32 %v4692_v38, %v4686_v19  ;;  %v9908_v19 = vld [vmem:[#allocation51_spill] sm:$0xff] }
0x1a15   :  { %v4702_v10 = vadd.f32 %v4700_v16, %v4694_v13 }
0x1a16   :  { %6646 = vrot.lane.b32.xlu0 %v6645_v51, %s7049_s28  ;;  %v6632_v53 = vpop.permute.xlu1 %6631 }
0x1a17   :  { %v6634_v20 = vunpack.i.h.bf16 %v6632_v53  ;;  %v6633_v15 = vunpack.i.l.bf16 %v6632_v53  ;;  %v4705_v26 = vadd.f32 %v4704_v9, %v4702_v10 }
0x1a19   :  { %v4909_v37 = vsel %vm4907_vm3, %v9899_v33, %v6634_v20  ;;  %v4908_v31 = vsel %vm4907_vm3, %v9900_v17, %v6633_v15  ;;  %v4706_v58 = vmax.f32 %v4705_v26, 0.0 }
0x1a1a   :  { %6656 = vrot.lane.b32.xlu0 %v6655_v21, %s7049_s28  ;;  %v6294_v40 = vpack.c.bf16 %v4909_v37, %v4908_v31  ;;  %v6642_v45 = vpop.permute.xlu1 %6641 }
0x1a1b   :  { %v6644_v42 = vunpack.i.h.bf16 %v6642_v45  ;;  %v6643_v36 = vunpack.i.l.bf16 %v6642_v45 }
0x1a1c   :  { %6295 = vmatpush1.bf16.msra.mxu0 %v6294_v40 }
0x1a1d   :  { %6296 = vmatprep.subr.bf16.mxu0 %v9901_v60  ;;  %v4913_v14 = vsel %vm4907_vm3, %v9904_v63, %v6644_v42  ;;  %v4912_v0 = vsel %vm4907_vm3, %v9905_v59, %v6643_v36 }
0x1a1e   :  { %6666 = vrot.lane.b32.xlu0 %v6665_v39, %s7049_s28  ;;  %v6652_v49 = vpop.permute.xlu1 %6651  ;;  %v6300_v62 = vpack.c.bf16 %v4913_v14, %v4912_v0 }
0x1a1f   :  { %v6654_v61 = vunpack.i.h.bf16 %v6652_v49  ;;  %v6653_v30 = vunpack.i.l.bf16 %v6652_v49 }
0x1a21   :  { %v4917_v44 = vsel %vm4907_vm3, %v9908_v19, %v6654_v61  ;;  %v4916_v38 = vsel %vm4907_vm3, %v9909_v8, %v6653_v30 }
0x1a22   :  { %v6662_v13 = vpop.permute.xlu1 %6661  ;;  %v6306_v3 = vpack.c.bf16 %v4917_v44, %v4916_v38 }
0x1a23   :  { %v6664_v21 = vunpack.i.h.bf16 %v6662_v13  ;;  %v6663_v53 = vunpack.i.l.bf16 %v6662_v13 }
0x1a25   :  { %v4921_v20 = vsel %vm4907_vm3, %v9011_v46, %v6664_v21  ;;  %v4920_v15 = vsel %vm4907_vm3, %v9005_v32, %v6663_v53 }
0x1a26   :  { %v6672_v17 = vpop.permute.xlu1 %6671  ;;  %v6312_v31 = vpack.c.bf16 %v4921_v20, %v4920_v15 }
0x1a27   :  { %v6674_v9 = vunpack.i.h.bf16 %v6672_v17  ;;  %v6673_v46 = vunpack.i.l.bf16 %v6672_v17 }
0x1a29   :  { %v4925_v32 = vsel %vm4907_vm3, %v9036_v28, %v6674_v9 }
0x1a80   :  { %v9496_v1 = vpop.permute.xlu0 %4765 }
0x1a81   :  { %4773 = vrot.lane.b32.xlu1 %v9496_v1, %s7039_s12  ;;  %v9502_v7 = vsel %vm4768_vm5, %v4706_v58, %v9496_v1  ;;  %v4924_v58 = vsel %vm4907_vm3, %v9029_v5, %v6673_v46 }
0x1a82   :  { %4771 = vrot.lane.b32.xlu0 %v9502_v7, %s7039_s12  ;;  %v6318_v45 = vpack.c.bf16 %v4925_v32, %v4924_v58  ;;  %s7051_s12 = smov [#allocation14]  }
0x1a83   :  { %s5011_s1 = sshll.u32 %s7051_s12, 4  ;;  %s5012_s1 = int_to_ptr.vmem [resolvable:$true] %s5011_s1 }
0x1a84   :  { %v6637_v50 = vpop.permute.xlu0 %6636  ;;  %s6991_s4 = scalar_lea.vmem %s5012_s1, 128  ;;  %p6996_p9 = scmp.lt.s32.totalorder %s5012_s1, %s5012_s1 }
0x1a85   :  { %v6639_v57 = vunpack.i.h.bf16 %v6637_v50  ;;  %v6638_v43 = vunpack.i.l.bf16 %v6637_v50  ;;  %p6992_p8 = scmp.ne.s32.totalorder %s5012_s1, %s6991_s4  ;;  %p6997_p10 = scmp.lt.s32.totalorder %s6991_s4, %s6991_s4 }
0x1a87   :  { %v4911_v55 = vsel %vm4907_vm3, %v9902_v2, %v6639_v57  ;;  %v4910_v24 = vsel %vm4907_vm3, %v9903_v27, %v6638_v43  ;;  %p6998_p11 = por %p6997_p10, %p6996_p9 }
0x1a88   :  { %v6297_v18 = vpack.c.bf16 %v4911_v55, %v4910_v24  ;;  %v6647_v52 = vpop.permute.xlu0 %6646 }
0x1a89   :  { %v6649_v56 = vunpack.i.h.bf16 %v6647_v52  ;;  %v6648_v22 = vunpack.i.l.bf16 %v6647_v52  ;;  %p6999_p12 = pnand %p6998_p11, %p6992_p8 }
0x1a8a   :  { %6298 = vmatpush1.bf16.msra.mxu0 %v6297_v18 }
0x1a8b   :  { %v4915_v4 = vsel %vm4907_vm3, %v9906_v48, %v6649_v56  ;;  %v4914_v41 = vsel %vm4907_vm3, %v9907_v54, %v6648_v22  ;;  %6299 = vmatprep.subr.bf16.mxu0 %v9901_v60 }
0x1a8c   :  { %v6657_v12 = vpop.permute.xlu0 %6656  ;;  %v6303_v23 = vpack.c.bf16 %v4915_v4, %v4914_v41 }
0x1a8d   :  { %v6659_v16 = vunpack.i.h.bf16 %v6657_v12  ;;  %v6658_v51 = vunpack.i.l.bf16 %v6657_v12 }
0x1a8e   :  { %6301 = vmatpush1.bf16.msra.mxu0 %v6300_v62 }
0x1a8f   :  { %6302 = vmatprep.subr.bf16.mxu0 %v9901_v60  ;;  %v4919_v6 = vsel %vm4907_vm3, %v9910_v29, %v6659_v16  ;;  %v4918_v10 = vsel %vm4907_vm3, %v9911_v34, %v6658_v51 }
0x1a90   :  { %v6667_v47 = vpop.permute.xlu0 %6666  ;;  %v6309_v35 = vpack.c.bf16 %v4919_v6, %v4918_v10 }
0x1a91   :  { %v6669_v33 = vunpack.i.h.bf16 %v6667_v47  ;;  %v6668_v37 = vunpack.i.l.bf16 %v6667_v47 }
0x1a92   :  { %6304 = vmatpush1.bf16.msra.mxu0 %v6303_v23 }
0x1a93   :  { %6305 = vmatprep.subr.bf16.mxu0 %v9901_v60  ;;  %v4923_v39 = vsel %vm4907_vm3, %v9020_v25, %v6669_v33  ;;  %v4922_v40 = vsel %vm4907_vm3, %v9014_v11, %v6668_v37 }
0x1a94   :  { %v6315_v26 = vpack.c.bf16 %v4923_v39, %v4922_v40 }
0x1a96   :  { %6307 = vmatpush1.bf16.msra.mxu0 %v6306_v3 }
0x1a97   :  { %6308 = vmatprep.subr.bf16.mxu0 %v9901_v60 }
0x1a9a   :  { %6310 = vmatpush1.bf16.msra.mxu0 %v6309_v35 }
0x1a9b   :  { %6311 = vmatprep.subr.bf16.mxu0 %v9901_v60 }
0x1a9e   :  { %6313 = vmatpush1.bf16.msra.mxu0 %v6312_v31 }
0x1a9f   :  { %6314 = vmatprep.subr.bf16.mxu0 %v9901_v60 }
0x1aa2   :  { %6316 = vmatpush1.bf16.msra.mxu0 %v6315_v26 }
0x1aa3   :  { %6317 = vmatprep.subr.bf16.mxu0 %v9901_v60 }
0x1aa6   :  { %6320 = vmatpush1.bf16.msk.msra.mxu0 %vm6319_vm7, %v6318_v45 }
0x1af3   :  { %v4774_v25 = vpop.permute.xlu1 %4773 }
0x1af4   :  { %v4779_v11 = vmax.f32 %v9496_v1, %v4774_v25  ;;  %v4772_v42 = vpop.permute.xlu0 %4771 }
0x1af5   :  { %v4775_v28 = vsel %vm3305_vm15, %v4772_v42, %v4774_v25 }
0x1af6   :  { %v4778_v36 = vmax.f32 %v9502_v7, %v4775_v28  ;;  %5291 = vmatprep.mubr.msk.f32.mxu0 %vm4926_vm8, %v4779_v11 }
0x1af8   :  { %4999 = vmatmul.mubr.f32.vlgmr.msra.gmra.mrb[28].mxu0 %v4778_v36 }
0x1bcb   :  { %v5000_v5 = vpop.f32.mrb[28].mxu0 }
0x1bcc   :  { %5004 = vst.msk [vmem:[#allocation14] sm:$0xff] %vm4768_vm5, %v5000_v5  ;;  %v5002_v50 = vpop.f32.mrb[29].mxu0 }
0x1bcd   :  { %7002 = shalt.err (!%p6999_p12)
}
0x1bce   :  { %s7003_s15 = scalar_lea.hbm %s9570_s8, 128 }
0x1bcf   :  { %p7004_p13 = scmp.ne.s32.totalorder %s9570_s8, %s7003_s15  ;;  %p7007_p0 = scmp.lt.u32.totalorder %s7003_s15, %s9570_s8 }
0x1bd1   :  { %p7009_p1 = pnand %p7007_p0, %p7004_p13 }
0x1bd3   :  { %7012 = shalt.err (!%p7009_p1)
}
0x1bd4   :  { %5014 = dma.vmem_to_hbm [thread:$0]  %s5012_s1, 128, %s9570_s8, [#allocation4]  }
0x1bd5   :  { %7023 = dma.done.wait [#allocation4], 128  }
0x1bd6   :  { %7024 = vsyncadd [#allocation4], 4294967168 }
0x1bd7   :  { %5018 = vsyncpa [#allocation3], 1 }
0x1bd8   :  { %5019 = vsyncpa [#allocation7], 1 }
0x1bd9   :  { %5020 = vsyncpa [#allocation4], 1 }
0x1bda   :  { %5021 = vsyncpa [#allocation5], 1 }
0x1bdb   :  { %5022 = vsyncpa [#allocation10], 1 }
0x1bdc   :  { %5023 = vsyncpa [#allocation13], 1 }

</bundles_post_ra>
